<compile_context>
chip_gen: v7x
topology: tpu7x:2x2x1
jax: 0.10.0
libtpu: 0.0.40
codegen_flags: <defaults>
</compile_context>

<pallas_src>
import functools

import jax
import jax.numpy as jnp
from jax.experimental import pallas as pl
from jax.experimental.pallas import tpu as pltpu

KD = 3     # conv kernel size
PAD = 1    # conv padding
POOL = 3   # MaxPool2d(3): window 3, stride 3, floor mode


def _maxpool_nhwc(y, pool):
    """MaxPool2d(pool), floor mode, over H and W of a channels-last (B,H,W,C)
    value.  Only lane-preserving reshapes + elementwise maxima are used."""
    b, h, w, c = y.shape
    ho, wo = h // pool, w // pool
    y = y[:, :ho * pool, :wo * pool, :]
    y = y.reshape(b * ho, pool, wo * pool, c)
    y = functools.reduce(jnp.maximum, [y[:, k, :, :] for k in range(pool)])
    y = y.reshape(b * ho, wo, pool, c)
    y = functools.reduce(jnp.maximum, [y[:, :, k, :] for k in range(pool)])
    return y.reshape(b, ho, wo, c)


def convblock_kernel(w1_ref, b1_ref, x_ref, w2_ref, b2_ref, o_ref,
                     xp1_ref, xp2_ref):
    """Fused ConvBlock for one block of B batch elements (grid over batch).

    w1_ref : (KD*KD*Cin*C1,) f32 SMEM  stage-1 weights, read as scalars
    b1_ref : (C1,)           f32 SMEM  stage-1 bias,   read as scalars
    x_ref  : (B, Cin, H, W)  f32 VMEM  NCHW input block (W on the lane axis)
    w2_ref : (KD*KD*C1, C2)  f32 VMEM  stage-2 weights, tap-major rows
    b2_ref : (1, C2)         f32 VMEM
    o_ref  : (B, Ho*Wo, C2)  f32 VMEM  per-step output slab
    xp1_ref: (B, Cin, H+2P, W+2P)   VMEM scratch, padded stage-1 input
    xp2_ref: (B, H2+2P, W2+2P, C1)  VMEM scratch, padded stage-2 input
    """
    f32 = jnp.float32
    B, Cin, Hp1, Wp1 = xp1_ref.shape
    _, Hp2, Wp2, C1 = xp2_ref.shape
    C2 = w2_ref.shape[1]
    H, W = Hp1 - 2 * PAD, Wp1 - 2 * PAD
    hc1, wc1 = Hp1 - KD + 1, Wp1 - KD + 1      # stage-1 conv output spatial
    H2, W2 = Hp2 - 2 * PAD, Wp2 - 2 * PAD      # pooled stage-1 spatial
    hc2, wc2 = Hp2 - KD + 1, Wp2 - KD + 1      # stage-2 conv output spatial
    Ho, Wo = hc2 // POOL, wc2 // POOL

    # ---- zero ONLY the 1-pixel halos; interiors are fully rewritten below --
    xp1_ref[:, :, 0:PAD, :] = jnp.zeros((B, Cin, PAD, Wp1), f32)
    xp1_ref[:, :, PAD + H:Hp1, :] = jnp.zeros((B, Cin, Hp1 - PAD - H, Wp1), f32)
    xp1_ref[:, :, :, 0:PAD] = jnp.zeros((B, Cin, Hp1, PAD), f32)
    xp1_ref[:, :, :, PAD + W:Wp1] = jnp.zeros((B, Cin, Hp1, Wp1 - PAD - W), f32)

    xp2_ref[:, 0:PAD, :, :] = jnp.zeros((B, PAD, Wp2, C1), f32)
    xp2_ref[:, PAD + H2:Hp2, :, :] = jnp.zeros((B, Hp2 - PAD - H2, Wp2, C1), f32)
    xp2_ref[:, :, 0:PAD, :] = jnp.zeros((B, Hp2, PAD, C1), f32)
    xp2_ref[:, :, PAD + W2:Wp2, :] = jnp.zeros((B, Hp2, Wp2 - PAD - W2, C1), f32)

    # ---- stage 1: pad -> conv3x3 (VPU shift-FMA) -> bias -> ReLU -> pool ---
    xp1_ref[:, :, PAD:PAD + H, PAD:PAD + W] = x_ref[...]
    xp1 = xp1_ref[...]                                      # (B, Cin, Hp1, Wp1)

    # 9*Cin shifted FMAs per output channel; channels stay OFF the lane axis.
    accs = [jnp.zeros((B, hc1, wc1), f32) for _ in range(C1)]
    for kh in range(KD):
        for kw in range(KD):
            for ci in range(Cin):
                sl = xp1[:, ci, kh:kh + hc1, kw:kw + wc1]   # (B, hc1, wc1)
                base = ((kh * KD + kw) * Cin + ci) * C1
                for c1 in range(C1):
                    accs[c1] = accs[c1] + w1_ref[base + c1] * sl

    # bias + ReLU + row pooling per channel (W on lanes), then stack channels
    # last and column-pool with channels on lanes (lane-preserving reshapes).
    rows = []
    for c1 in range(C1):
        y = jnp.maximum(accs[c1] + b1_ref[c1], 0.0)         # (B, hc1, wc1)
        y = y[:, :H2 * POOL, :W2 * POOL]                    # floor-mode crop
        y = y.reshape(B * H2, POOL, W2 * POOL)
        rows.append(functools.reduce(
            jnp.maximum, [y[:, k, :] for k in range(POOL)]))  # (B*H2, W2*POOL)
    r = jnp.stack(rows, axis=-1)                            # (B*H2, W2*POOL, C1)
    r = r.reshape(B * H2, W2, POOL, C1)
    p1 = functools.reduce(jnp.maximum, [r[:, :, k, :] for k in range(POOL)])
    p1 = p1.reshape(B, H2, W2, C1)
    # padded stage-2 activation stays entirely in VMEM
    xp2_ref[:, PAD:PAD + H2, PAD:PAD + W2, :] = p1

    # ---- stage 2: conv3x3 as KD*KD accumulating MXU matmuls (K = C1) -------
    xp2 = xp2_ref[...]                                      # (B, Hp2, Wp2, C1)
    M2 = B * hc2 * wc2
    acc2 = jnp.zeros((M2, C2), f32)
    for kh in range(KD):
        for kw in range(KD):
            patch = xp2[:, kh:kh + hc2, kw:kw + wc2, :].reshape(M2, C1)
            t = kh * KD + kw
            acc2 = acc2 + jnp.dot(patch, w2_ref[t * C1:(t + 1) * C1, :],
                                  preferred_element_type=f32)
    y2 = jnp.maximum(acc2 + b2_ref[...], 0.0).reshape(B, hc2, wc2, C2)

    # ---- MaxPool -> single reshaped store per grid step ---------------------
    p2 = _maxpool_nhwc(y2, POOL)                            # (B, Ho, Wo, C2)
    o_ref[...] = p2.reshape(B, Ho * Wo, C2)


def _pick_batch_block(n):
    """Largest divisor of n that still leaves >= 2 grid steps (v7x: 2 TCs)."""
    best = 1
    for b in range(1, n + 1):
        if n % b == 0 and n // b >= 2:
            best = b
    return best


def conv_block_forward(x_nchw, params, batch_block=None):
    """Full ConvBlock forward. Input/output in PyTorch NCHW layout."""
    w1, b1, w2, b2 = params                                 # weights in HWIO
    N, Cin, H, W = x_nchw.shape
    C1 = w1.shape[3]
    C2 = w2.shape[3]

    hc1, wc1 = H + 2 * PAD - KD + 1, W + 2 * PAD - KD + 1
    H2, W2 = hc1 // POOL, wc1 // POOL
    hc2, wc2 = H2 + 2 * PAD - KD + 1, W2 + 2 * PAD - KD + 1
    Ho, Wo = hc2 // POOL, wc2 // POOL

    if batch_block is None:
        batch_block = _pick_batch_block(N)
    assert N % batch_block == 0
    B = batch_block
    steps = N // B

    x = x_nchw.astype(jnp.float32)
    w1_flat = w1.astype(jnp.float32).reshape(-1)            # (KD*KD*Cin*C1,)
    b1_flat = b1.astype(jnp.float32).reshape(-1)            # (C1,)
    w2r = w2.astype(jnp.float32).reshape(KD * KD * C1, C2)  # tap-major rows
    b2r = b2.astype(jnp.float32).reshape(1, C2)

    out = pl.pallas_call(
        convblock_kernel,
        out_shape=jax.ShapeDtypeStruct((N, Ho * Wo, C2), jnp.float32),
        grid_spec=pltpu.PrefetchScalarGridSpec(
            num_scalar_prefetch=0,
            grid=(steps,),
            in_specs=[
                pl.BlockSpec(memory_space=pltpu.MemorySpace.SMEM),    # w1 scalars
                pl.BlockSpec(memory_space=pltpu.MemorySpace.SMEM),    # b1 scalars
                pl.BlockSpec((B, Cin, H, W), lambda n: (n, 0, 0, 0)), # x (NCHW)
                pl.BlockSpec((KD * KD * C1, C2), lambda n: (0, 0)),   # w2
                pl.BlockSpec((1, C2), lambda n: (0, 0)),              # b2
            ],
            out_specs=pl.BlockSpec((B, Ho * Wo, C2), lambda n: (n, 0, 0)),
            scratch_shapes=[
                pltpu.VMEM((B, Cin, H + 2 * PAD, W + 2 * PAD), jnp.float32),
                pltpu.VMEM((B, H2 + 2 * PAD, W2 + 2 * PAD, C1), jnp.float32),
            ],
        ),
        compiler_params=pltpu.CompilerParams(
            dimension_semantics=("parallel",)),   # shard batch blocks across TCs
    )(w1_flat, b1_flat, x, w2r, b2r)

    out = out.reshape(N, Ho, Wo, C2)
    return jnp.transpose(out, (0, 3, 1, 2))                 # NHWC -> NCHW


def init_params(key, in_channels=1, out_channels=8, kernel_dim=3,
                filter_scaling=2):
    """Deterministic init mimicking PyTorch's uniform(-1/sqrt(fan_in), ...)."""
    k1, k2, k3, k4 = jax.random.split(key, 4)
    c1_out = out_channels
    c2_out = out_channels * filter_scaling

    def make_w(k, cin, cout):
        bound = 1.0 / jnp.sqrt(cin * kernel_dim * kernel_dim)
        w_oihw = jax.random.uniform(k, (cout, cin, kernel_dim, kernel_dim),
                                    jnp.float32, -bound, bound)
        return jnp.transpose(w_oihw, (2, 3, 1, 0))          # OIHW -> HWIO

    def make_b(k, cin, cout):
        bound = 1.0 / jnp.sqrt(cin * kernel_dim * kernel_dim)
        return jax.random.uniform(k, (cout,), jnp.float32, -bound, bound)

    w1 = make_w(k1, in_channels, c1_out)
    b1 = make_b(k2, in_channels, c1_out)
    w2 = make_w(k3, c1_out, c2_out)
    b2 = make_b(k4, c1_out, c2_out)
    return (w1, b1, w2, b2)


def reference_forward(x_nchw, params):
    """Pure-JAX (XLA) reference of the same ConvBlock for validation."""
    w1, b1, w2, b2 = params
    x = jnp.transpose(x_nchw, (0, 2, 3, 1))

    def stage(x, w, b):
        y = jax.lax.conv_general_dilated(
            x, w, window_strides=(1, 1), padding=[(PAD, PAD), (PAD, PAD)],
            dimension_numbers=("NHWC", "HWIO", "NHWC"))
        y = jnp.maximum(y + b[None, None, None, :], 0.0)
        y = jax.lax.reduce_window(y, -jnp.inf, jax.lax.max,
                                  (1, POOL, POOL, 1), (1, POOL, POOL, 1),
                                  "VALID")
        return y

    x = stage(x, w1, b1)
    x = stage(x, w2, b2)
    return jnp.transpose(x, (0, 3, 1, 2))


if __name__ == "__main__":
    key = jax.random.PRNGKey(0)
    kx, kp = jax.random.split(key)

    # Small input consistent with ConvBlock defaults (in_channels=1), NCHW.
    x = jax.random.normal(kx, (2, 1, 18, 18), jnp.float32)
    params = init_params(kp)

    out = jax.block_until_ready(conv_block_forward(x, params))
    ref = jax.block_until_ready(reference_forward(x, params))

    assert out.shape == (2, 16, 2, 2), out.shape
    assert jnp.allclose(out, ref, atol=1e-3, rtol=1e-3), \
        float(jnp.max(jnp.abs(out - ref)))

    print("KERNEL_OK")
</pallas_src>

<mosaic_0001>
module attributes {stable_mosaic.version = 11 : i64} {
  func.func @convblock_kernel(%arg0: i32, %arg1: memref<72xf32, #tpu.memory_space<smem>>, %arg2: memref<8xf32, #tpu.memory_space<smem>>, %arg3: memref<1x1x18x18xf32, #tpu.memory_space<vmem>>, %arg4: memref<72x16xf32, #tpu.memory_space<vmem>>, %arg5: memref<1x16xf32, #tpu.memory_space<vmem>>, %arg6: memref<1x4x16xf32, #tpu.memory_space<vmem>>, %arg7: memref<1x1x20x20xf32, #tpu.memory_space<vmem>>, %arg8: memref<1x8x8x8xf32, #tpu.memory_space<vmem>>) attributes {dimension_semantics = [#tpu.dimension_semantics<parallel>], iteration_bounds = array<i64: 2>, scalar_prefetch = 0 : i64, scratch_operands = 2 : i64, tpu.core_type = #tpu.core_type<tc>, window_params = [{transform_indices = @transform_0, window_bounds = array<i64: 72>}, {transform_indices = @transform_1, window_bounds = array<i64: 8>}, {transform_indices = @transform_2, window_bounds = array<i64: 1, 1, 18, 18>}, {pipeline_mode = #tpu.pipeline_mode<synchronous>, transform_indices = @transform_3, window_bounds = array<i64: 72, 16>}, {pipeline_mode = #tpu.pipeline_mode<synchronous>, transform_indices = @transform_4, window_bounds = array<i64: 1, 16>}, {transform_indices = @transform_5, window_bounds = array<i64: 1, 4, 16>}]} {
    %cst = arith.constant 0.000000e+00 : f32
    %0 = vector.broadcast %cst : f32 to vector<1x1x1x20xf32>
    %c0 = arith.constant 0 : index
    %c0_0 = arith.constant 0 : index
    %c0_1 = arith.constant 0 : index
    %c0_2 = arith.constant 0 : index
    %1 = vector.load %arg7[%c0, %c0_0, %c0_1, %c0_2] : memref<1x1x20x20xf32, #tpu.memory_space<vmem>>, vector<1x1x1x20xf32>
    tpu.vector_store %arg7[%c0, %c0_0, %c0_1, %c0_2], %0 {strides = array<i32>} : memref<1x1x20x20xf32, #tpu.memory_space<vmem>>, vector<1x1x1x20xf32>,
    %cst_3 = arith.constant 0.000000e+00 : f32
    %2 = vector.broadcast %cst_3 : f32 to vector<1x1x1x20xf32>
    %c0_4 = arith.constant 0 : index
    %c0_5 = arith.constant 0 : index
    %c19 = arith.constant 19 : index
    %c0_6 = arith.constant 0 : index
    %3 = vector.load %arg7[%c0_4, %c0_5, %c19, %c0_6] : memref<1x1x20x20xf32, #tpu.memory_space<vmem>>, vector<1x1x1x20xf32>
    tpu.vector_store %arg7[%c0_4, %c0_5, %c19, %c0_6], %2 {strides = array<i32>} : memref<1x1x20x20xf32, #tpu.memory_space<vmem>>, vector<1x1x1x20xf32>,
    %cst_7 = arith.constant 0.000000e+00 : f32
    %4 = vector.broadcast %cst_7 : f32 to vector<1x1x20x1xf32>
    %c0_8 = arith.constant 0 : index
    %c0_9 = arith.constant 0 : index
    %c0_10 = arith.constant 0 : index
    %c0_11 = arith.constant 0 : index
    %5 = vector.load %arg7[%c0_8, %c0_9, %c0_10, %c0_11] : memref<1x1x20x20xf32, #tpu.memory_space<vmem>>, vector<1x1x20x1xf32>
    tpu.vector_store %arg7[%c0_8, %c0_9, %c0_10, %c0_11], %4 {strides = array<i32>} : memref<1x1x20x20xf32, #tpu.memory_space<vmem>>, vector<1x1x20x1xf32>,
    %cst_12 = arith.constant 0.000000e+00 : f32
    %6 = vector.broadcast %cst_12 : f32 to vector<1x1x20x1xf32>
    %c0_13 = arith.constant 0 : index
    %c0_14 = arith.constant 0 : index
    %c0_15 = arith.constant 0 : index
    %c19_16 = arith.constant 19 : index
    %7 = vector.load %arg7[%c0_13, %c0_14, %c0_15, %c19_16] : memref<1x1x20x20xf32, #tpu.memory_space<vmem>>, vector<1x1x20x1xf32>
    tpu.vector_store %arg7[%c0_13, %c0_14, %c0_15, %c19_16], %6 {strides = array<i32>} : memref<1x1x20x20xf32, #tpu.memory_space<vmem>>, vector<1x1x20x1xf32>,
    %cst_17 = arith.constant 0.000000e+00 : f32
    %8 = vector.broadcast %cst_17 : f32 to vector<1x1x8x8xf32>
    %c0_18 = arith.constant 0 : index
    %c0_19 = arith.constant 0 : index
    %c0_20 = arith.constant 0 : index
    %c0_21 = arith.constant 0 : index
    %9 = vector.load %arg8[%c0_18, %c0_19, %c0_20, %c0_21] : memref<1x8x8x8xf32, #tpu.memory_space<vmem>>, vector<1x1x8x8xf32>
    tpu.vector_store %arg8[%c0_18, %c0_19, %c0_20, %c0_21], %8 {strides = array<i32>} : memref<1x8x8x8xf32, #tpu.memory_space<vmem>>, vector<1x1x8x8xf32>,
    %cst_22 = arith.constant 0.000000e+00 : f32
    %10 = vector.broadcast %cst_22 : f32 to vector<1x1x8x8xf32>
    %c0_23 = arith.constant 0 : index
    %c7 = arith.constant 7 : index
    %c0_24 = arith.constant 0 : index
    %c0_25 = arith.constant 0 : index
    %11 = vector.load %arg8[%c0_23, %c7, %c0_24, %c0_25] : memref<1x8x8x8xf32, #tpu.memory_space<vmem>>, vector<1x1x8x8xf32>
    tpu.vector_store %arg8[%c0_23, %c7, %c0_24, %c0_25], %10 {strides = array<i32>} : memref<1x8x8x8xf32, #tpu.memory_space<vmem>>, vector<1x1x8x8xf32>,
    %cst_26 = arith.constant 0.000000e+00 : f32
    %12 = vector.broadcast %cst_26 : f32 to vector<1x8x1x8xf32>
    %c0_27 = arith.constant 0 : index
    %c0_28 = arith.constant 0 : index
    %c0_29 = arith.constant 0 : index
    %c0_30 = arith.constant 0 : index
    %13 = vector.load %arg8[%c0_27, %c0_28, %c0_29, %c0_30] : memref<1x8x8x8xf32, #tpu.memory_space<vmem>>, vector<1x8x1x8xf32>
    tpu.vector_store %arg8[%c0_27, %c0_28, %c0_29, %c0_30], %12 {strides = array<i32>} : memref<1x8x8x8xf32, #tpu.memory_space<vmem>>, vector<1x8x1x8xf32>,
    %cst_31 = arith.constant 0.000000e+00 : f32
    %14 = vector.broadcast %cst_31 : f32 to vector<1x8x1x8xf32>
    %c0_32 = arith.constant 0 : index
    %c0_33 = arith.constant 0 : index
    %c7_34 = arith.constant 7 : index
    %c0_35 = arith.constant 0 : index
    %15 = vector.load %arg8[%c0_32, %c0_33, %c7_34, %c0_35] : memref<1x8x8x8xf32, #tpu.memory_space<vmem>>, vector<1x8x1x8xf32>
    tpu.vector_store %arg8[%c0_32, %c0_33, %c7_34, %c0_35], %14 {strides = array<i32>} : memref<1x8x8x8xf32, #tpu.memory_space<vmem>>, vector<1x8x1x8xf32>,
    %c0_36 = arith.constant 0 : index
    %c0_37 = arith.constant 0 : index
    %c0_38 = arith.constant 0 : index
    %c0_39 = arith.constant 0 : index
    %16 = vector.load %arg3[%c0_36, %c0_37, %c0_38, %c0_39] : memref<1x1x18x18xf32, #tpu.memory_space<vmem>>, vector<1x1x18x18xf32>
    %c0_40 = arith.constant 0 : index
    %c0_41 = arith.constant 0 : index
    %c1 = arith.constant 1 : index
    %c1_42 = arith.constant 1 : index
    %17 = vector.load %arg7[%c0_40, %c0_41, %c1, %c1_42] : memref<1x1x20x20xf32, #tpu.memory_space<vmem>>, vector<1x1x18x18xf32>
    tpu.vector_store %arg7[%c0_40, %c0_41, %c1, %c1_42], %16 {strides = array<i32>} : memref<1x1x20x20xf32, #tpu.memory_space<vmem>>, vector<1x1x18x18xf32>,
    %c0_43 = arith.constant 0 : index
    %c0_44 = arith.constant 0 : index
    %c0_45 = arith.constant 0 : index
    %c0_46 = arith.constant 0 : index
    %18 = vector.load %arg7[%c0_43, %c0_44, %c0_45, %c0_46] : memref<1x1x20x20xf32, #tpu.memory_space<vmem>>, vector<1x1x20x20xf32>
    %cst_47 = arith.constant 0.000000e+00 : f32
    %19 = vector.broadcast %cst_47 : f32 to vector<1x18x18xf32>
    %cst_48 = arith.constant 0.000000e+00 : f32
    %20 = vector.broadcast %cst_48 : f32 to vector<1x18x18xf32>
    %cst_49 = arith.constant 0.000000e+00 : f32
    %21 = vector.broadcast %cst_49 : f32 to vector<1x18x18xf32>
    %cst_50 = arith.constant 0.000000e+00 : f32
    %22 = vector.broadcast %cst_50 : f32 to vector<1x18x18xf32>
    %cst_51 = arith.constant 0.000000e+00 : f32
    %23 = vector.broadcast %cst_51 : f32 to vector<1x18x18xf32>
    %cst_52 = arith.constant 0.000000e+00 : f32
    %24 = vector.broadcast %cst_52 : f32 to vector<1x18x18xf32>
    %cst_53 = arith.constant 0.000000e+00 : f32
    %25 = vector.broadcast %cst_53 : f32 to vector<1x18x18xf32>
    %cst_54 = arith.constant 0.000000e+00 : f32
    %26 = vector.broadcast %cst_54 : f32 to vector<1x18x18xf32>
    %27 = vector.extract_strided_slice %18 {offsets = [0, 0, 0, 0], sizes = [1, 1, 18, 18], strides = [1, 1, 1, 1]} : vector<1x1x20x20xf32> to vector<1x1x18x18xf32>
    %28 = vector.shape_cast %27 : vector<1x1x18x18xf32> to vector<1x18x18xf32>
    %c0_55 = arith.constant 0 : index
    %29 = memref.load %arg1[%c0_55] : memref<72xf32, #tpu.memory_space<smem>>
    %30 = vector.broadcast %29 : f32 to vector<1x18x18xf32>
    %31 = arith.mulf %30, %28 : vector<1x18x18xf32>
    %32 = arith.addf %19, %31 : vector<1x18x18xf32>
    %c1_56 = arith.constant 1 : index
    %33 = memref.load %arg1[%c1_56] : memref<72xf32, #tpu.memory_space<smem>>
    %34 = vector.broadcast %33 : f32 to vector<1x18x18xf32>
    %35 = arith.mulf %34, %28 : vector<1x18x18xf32>
    %36 = arith.addf %20, %35 : vector<1x18x18xf32>
    %c2 = arith.constant 2 : index
    %37 = memref.load %arg1[%c2] : memref<72xf32, #tpu.memory_space<smem>>
    %38 = vector.broadcast %37 : f32 to vector<1x18x18xf32>
    %39 = arith.mulf %38, %28 : vector<1x18x18xf32>
    %40 = arith.addf %21, %39 : vector<1x18x18xf32>
    %c3 = arith.constant 3 : index
    %41 = memref.load %arg1[%c3] : memref<72xf32, #tpu.memory_space<smem>>
    %42 = vector.broadcast %41 : f32 to vector<1x18x18xf32>
    %43 = arith.mulf %42, %28 : vector<1x18x18xf32>
    %44 = arith.addf %22, %43 : vector<1x18x18xf32>
    %c4 = arith.constant 4 : index
    %45 = memref.load %arg1[%c4] : memref<72xf32, #tpu.memory_space<smem>>
    %46 = vector.broadcast %45 : f32 to vector<1x18x18xf32>
    %47 = arith.mulf %46, %28 : vector<1x18x18xf32>
    %48 = arith.addf %23, %47 : vector<1x18x18xf32>
    %c5 = arith.constant 5 : index
    %49 = memref.load %arg1[%c5] : memref<72xf32, #tpu.memory_space<smem>>
    %50 = vector.broadcast %49 : f32 to vector<1x18x18xf32>
    %51 = arith.mulf %50, %28 : vector<1x18x18xf32>
    %52 = arith.addf %24, %51 : vector<1x18x18xf32>
    %c6 = arith.constant 6 : index
    %53 = memref.load %arg1[%c6] : memref<72xf32, #tpu.memory_space<smem>>
    %54 = vector.broadcast %53 : f32 to vector<1x18x18xf32>
    %55 = arith.mulf %54, %28 : vector<1x18x18xf32>
    %56 = arith.addf %25, %55 : vector<1x18x18xf32>
    %c7_57 = arith.constant 7 : index
    %57 = memref.load %arg1[%c7_57] : memref<72xf32, #tpu.memory_space<smem>>
    %58 = vector.broadcast %57 : f32 to vector<1x18x18xf32>
    %59 = arith.mulf %58, %28 : vector<1x18x18xf32>
    %60 = arith.addf %26, %59 : vector<1x18x18xf32>
    %61 = vector.extract_strided_slice %18 {offsets = [0, 0, 0, 1], sizes = [1, 1, 18, 18], strides = [1, 1, 1, 1]} : vector<1x1x20x20xf32> to vector<1x1x18x18xf32>
    %62 = vector.shape_cast %61 : vector<1x1x18x18xf32> to vector<1x18x18xf32>
    %c8 = arith.constant 8 : index
    %63 = memref.load %arg1[%c8] : memref<72xf32, #tpu.memory_space<smem>>
    %64 = vector.broadcast %63 : f32 to vector<1x18x18xf32>
    %65 = arith.mulf %64, %62 : vector<1x18x18xf32>
    %66 = arith.addf %32, %65 : vector<1x18x18xf32>
    %c9 = arith.constant 9 : index
    %67 = memref.load %arg1[%c9] : memref<72xf32, #tpu.memory_space<smem>>
    %68 = vector.broadcast %67 : f32 to vector<1x18x18xf32>
    %69 = arith.mulf %68, %62 : vector<1x18x18xf32>
    %70 = arith.addf %36, %69 : vector<1x18x18xf32>
    %c10 = arith.constant 10 : index
    %71 = memref.load %arg1[%c10] : memref<72xf32, #tpu.memory_space<smem>>
    %72 = vector.broadcast %71 : f32 to vector<1x18x18xf32>
    %73 = arith.mulf %72, %62 : vector<1x18x18xf32>
    %74 = arith.addf %40, %73 : vector<1x18x18xf32>
    %c11 = arith.constant 11 : index
    %75 = memref.load %arg1[%c11] : memref<72xf32, #tpu.memory_space<smem>>
    %76 = vector.broadcast %75 : f32 to vector<1x18x18xf32>
    %77 = arith.mulf %76, %62 : vector<1x18x18xf32>
    %78 = arith.addf %44, %77 : vector<1x18x18xf32>
    %c12 = arith.constant 12 : index
    %79 = memref.load %arg1[%c12] : memref<72xf32, #tpu.memory_space<smem>>
    %80 = vector.broadcast %79 : f32 to vector<1x18x18xf32>
    %81 = arith.mulf %80, %62 : vector<1x18x18xf32>
    %82 = arith.addf %48, %81 : vector<1x18x18xf32>
    %c13 = arith.constant 13 : index
    %83 = memref.load %arg1[%c13] : memref<72xf32, #tpu.memory_space<smem>>
    %84 = vector.broadcast %83 : f32 to vector<1x18x18xf32>
    %85 = arith.mulf %84, %62 : vector<1x18x18xf32>
    %86 = arith.addf %52, %85 : vector<1x18x18xf32>
    %c14 = arith.constant 14 : index
    %87 = memref.load %arg1[%c14] : memref<72xf32, #tpu.memory_space<smem>>
    %88 = vector.broadcast %87 : f32 to vector<1x18x18xf32>
    %89 = arith.mulf %88, %62 : vector<1x18x18xf32>
    %90 = arith.addf %56, %89 : vector<1x18x18xf32>
    %c15 = arith.constant 15 : index
    %91 = memref.load %arg1[%c15] : memref<72xf32, #tpu.memory_space<smem>>
    %92 = vector.broadcast %91 : f32 to vector<1x18x18xf32>
    %93 = arith.mulf %92, %62 : vector<1x18x18xf32>
    %94 = arith.addf %60, %93 : vector<1x18x18xf32>
    %95 = vector.extract_strided_slice %18 {offsets = [0, 0, 0, 2], sizes = [1, 1, 18, 18], strides = [1, 1, 1, 1]} : vector<1x1x20x20xf32> to vector<1x1x18x18xf32>
    %96 = vector.shape_cast %95 : vector<1x1x18x18xf32> to vector<1x18x18xf32>
    %c16 = arith.constant 16 : index
    %97 = memref.load %arg1[%c16] : memref<72xf32, #tpu.memory_space<smem>>
    %98 = vector.broadcast %97 : f32 to vector<1x18x18xf32>
    %99 = arith.mulf %98, %96 : vector<1x18x18xf32>
    %100 = arith.addf %66, %99 : vector<1x18x18xf32>
    %c17 = arith.constant 17 : index
    %101 = memref.load %arg1[%c17] : memref<72xf32, #tpu.memory_space<smem>>
    %102 = vector.broadcast %101 : f32 to vector<1x18x18xf32>
    %103 = arith.mulf %102, %96 : vector<1x18x18xf32>
    %104 = arith.addf %70, %103 : vector<1x18x18xf32>
    %c18 = arith.constant 18 : index
    %105 = memref.load %arg1[%c18] : memref<72xf32, #tpu.memory_space<smem>>
    %106 = vector.broadcast %105 : f32 to vector<1x18x18xf32>
    %107 = arith.mulf %106, %96 : vector<1x18x18xf32>
    %108 = arith.addf %74, %107 : vector<1x18x18xf32>
    %c19_58 = arith.constant 19 : index
    %109 = memref.load %arg1[%c19_58] : memref<72xf32, #tpu.memory_space<smem>>
    %110 = vector.broadcast %109 : f32 to vector<1x18x18xf32>
    %111 = arith.mulf %110, %96 : vector<1x18x18xf32>
    %112 = arith.addf %78, %111 : vector<1x18x18xf32>
    %c20 = arith.constant 20 : index
    %113 = memref.load %arg1[%c20] : memref<72xf32, #tpu.memory_space<smem>>
    %114 = vector.broadcast %113 : f32 to vector<1x18x18xf32>
    %115 = arith.mulf %114, %96 : vector<1x18x18xf32>
    %116 = arith.addf %82, %115 : vector<1x18x18xf32>
    %c21 = arith.constant 21 : index
    %117 = memref.load %arg1[%c21] : memref<72xf32, #tpu.memory_space<smem>>
    %118 = vector.broadcast %117 : f32 to vector<1x18x18xf32>
    %119 = arith.mulf %118, %96 : vector<1x18x18xf32>
    %120 = arith.addf %86, %119 : vector<1x18x18xf32>
    %c22 = arith.constant 22 : index
    %121 = memref.load %arg1[%c22] : memref<72xf32, #tpu.memory_space<smem>>
    %122 = vector.broadcast %121 : f32 to vector<1x18x18xf32>
    %123 = arith.mulf %122, %96 : vector<1x18x18xf32>
    %124 = arith.addf %90, %123 : vector<1x18x18xf32>
    %c23 = arith.constant 23 : index
    %125 = memref.load %arg1[%c23] : memref<72xf32, #tpu.memory_space<smem>>
    %126 = vector.broadcast %125 : f32 to vector<1x18x18xf32>
    %127 = arith.mulf %126, %96 : vector<1x18x18xf32>
    %128 = arith.addf %94, %127 : vector<1x18x18xf32>
    %129 = vector.extract_strided_slice %18 {offsets = [0, 0, 1, 0], sizes = [1, 1, 18, 18], strides = [1, 1, 1, 1]} : vector<1x1x20x20xf32> to vector<1x1x18x18xf32>
    %130 = vector.shape_cast %129 : vector<1x1x18x18xf32> to vector<1x18x18xf32>
    %c24 = arith.constant 24 : index
    %131 = memref.load %arg1[%c24] : memref<72xf32, #tpu.memory_space<smem>>
    %132 = vector.broadcast %131 : f32 to vector<1x18x18xf32>
    %133 = arith.mulf %132, %130 : vector<1x18x18xf32>
    %134 = arith.addf %100, %133 : vector<1x18x18xf32>
    %c25 = arith.constant 25 : index
    %135 = memref.load %arg1[%c25] : memref<72xf32, #tpu.memory_space<smem>>
    %136 = vector.broadcast %135 : f32 to vector<1x18x18xf32>
    %137 = arith.mulf %136, %130 : vector<1x18x18xf32>
    %138 = arith.addf %104, %137 : vector<1x18x18xf32>
    %c26 = arith.constant 26 : index
    %139 = memref.load %arg1[%c26] : memref<72xf32, #tpu.memory_space<smem>>
    %140 = vector.broadcast %139 : f32 to vector<1x18x18xf32>
    %141 = arith.mulf %140, %130 : vector<1x18x18xf32>
    %142 = arith.addf %108, %141 : vector<1x18x18xf32>
    %c27 = arith.constant 27 : index
    %143 = memref.load %arg1[%c27] : memref<72xf32, #tpu.memory_space<smem>>
    %144 = vector.broadcast %143 : f32 to vector<1x18x18xf32>
    %145 = arith.mulf %144, %130 : vector<1x18x18xf32>
    %146 = arith.addf %112, %145 : vector<1x18x18xf32>
    %c28 = arith.constant 28 : index
    %147 = memref.load %arg1[%c28] : memref<72xf32, #tpu.memory_space<smem>>
    %148 = vector.broadcast %147 : f32 to vector<1x18x18xf32>
    %149 = arith.mulf %148, %130 : vector<1x18x18xf32>
    %150 = arith.addf %116, %149 : vector<1x18x18xf32>
    %c29 = arith.constant 29 : index
    %151 = memref.load %arg1[%c29] : memref<72xf32, #tpu.memory_space<smem>>
    %152 = vector.broadcast %151 : f32 to vector<1x18x18xf32>
    %153 = arith.mulf %152, %130 : vector<1x18x18xf32>
    %154 = arith.addf %120, %153 : vector<1x18x18xf32>
    %c30 = arith.constant 30 : index
    %155 = memref.load %arg1[%c30] : memref<72xf32, #tpu.memory_space<smem>>
    %156 = vector.broadcast %155 : f32 to vector<1x18x18xf32>
    %157 = arith.mulf %156, %130 : vector<1x18x18xf32>
    %158 = arith.addf %124, %157 : vector<1x18x18xf32>
    %c31 = arith.constant 31 : index
    %159 = memref.load %arg1[%c31] : memref<72xf32, #tpu.memory_space<smem>>
    %160 = vector.broadcast %159 : f32 to vector<1x18x18xf32>
    %161 = arith.mulf %160, %130 : vector<1x18x18xf32>
    %162 = arith.addf %128, %161 : vector<1x18x18xf32>
    %163 = vector.extract_strided_slice %18 {offsets = [0, 0, 1, 1], sizes = [1, 1, 18, 18], strides = [1, 1, 1, 1]} : vector<1x1x20x20xf32> to vector<1x1x18x18xf32>
    %164 = vector.shape_cast %163 : vector<1x1x18x18xf32> to vector<1x18x18xf32>
    %c32 = arith.constant 32 : index
    %165 = memref.load %arg1[%c32] : memref<72xf32, #tpu.memory_space<smem>>
    %166 = vector.broadcast %165 : f32 to vector<1x18x18xf32>
    %167 = arith.mulf %166, %164 : vector<1x18x18xf32>
    %168 = arith.addf %134, %167 : vector<1x18x18xf32>
    %c33 = arith.constant 33 : index
    %169 = memref.load %arg1[%c33] : memref<72xf32, #tpu.memory_space<smem>>
    %170 = vector.broadcast %169 : f32 to vector<1x18x18xf32>
    %171 = arith.mulf %170, %164 : vector<1x18x18xf32>
    %172 = arith.addf %138, %171 : vector<1x18x18xf32>
    %c34 = arith.constant 34 : index
    %173 = memref.load %arg1[%c34] : memref<72xf32, #tpu.memory_space<smem>>
    %174 = vector.broadcast %173 : f32 to vector<1x18x18xf32>
    %175 = arith.mulf %174, %164 : vector<1x18x18xf32>
    %176 = arith.addf %142, %175 : vector<1x18x18xf32>
    %c35 = arith.constant 35 : index
    %177 = memref.load %arg1[%c35] : memref<72xf32, #tpu.memory_space<smem>>
    %178 = vector.broadcast %177 : f32 to vector<1x18x18xf32>
    %179 = arith.mulf %178, %164 : vector<1x18x18xf32>
    %180 = arith.addf %146, %179 : vector<1x18x18xf32>
    %c36 = arith.constant 36 : index
    %181 = memref.load %arg1[%c36] : memref<72xf32, #tpu.memory_space<smem>>
    %182 = vector.broadcast %181 : f32 to vector<1x18x18xf32>
    %183 = arith.mulf %182, %164 : vector<1x18x18xf32>
    %184 = arith.addf %150, %183 : vector<1x18x18xf32>
    %c37 = arith.constant 37 : index
    %185 = memref.load %arg1[%c37] : memref<72xf32, #tpu.memory_space<smem>>
    %186 = vector.broadcast %185 : f32 to vector<1x18x18xf32>
    %187 = arith.mulf %186, %164 : vector<1x18x18xf32>
    %188 = arith.addf %154, %187 : vector<1x18x18xf32>
    %c38 = arith.constant 38 : index
    %189 = memref.load %arg1[%c38] : memref<72xf32, #tpu.memory_space<smem>>
    %190 = vector.broadcast %189 : f32 to vector<1x18x18xf32>
    %191 = arith.mulf %190, %164 : vector<1x18x18xf32>
    %192 = arith.addf %158, %191 : vector<1x18x18xf32>
    %c39 = arith.constant 39 : index
    %193 = memref.load %arg1[%c39] : memref<72xf32, #tpu.memory_space<smem>>
    %194 = vector.broadcast %193 : f32 to vector<1x18x18xf32>
    %195 = arith.mulf %194, %164 : vector<1x18x18xf32>
    %196 = arith.addf %162, %195 : vector<1x18x18xf32>
    %197 = vector.extract_strided_slice %18 {offsets = [0, 0, 1, 2], sizes = [1, 1, 18, 18], strides = [1, 1, 1, 1]} : vector<1x1x20x20xf32> to vector<1x1x18x18xf32>
    %198 = vector.shape_cast %197 : vector<1x1x18x18xf32> to vector<1x18x18xf32>
    %c40 = arith.constant 40 : index
    %199 = memref.load %arg1[%c40] : memref<72xf32, #tpu.memory_space<smem>>
    %200 = vector.broadcast %199 : f32 to vector<1x18x18xf32>
    %201 = arith.mulf %200, %198 : vector<1x18x18xf32>
    %202 = arith.addf %168, %201 : vector<1x18x18xf32>
    %c41 = arith.constant 41 : index
    %203 = memref.load %arg1[%c41] : memref<72xf32, #tpu.memory_space<smem>>
    %204 = vector.broadcast %203 : f32 to vector<1x18x18xf32>
    %205 = arith.mulf %204, %198 : vector<1x18x18xf32>
    %206 = arith.addf %172, %205 : vector<1x18x18xf32>
    %c42 = arith.constant 42 : index
    %207 = memref.load %arg1[%c42] : memref<72xf32, #tpu.memory_space<smem>>
    %208 = vector.broadcast %207 : f32 to vector<1x18x18xf32>
    %209 = arith.mulf %208, %198 : vector<1x18x18xf32>
    %210 = arith.addf %176, %209 : vector<1x18x18xf32>
    %c43 = arith.constant 43 : index
    %211 = memref.load %arg1[%c43] : memref<72xf32, #tpu.memory_space<smem>>
    %212 = vector.broadcast %211 : f32 to vector<1x18x18xf32>
    %213 = arith.mulf %212, %198 : vector<1x18x18xf32>
    %214 = arith.addf %180, %213 : vector<1x18x18xf32>
    %c44 = arith.constant 44 : index
    %215 = memref.load %arg1[%c44] : memref<72xf32, #tpu.memory_space<smem>>
    %216 = vector.broadcast %215 : f32 to vector<1x18x18xf32>
    %217 = arith.mulf %216, %198 : vector<1x18x18xf32>
    %218 = arith.addf %184, %217 : vector<1x18x18xf32>
    %c45 = arith.constant 45 : index
    %219 = memref.load %arg1[%c45] : memref<72xf32, #tpu.memory_space<smem>>
    %220 = vector.broadcast %219 : f32 to vector<1x18x18xf32>
    %221 = arith.mulf %220, %198 : vector<1x18x18xf32>
    %222 = arith.addf %188, %221 : vector<1x18x18xf32>
    %c46 = arith.constant 46 : index
    %223 = memref.load %arg1[%c46] : memref<72xf32, #tpu.memory_space<smem>>
    %224 = vector.broadcast %223 : f32 to vector<1x18x18xf32>
    %225 = arith.mulf %224, %198 : vector<1x18x18xf32>
    %226 = arith.addf %192, %225 : vector<1x18x18xf32>
    %c47 = arith.constant 47 : index
    %227 = memref.load %arg1[%c47] : memref<72xf32, #tpu.memory_space<smem>>
    %228 = vector.broadcast %227 : f32 to vector<1x18x18xf32>
    %229 = arith.mulf %228, %198 : vector<1x18x18xf32>
    %230 = arith.addf %196, %229 : vector<1x18x18xf32>
    %231 = vector.extract_strided_slice %18 {offsets = [0, 0, 2, 0], sizes = [1, 1, 18, 18], strides = [1, 1, 1, 1]} : vector<1x1x20x20xf32> to vector<1x1x18x18xf32>
    %232 = vector.shape_cast %231 : vector<1x1x18x18xf32> to vector<1x18x18xf32>
    %c48 = arith.constant 48 : index
    %233 = memref.load %arg1[%c48] : memref<72xf32, #tpu.memory_space<smem>>
    %234 = vector.broadcast %233 : f32 to vector<1x18x18xf32>
    %235 = arith.mulf %234, %232 : vector<1x18x18xf32>
    %236 = arith.addf %202, %235 : vector<1x18x18xf32>
    %c49 = arith.constant 49 : index
    %237 = memref.load %arg1[%c49] : memref<72xf32, #tpu.memory_space<smem>>
    %238 = vector.broadcast %237 : f32 to vector<1x18x18xf32>
    %239 = arith.mulf %238, %232 : vector<1x18x18xf32>
    %240 = arith.addf %206, %239 : vector<1x18x18xf32>
    %c50 = arith.constant 50 : index
    %241 = memref.load %arg1[%c50] : memref<72xf32, #tpu.memory_space<smem>>
    %242 = vector.broadcast %241 : f32 to vector<1x18x18xf32>
    %243 = arith.mulf %242, %232 : vector<1x18x18xf32>
    %244 = arith.addf %210, %243 : vector<1x18x18xf32>
    %c51 = arith.constant 51 : index
    %245 = memref.load %arg1[%c51] : memref<72xf32, #tpu.memory_space<smem>>
    %246 = vector.broadcast %245 : f32 to vector<1x18x18xf32>
    %247 = arith.mulf %246, %232 : vector<1x18x18xf32>
    %248 = arith.addf %214, %247 : vector<1x18x18xf32>
    %c52 = arith.constant 52 : index
    %249 = memref.load %arg1[%c52] : memref<72xf32, #tpu.memory_space<smem>>
    %250 = vector.broadcast %249 : f32 to vector<1x18x18xf32>
    %251 = arith.mulf %250, %232 : vector<1x18x18xf32>
    %252 = arith.addf %218, %251 : vector<1x18x18xf32>
    %c53 = arith.constant 53 : index
    %253 = memref.load %arg1[%c53] : memref<72xf32, #tpu.memory_space<smem>>
    %254 = vector.broadcast %253 : f32 to vector<1x18x18xf32>
    %255 = arith.mulf %254, %232 : vector<1x18x18xf32>
    %256 = arith.addf %222, %255 : vector<1x18x18xf32>
    %c54 = arith.constant 54 : index
    %257 = memref.load %arg1[%c54] : memref<72xf32, #tpu.memory_space<smem>>
    %258 = vector.broadcast %257 : f32 to vector<1x18x18xf32>
    %259 = arith.mulf %258, %232 : vector<1x18x18xf32>
    %260 = arith.addf %226, %259 : vector<1x18x18xf32>
    %c55 = arith.constant 55 : index
    %261 = memref.load %arg1[%c55] : memref<72xf32, #tpu.memory_space<smem>>
    %262 = vector.broadcast %261 : f32 to vector<1x18x18xf32>
    %263 = arith.mulf %262, %232 : vector<1x18x18xf32>
    %264 = arith.addf %230, %263 : vector<1x18x18xf32>
    %265 = vector.extract_strided_slice %18 {offsets = [0, 0, 2, 1], sizes = [1, 1, 18, 18], strides = [1, 1, 1, 1]} : vector<1x1x20x20xf32> to vector<1x1x18x18xf32>
    %266 = vector.shape_cast %265 : vector<1x1x18x18xf32> to vector<1x18x18xf32>
    %c56 = arith.constant 56 : index
    %267 = memref.load %arg1[%c56] : memref<72xf32, #tpu.memory_space<smem>>
    %268 = vector.broadcast %267 : f32 to vector<1x18x18xf32>
    %269 = arith.mulf %268, %266 : vector<1x18x18xf32>
    %270 = arith.addf %236, %269 : vector<1x18x18xf32>
    %c57 = arith.constant 57 : index
    %271 = memref.load %arg1[%c57] : memref<72xf32, #tpu.memory_space<smem>>
    %272 = vector.broadcast %271 : f32 to vector<1x18x18xf32>
    %273 = arith.mulf %272, %266 : vector<1x18x18xf32>
    %274 = arith.addf %240, %273 : vector<1x18x18xf32>
    %c58 = arith.constant 58 : index
    %275 = memref.load %arg1[%c58] : memref<72xf32, #tpu.memory_space<smem>>
    %276 = vector.broadcast %275 : f32 to vector<1x18x18xf32>
    %277 = arith.mulf %276, %266 : vector<1x18x18xf32>
    %278 = arith.addf %244, %277 : vector<1x18x18xf32>
    %c59 = arith.constant 59 : index
    %279 = memref.load %arg1[%c59] : memref<72xf32, #tpu.memory_space<smem>>
    %280 = vector.broadcast %279 : f32 to vector<1x18x18xf32>
    %281 = arith.mulf %280, %266 : vector<1x18x18xf32>
    %282 = arith.addf %248, %281 : vector<1x18x18xf32>
    %c60 = arith.constant 60 : index
    %283 = memref.load %arg1[%c60] : memref<72xf32, #tpu.memory_space<smem>>
    %284 = vector.broadcast %283 : f32 to vector<1x18x18xf32>
    %285 = arith.mulf %284, %266 : vector<1x18x18xf32>
    %286 = arith.addf %252, %285 : vector<1x18x18xf32>
    %c61 = arith.constant 61 : index
    %287 = memref.load %arg1[%c61] : memref<72xf32, #tpu.memory_space<smem>>
    %288 = vector.broadcast %287 : f32 to vector<1x18x18xf32>
    %289 = arith.mulf %288, %266 : vector<1x18x18xf32>
    %290 = arith.addf %256, %289 : vector<1x18x18xf32>
    %c62 = arith.constant 62 : index
    %291 = memref.load %arg1[%c62] : memref<72xf32, #tpu.memory_space<smem>>
    %292 = vector.broadcast %291 : f32 to vector<1x18x18xf32>
    %293 = arith.mulf %292, %266 : vector<1x18x18xf32>
    %294 = arith.addf %260, %293 : vector<1x18x18xf32>
    %c63 = arith.constant 63 : index
    %295 = memref.load %arg1[%c63] : memref<72xf32, #tpu.memory_space<smem>>
    %296 = vector.broadcast %295 : f32 to vector<1x18x18xf32>
    %297 = arith.mulf %296, %266 : vector<1x18x18xf32>
    %298 = arith.addf %264, %297 : vector<1x18x18xf32>
    %299 = vector.extract_strided_slice %18 {offsets = [0, 0, 2, 2], sizes = [1, 1, 18, 18], strides = [1, 1, 1, 1]} : vector<1x1x20x20xf32> to vector<1x1x18x18xf32>
    %300 = vector.shape_cast %299 : vector<1x1x18x18xf32> to vector<1x18x18xf32>
    %c64 = arith.constant 64 : index
    %301 = memref.load %arg1[%c64] : memref<72xf32, #tpu.memory_space<smem>>
    %302 = vector.broadcast %301 : f32 to vector<1x18x18xf32>
    %303 = arith.mulf %302, %300 : vector<1x18x18xf32>
    %304 = arith.addf %270, %303 : vector<1x18x18xf32>
    %c65 = arith.constant 65 : index
    %305 = memref.load %arg1[%c65] : memref<72xf32, #tpu.memory_space<smem>>
    %306 = vector.broadcast %305 : f32 to vector<1x18x18xf32>
    %307 = arith.mulf %306, %300 : vector<1x18x18xf32>
    %308 = arith.addf %274, %307 : vector<1x18x18xf32>
    %c66 = arith.constant 66 : index
    %309 = memref.load %arg1[%c66] : memref<72xf32, #tpu.memory_space<smem>>
    %310 = vector.broadcast %309 : f32 to vector<1x18x18xf32>
    %311 = arith.mulf %310, %300 : vector<1x18x18xf32>
    %312 = arith.addf %278, %311 : vector<1x18x18xf32>
    %c67 = arith.constant 67 : index
    %313 = memref.load %arg1[%c67] : memref<72xf32, #tpu.memory_space<smem>>
    %314 = vector.broadcast %313 : f32 to vector<1x18x18xf32>
    %315 = arith.mulf %314, %300 : vector<1x18x18xf32>
    %316 = arith.addf %282, %315 : vector<1x18x18xf32>
    %c68 = arith.constant 68 : index
    %317 = memref.load %arg1[%c68] : memref<72xf32, #tpu.memory_space<smem>>
    %318 = vector.broadcast %317 : f32 to vector<1x18x18xf32>
    %319 = arith.mulf %318, %300 : vector<1x18x18xf32>
    %320 = arith.addf %286, %319 : vector<1x18x18xf32>
    %c69 = arith.constant 69 : index
    %321 = memref.load %arg1[%c69] : memref<72xf32, #tpu.memory_space<smem>>
    %322 = vector.broadcast %321 : f32 to vector<1x18x18xf32>
    %323 = arith.mulf %322, %300 : vector<1x18x18xf32>
    %324 = arith.addf %290, %323 : vector<1x18x18xf32>
    %c70 = arith.constant 70 : index
    %325 = memref.load %arg1[%c70] : memref<72xf32, #tpu.memory_space<smem>>
    %326 = vector.broadcast %325 : f32 to vector<1x18x18xf32>
    %327 = arith.mulf %326, %300 : vector<1x18x18xf32>
    %328 = arith.addf %294, %327 : vector<1x18x18xf32>
    %c71 = arith.constant 71 : index
    %329 = memref.load %arg1[%c71] : memref<72xf32, #tpu.memory_space<smem>>
    %330 = vector.broadcast %329 : f32 to vector<1x18x18xf32>
    %331 = arith.mulf %330, %300 : vector<1x18x18xf32>
    %332 = arith.addf %298, %331 : vector<1x18x18xf32>
    %c0_59 = arith.constant 0 : index
    %333 = memref.load %arg2[%c0_59] : memref<8xf32, #tpu.memory_space<smem>>
    %334 = vector.broadcast %333 : f32 to vector<1x18x18xf32>
    %335 = arith.addf %304, %334 : vector<1x18x18xf32>
    %cst_60 = arith.constant 0.000000e+00 : f32
    %336 = vector.broadcast %cst_60 : f32 to vector<1x18x18xf32>
    %337 = arith.maximumf %335, %336 : vector<1x18x18xf32>
    %338 = vector.shape_cast %337 : vector<1x18x18xf32> to vector<6x3x18xf32>
    %339 = vector.extract_strided_slice %338 {offsets = [0, 0, 0], sizes = [6, 1, 18], strides = [1, 1, 1]} : vector<6x3x18xf32> to vector<6x1x18xf32>
    %340 = vector.shape_cast %339 : vector<6x1x18xf32> to vector<6x18xf32>
    %341 = vector.extract_strided_slice %338 {offsets = [0, 1, 0], sizes = [6, 1, 18], strides = [1, 1, 1]} : vector<6x3x18xf32> to vector<6x1x18xf32>
    %342 = vector.shape_cast %341 : vector<6x1x18xf32> to vector<6x18xf32>
    %343 = vector.extract_strided_slice %338 {offsets = [0, 2, 0], sizes = [6, 1, 18], strides = [1, 1, 1]} : vector<6x3x18xf32> to vector<6x1x18xf32>
    %344 = vector.shape_cast %343 : vector<6x1x18xf32> to vector<6x18xf32>
    %345 = arith.maximumf %340, %342 : vector<6x18xf32>
    %346 = arith.maximumf %345, %344 : vector<6x18xf32>
    %c1_61 = arith.constant 1 : index
    %347 = memref.load %arg2[%c1_61] : memref<8xf32, #tpu.memory_space<smem>>
    %348 = vector.broadcast %347 : f32 to vector<1x18x18xf32>
    %349 = arith.addf %308, %348 : vector<1x18x18xf32>
    %cst_62 = arith.constant 0.000000e+00 : f32
    %350 = vector.broadcast %cst_62 : f32 to vector<1x18x18xf32>
    %351 = arith.maximumf %349, %350 : vector<1x18x18xf32>
    %352 = vector.shape_cast %351 : vector<1x18x18xf32> to vector<6x3x18xf32>
    %353 = vector.extract_strided_slice %352 {offsets = [0, 0, 0], sizes = [6, 1, 18], strides = [1, 1, 1]} : vector<6x3x18xf32> to vector<6x1x18xf32>
    %354 = vector.shape_cast %353 : vector<6x1x18xf32> to vector<6x18xf32>
    %355 = vector.extract_strided_slice %352 {offsets = [0, 1, 0], sizes = [6, 1, 18], strides = [1, 1, 1]} : vector<6x3x18xf32> to vector<6x1x18xf32>
    %356 = vector.shape_cast %355 : vector<6x1x18xf32> to vector<6x18xf32>
    %357 = vector.extract_strided_slice %352 {offsets = [0, 2, 0], sizes = [6, 1, 18], strides = [1, 1, 1]} : vector<6x3x18xf32> to vector<6x1x18xf32>
    %358 = vector.shape_cast %357 : vector<6x1x18xf32> to vector<6x18xf32>
    %359 = arith.maximumf %354, %356 : vector<6x18xf32>
    %360 = arith.maximumf %359, %358 : vector<6x18xf32>
    %c2_63 = arith.constant 2 : index
    %361 = memref.load %arg2[%c2_63] : memref<8xf32, #tpu.memory_space<smem>>
    %362 = vector.broadcast %361 : f32 to vector<1x18x18xf32>
    %363 = arith.addf %312, %362 : vector<1x18x18xf32>
    %cst_64 = arith.constant 0.000000e+00 : f32
    %364 = vector.broadcast %cst_64 : f32 to vector<1x18x18xf32>
    %365 = arith.maximumf %363, %364 : vector<1x18x18xf32>
    %366 = vector.shape_cast %365 : vector<1x18x18xf32> to vector<6x3x18xf32>
    %367 = vector.extract_strided_slice %366 {offsets = [0, 0, 0], sizes = [6, 1, 18], strides = [1, 1, 1]} : vector<6x3x18xf32> to vector<6x1x18xf32>
    %368 = vector.shape_cast %367 : vector<6x1x18xf32> to vector<6x18xf32>
    %369 = vector.extract_strided_slice %366 {offsets = [0, 1, 0], sizes = [6, 1, 18], strides = [1, 1, 1]} : vector<6x3x18xf32> to vector<6x1x18xf32>
    %370 = vector.shape_cast %369 : vector<6x1x18xf32> to vector<6x18xf32>
    %371 = vector.extract_strided_slice %366 {offsets = [0, 2, 0], sizes = [6, 1, 18], strides = [1, 1, 1]} : vector<6x3x18xf32> to vector<6x1x18xf32>
    %372 = vector.shape_cast %371 : vector<6x1x18xf32> to vector<6x18xf32>
    %373 = arith.maximumf %368, %370 : vector<6x18xf32>
    %374 = arith.maximumf %373, %372 : vector<6x18xf32>
    %c3_65 = arith.constant 3 : index
    %375 = memref.load %arg2[%c3_65] : memref<8xf32, #tpu.memory_space<smem>>
    %376 = vector.broadcast %375 : f32 to vector<1x18x18xf32>
    %377 = arith.addf %316, %376 : vector<1x18x18xf32>
    %cst_66 = arith.constant 0.000000e+00 : f32
    %378 = vector.broadcast %cst_66 : f32 to vector<1x18x18xf32>
    %379 = arith.maximumf %377, %378 : vector<1x18x18xf32>
    %380 = vector.shape_cast %379 : vector<1x18x18xf32> to vector<6x3x18xf32>
    %381 = vector.extract_strided_slice %380 {offsets = [0, 0, 0], sizes = [6, 1, 18], strides = [1, 1, 1]} : vector<6x3x18xf32> to vector<6x1x18xf32>
    %382 = vector.shape_cast %381 : vector<6x1x18xf32> to vector<6x18xf32>
    %383 = vector.extract_strided_slice %380 {offsets = [0, 1, 0], sizes = [6, 1, 18], strides = [1, 1, 1]} : vector<6x3x18xf32> to vector<6x1x18xf32>
    %384 = vector.shape_cast %383 : vector<6x1x18xf32> to vector<6x18xf32>
    %385 = vector.extract_strided_slice %380 {offsets = [0, 2, 0], sizes = [6, 1, 18], strides = [1, 1, 1]} : vector<6x3x18xf32> to vector<6x1x18xf32>
    %386 = vector.shape_cast %385 : vector<6x1x18xf32> to vector<6x18xf32>
    %387 = arith.maximumf %382, %384 : vector<6x18xf32>
    %388 = arith.maximumf %387, %386 : vector<6x18xf32>
    %c4_67 = arith.constant 4 : index
    %389 = memref.load %arg2[%c4_67] : memref<8xf32, #tpu.memory_space<smem>>
    %390 = vector.broadcast %389 : f32 to vector<1x18x18xf32>
    %391 = arith.addf %320, %390 : vector<1x18x18xf32>
    %cst_68 = arith.constant 0.000000e+00 : f32
    %392 = vector.broadcast %cst_68 : f32 to vector<1x18x18xf32>
    %393 = arith.maximumf %391, %392 : vector<1x18x18xf32>
    %394 = vector.shape_cast %393 : vector<1x18x18xf32> to vector<6x3x18xf32>
    %395 = vector.extract_strided_slice %394 {offsets = [0, 0, 0], sizes = [6, 1, 18], strides = [1, 1, 1]} : vector<6x3x18xf32> to vector<6x1x18xf32>
    %396 = vector.shape_cast %395 : vector<6x1x18xf32> to vector<6x18xf32>
    %397 = vector.extract_strided_slice %394 {offsets = [0, 1, 0], sizes = [6, 1, 18], strides = [1, 1, 1]} : vector<6x3x18xf32> to vector<6x1x18xf32>
    %398 = vector.shape_cast %397 : vector<6x1x18xf32> to vector<6x18xf32>
    %399 = vector.extract_strided_slice %394 {offsets = [0, 2, 0], sizes = [6, 1, 18], strides = [1, 1, 1]} : vector<6x3x18xf32> to vector<6x1x18xf32>
    %400 = vector.shape_cast %399 : vector<6x1x18xf32> to vector<6x18xf32>
    %401 = arith.maximumf %396, %398 : vector<6x18xf32>
    %402 = arith.maximumf %401, %400 : vector<6x18xf32>
    %c5_69 = arith.constant 5 : index
    %403 = memref.load %arg2[%c5_69] : memref<8xf32, #tpu.memory_space<smem>>
    %404 = vector.broadcast %403 : f32 to vector<1x18x18xf32>
    %405 = arith.addf %324, %404 : vector<1x18x18xf32>
    %cst_70 = arith.constant 0.000000e+00 : f32
    %406 = vector.broadcast %cst_70 : f32 to vector<1x18x18xf32>
    %407 = arith.maximumf %405, %406 : vector<1x18x18xf32>
    %408 = vector.shape_cast %407 : vector<1x18x18xf32> to vector<6x3x18xf32>
    %409 = vector.extract_strided_slice %408 {offsets = [0, 0, 0], sizes = [6, 1, 18], strides = [1, 1, 1]} : vector<6x3x18xf32> to vector<6x1x18xf32>
    %410 = vector.shape_cast %409 : vector<6x1x18xf32> to vector<6x18xf32>
    %411 = vector.extract_strided_slice %408 {offsets = [0, 1, 0], sizes = [6, 1, 18], strides = [1, 1, 1]} : vector<6x3x18xf32> to vector<6x1x18xf32>
    %412 = vector.shape_cast %411 : vector<6x1x18xf32> to vector<6x18xf32>
    %413 = vector.extract_strided_slice %408 {offsets = [0, 2, 0], sizes = [6, 1, 18], strides = [1, 1, 1]} : vector<6x3x18xf32> to vector<6x1x18xf32>
    %414 = vector.shape_cast %413 : vector<6x1x18xf32> to vector<6x18xf32>
    %415 = arith.maximumf %410, %412 : vector<6x18xf32>
    %416 = arith.maximumf %415, %414 : vector<6x18xf32>
    %c6_71 = arith.constant 6 : index
    %417 = memref.load %arg2[%c6_71] : memref<8xf32, #tpu.memory_space<smem>>
    %418 = vector.broadcast %417 : f32 to vector<1x18x18xf32>
    %419 = arith.addf %328, %418 : vector<1x18x18xf32>
    %cst_72 = arith.constant 0.000000e+00 : f32
    %420 = vector.broadcast %cst_72 : f32 to vector<1x18x18xf32>
    %421 = arith.maximumf %419, %420 : vector<1x18x18xf32>
    %422 = vector.shape_cast %421 : vector<1x18x18xf32> to vector<6x3x18xf32>
    %423 = vector.extract_strided_slice %422 {offsets = [0, 0, 0], sizes = [6, 1, 18], strides = [1, 1, 1]} : vector<6x3x18xf32> to vector<6x1x18xf32>
    %424 = vector.shape_cast %423 : vector<6x1x18xf32> to vector<6x18xf32>
    %425 = vector.extract_strided_slice %422 {offsets = [0, 1, 0], sizes = [6, 1, 18], strides = [1, 1, 1]} : vector<6x3x18xf32> to vector<6x1x18xf32>
    %426 = vector.shape_cast %425 : vector<6x1x18xf32> to vector<6x18xf32>
    %427 = vector.extract_strided_slice %422 {offsets = [0, 2, 0], sizes = [6, 1, 18], strides = [1, 1, 1]} : vector<6x3x18xf32> to vector<6x1x18xf32>
    %428 = vector.shape_cast %427 : vector<6x1x18xf32> to vector<6x18xf32>
    %429 = arith.maximumf %424, %426 : vector<6x18xf32>
    %430 = arith.maximumf %429, %428 : vector<6x18xf32>
    %c7_73 = arith.constant 7 : index
    %431 = memref.load %arg2[%c7_73] : memref<8xf32, #tpu.memory_space<smem>>
    %432 = vector.broadcast %431 : f32 to vector<1x18x18xf32>
    %433 = arith.addf %332, %432 : vector<1x18x18xf32>
    %cst_74 = arith.constant 0.000000e+00 : f32
    %434 = vector.broadcast %cst_74 : f32 to vector<1x18x18xf32>
    %435 = arith.maximumf %433, %434 : vector<1x18x18xf32>
    %436 = vector.shape_cast %435 : vector<1x18x18xf32> to vector<6x3x18xf32>
    %437 = vector.extract_strided_slice %436 {offsets = [0, 0, 0], sizes = [6, 1, 18], strides = [1, 1, 1]} : vector<6x3x18xf32> to vector<6x1x18xf32>
    %438 = vector.shape_cast %437 : vector<6x1x18xf32> to vector<6x18xf32>
    %439 = vector.extract_strided_slice %436 {offsets = [0, 1, 0], sizes = [6, 1, 18], strides = [1, 1, 1]} : vector<6x3x18xf32> to vector<6x1x18xf32>
    %440 = vector.shape_cast %439 : vector<6x1x18xf32> to vector<6x18xf32>
    %441 = vector.extract_strided_slice %436 {offsets = [0, 2, 0], sizes = [6, 1, 18], strides = [1, 1, 1]} : vector<6x3x18xf32> to vector<6x1x18xf32>
    %442 = vector.shape_cast %441 : vector<6x1x18xf32> to vector<6x18xf32>
    %443 = arith.maximumf %438, %440 : vector<6x18xf32>
    %444 = arith.maximumf %443, %442 : vector<6x18xf32>
    %445 = vector.shape_cast %346 : vector<6x18xf32> to vector<6x18x1xf32>
    %446 = vector.shape_cast %360 : vector<6x18xf32> to vector<6x18x1xf32>
    %447 = vector.shape_cast %374 : vector<6x18xf32> to vector<6x18x1xf32>
    %448 = vector.shape_cast %388 : vector<6x18xf32> to vector<6x18x1xf32>
    %449 = vector.shape_cast %402 : vector<6x18xf32> to vector<6x18x1xf32>
    %450 = vector.shape_cast %416 : vector<6x18xf32> to vector<6x18x1xf32>
    %451 = vector.shape_cast %430 : vector<6x18xf32> to vector<6x18x1xf32>
    %452 = vector.shape_cast %444 : vector<6x18xf32> to vector<6x18x1xf32>
    %453 = tpu.concatenate %445, %446, %447, %448, %449, %450, %451, %452 in 2 : vector<6x18x1xf32>, vector<6x18x1xf32>, vector<6x18x1xf32>, vector<6x18x1xf32>, vector<6x18x1xf32>, vector<6x18x1xf32>, vector<6x18x1xf32>, vector<6x18x1xf32> -> vector<6x18x8xf32>
    %454 = vector.shape_cast %453 : vector<6x18x8xf32> to vector<6x6x3x8xf32>
    %455 = vector.extract_strided_slice %454 {offsets = [0, 0, 0, 0], sizes = [6, 6, 1, 8], strides = [1, 1, 1, 1]} : vector<6x6x3x8xf32> to vector<6x6x1x8xf32>
    %456 = vector.shape_cast %455 : vector<6x6x1x8xf32> to vector<6x6x8xf32>
    %457 = vector.extract_strided_slice %454 {offsets = [0, 0, 1, 0], sizes = [6, 6, 1, 8], strides = [1, 1, 1, 1]} : vector<6x6x3x8xf32> to vector<6x6x1x8xf32>
    %458 = vector.shape_cast %457 : vector<6x6x1x8xf32> to vector<6x6x8xf32>
    %459 = vector.extract_strided_slice %454 {offsets = [0, 0, 2, 0], sizes = [6, 6, 1, 8], strides = [1, 1, 1, 1]} : vector<6x6x3x8xf32> to vector<6x6x1x8xf32>
    %460 = vector.shape_cast %459 : vector<6x6x1x8xf32> to vector<6x6x8xf32>
    %461 = arith.maximumf %456, %458 : vector<6x6x8xf32>
    %462 = arith.maximumf %461, %460 : vector<6x6x8xf32>
    %463 = vector.shape_cast %462 : vector<6x6x8xf32> to vector<1x6x6x8xf32>
    %c0_75 = arith.constant 0 : index
    %c1_76 = arith.constant 1 : index
    %c1_77 = arith.constant 1 : index
    %c0_78 = arith.constant 0 : index
    %464 = vector.load %arg8[%c0_75, %c1_76, %c1_77, %c0_78] : memref<1x8x8x8xf32, #tpu.memory_space<vmem>>, vector<1x6x6x8xf32>
    tpu.vector_store %arg8[%c0_75, %c1_76, %c1_77, %c0_78], %463 {strides = array<i32>} : memref<1x8x8x8xf32, #tpu.memory_space<vmem>>, vector<1x6x6x8xf32>,
    %c0_79 = arith.constant 0 : index
    %c0_80 = arith.constant 0 : index
    %c0_81 = arith.constant 0 : index
    %c0_82 = arith.constant 0 : index
    %465 = vector.load %arg8[%c0_79, %c0_80, %c0_81, %c0_82] : memref<1x8x8x8xf32, #tpu.memory_space<vmem>>, vector<1x8x8x8xf32>
    %cst_83 = arith.constant 0.000000e+00 : f32
    %466 = vector.broadcast %cst_83 : f32 to vector<36x16xf32>
    %467 = vector.extract_strided_slice %465 {offsets = [0, 0, 0, 0], sizes = [1, 6, 6, 8], strides = [1, 1, 1, 1]} : vector<1x8x8x8xf32> to vector<1x6x6x8xf32>
    %468 = vector.shape_cast %467 : vector<1x6x6x8xf32> to vector<36x8xf32>
    %c0_84 = arith.constant 0 : index
    %c0_85 = arith.constant 0 : index
    %469 = vector.load %arg4[%c0_84, %c0_85] : memref<72x16xf32, #tpu.memory_space<vmem>>, vector<8x16xf32>
    %cst_86 = arith.constant dense<0.000000e+00> : vector<36x16xf32>
    %470 = tpu.matmul %468, %469, %cst_86 {dimension_numbers = #tpu.dot_dimension_numbers<[1], [0], [0], [1], [0, 0, 1, 1], [], []>} : vector<36x8xf32>, vector<8x16xf32>, vector<36x16xf32> -> vector<36x16xf32>
    %471 = arith.addf %466, %470 : vector<36x16xf32>
    %472 = vector.extract_strided_slice %465 {offsets = [0, 0, 1, 0], sizes = [1, 6, 6, 8], strides = [1, 1, 1, 1]} : vector<1x8x8x8xf32> to vector<1x6x6x8xf32>
    %473 = vector.shape_cast %472 : vector<1x6x6x8xf32> to vector<36x8xf32>
    %c8_87 = arith.constant 8 : index
    %c0_88 = arith.constant 0 : index
    %474 = vector.load %arg4[%c8_87, %c0_88] : memref<72x16xf32, #tpu.memory_space<vmem>>, vector<8x16xf32>
    %cst_89 = arith.constant dense<0.000000e+00> : vector<36x16xf32>
    %475 = tpu.matmul %473, %474, %cst_89 {dimension_numbers = #tpu.dot_dimension_numbers<[1], [0], [0], [1], [0, 0, 1, 1], [], []>} : vector<36x8xf32>, vector<8x16xf32>, vector<36x16xf32> -> vector<36x16xf32>
    %476 = arith.addf %471, %475 : vector<36x16xf32>
    %477 = vector.extract_strided_slice %465 {offsets = [0, 0, 2, 0], sizes = [1, 6, 6, 8], strides = [1, 1, 1, 1]} : vector<1x8x8x8xf32> to vector<1x6x6x8xf32>
    %478 = vector.shape_cast %477 : vector<1x6x6x8xf32> to vector<36x8xf32>
    %c16_90 = arith.constant 16 : index
    %c0_91 = arith.constant 0 : index
    %479 = vector.load %arg4[%c16_90, %c0_91] : memref<72x16xf32, #tpu.memory_space<vmem>>, vector<8x16xf32>
    %cst_92 = arith.constant dense<0.000000e+00> : vector<36x16xf32>
    %480 = tpu.matmul %478, %479, %cst_92 {dimension_numbers = #tpu.dot_dimension_numbers<[1], [0], [0], [1], [0, 0, 1, 1], [], []>} : vector<36x8xf32>, vector<8x16xf32>, vector<36x16xf32> -> vector<36x16xf32>
    %481 = arith.addf %476, %480 : vector<36x16xf32>
    %482 = vector.extract_strided_slice %465 {offsets = [0, 1, 0, 0], sizes = [1, 6, 6, 8], strides = [1, 1, 1, 1]} : vector<1x8x8x8xf32> to vector<1x6x6x8xf32>
    %483 = vector.shape_cast %482 : vector<1x6x6x8xf32> to vector<36x8xf32>
    %c24_93 = arith.constant 24 : index
    %c0_94 = arith.constant 0 : index
    %484 = vector.load %arg4[%c24_93, %c0_94] : memref<72x16xf32, #tpu.memory_space<vmem>>, vector<8x16xf32>
    %cst_95 = arith.constant dense<0.000000e+00> : vector<36x16xf32>
    %485 = tpu.matmul %483, %484, %cst_95 {dimension_numbers = #tpu.dot_dimension_numbers<[1], [0], [0], [1], [0, 0, 1, 1], [], []>} : vector<36x8xf32>, vector<8x16xf32>, vector<36x16xf32> -> vector<36x16xf32>
    %486 = arith.addf %481, %485 : vector<36x16xf32>
    %487 = vector.extract_strided_slice %465 {offsets = [0, 1, 1, 0], sizes = [1, 6, 6, 8], strides = [1, 1, 1, 1]} : vector<1x8x8x8xf32> to vector<1x6x6x8xf32>
    %488 = vector.shape_cast %487 : vector<1x6x6x8xf32> to vector<36x8xf32>
    %c32_96 = arith.constant 32 : index
    %c0_97 = arith.constant 0 : index
    %489 = vector.load %arg4[%c32_96, %c0_97] : memref<72x16xf32, #tpu.memory_space<vmem>>, vector<8x16xf32>
    %cst_98 = arith.constant dense<0.000000e+00> : vector<36x16xf32>
    %490 = tpu.matmul %488, %489, %cst_98 {dimension_numbers = #tpu.dot_dimension_numbers<[1], [0], [0], [1], [0, 0, 1, 1], [], []>} : vector<36x8xf32>, vector<8x16xf32>, vector<36x16xf32> -> vector<36x16xf32>
    %491 = arith.addf %486, %490 : vector<36x16xf32>
    %492 = vector.extract_strided_slice %465 {offsets = [0, 1, 2, 0], sizes = [1, 6, 6, 8], strides = [1, 1, 1, 1]} : vector<1x8x8x8xf32> to vector<1x6x6x8xf32>
    %493 = vector.shape_cast %492 : vector<1x6x6x8xf32> to vector<36x8xf32>
    %c40_99 = arith.constant 40 : index
    %c0_100 = arith.constant 0 : index
    %494 = vector.load %arg4[%c40_99, %c0_100] : memref<72x16xf32, #tpu.memory_space<vmem>>, vector<8x16xf32>
    %cst_101 = arith.constant dense<0.000000e+00> : vector<36x16xf32>
    %495 = tpu.matmul %493, %494, %cst_101 {dimension_numbers = #tpu.dot_dimension_numbers<[1], [0], [0], [1], [0, 0, 1, 1], [], []>} : vector<36x8xf32>, vector<8x16xf32>, vector<36x16xf32> -> vector<36x16xf32>
    %496 = arith.addf %491, %495 : vector<36x16xf32>
    %497 = vector.extract_strided_slice %465 {offsets = [0, 2, 0, 0], sizes = [1, 6, 6, 8], strides = [1, 1, 1, 1]} : vector<1x8x8x8xf32> to vector<1x6x6x8xf32>
    %498 = vector.shape_cast %497 : vector<1x6x6x8xf32> to vector<36x8xf32>
    %c48_102 = arith.constant 48 : index
    %c0_103 = arith.constant 0 : index
    %499 = vector.load %arg4[%c48_102, %c0_103] : memref<72x16xf32, #tpu.memory_space<vmem>>, vector<8x16xf32>
    %cst_104 = arith.constant dense<0.000000e+00> : vector<36x16xf32>
    %500 = tpu.matmul %498, %499, %cst_104 {dimension_numbers = #tpu.dot_dimension_numbers<[1], [0], [0], [1], [0, 0, 1, 1], [], []>} : vector<36x8xf32>, vector<8x16xf32>, vector<36x16xf32> -> vector<36x16xf32>
    %501 = arith.addf %496, %500 : vector<36x16xf32>
    %502 = vector.extract_strided_slice %465 {offsets = [0, 2, 1, 0], sizes = [1, 6, 6, 8], strides = [1, 1, 1, 1]} : vector<1x8x8x8xf32> to vector<1x6x6x8xf32>
    %503 = vector.shape_cast %502 : vector<1x6x6x8xf32> to vector<36x8xf32>
    %c56_105 = arith.constant 56 : index
    %c0_106 = arith.constant 0 : index
    %504 = vector.load %arg4[%c56_105, %c0_106] : memref<72x16xf32, #tpu.memory_space<vmem>>, vector<8x16xf32>
    %cst_107 = arith.constant dense<0.000000e+00> : vector<36x16xf32>
    %505 = tpu.matmul %503, %504, %cst_107 {dimension_numbers = #tpu.dot_dimension_numbers<[1], [0], [0], [1], [0, 0, 1, 1], [], []>} : vector<36x8xf32>, vector<8x16xf32>, vector<36x16xf32> -> vector<36x16xf32>
    %506 = arith.addf %501, %505 : vector<36x16xf32>
    %507 = vector.extract_strided_slice %465 {offsets = [0, 2, 2, 0], sizes = [1, 6, 6, 8], strides = [1, 1, 1, 1]} : vector<1x8x8x8xf32> to vector<1x6x6x8xf32>
    %508 = vector.shape_cast %507 : vector<1x6x6x8xf32> to vector<36x8xf32>
    %c64_108 = arith.constant 64 : index
    %c0_109 = arith.constant 0 : index
    %509 = vector.load %arg4[%c64_108, %c0_109] : memref<72x16xf32, #tpu.memory_space<vmem>>, vector<8x16xf32>
    %cst_110 = arith.constant dense<0.000000e+00> : vector<36x16xf32>
    %510 = tpu.matmul %508, %509, %cst_110 {dimension_numbers = #tpu.dot_dimension_numbers<[1], [0], [0], [1], [0, 0, 1, 1], [], []>} : vector<36x8xf32>, vector<8x16xf32>, vector<36x16xf32> -> vector<36x16xf32>
    %511 = arith.addf %506, %510 : vector<36x16xf32>
    %c0_111 = arith.constant 0 : index
    %c0_112 = arith.constant 0 : index
    %512 = vector.load %arg5[%c0_111, %c0_112] : memref<1x16xf32, #tpu.memory_space<vmem>>, vector<1x16xf32>
    %513 = vector.broadcast %512 : vector<1x16xf32> to vector<36x16xf32>
    %514 = arith.addf %511, %513 : vector<36x16xf32>
    %cst_113 = arith.constant 0.000000e+00 : f32
    %515 = vector.broadcast %cst_113 : f32 to vector<36x16xf32>
    %516 = arith.maximumf %514, %515 : vector<36x16xf32>
    %517 = vector.shape_cast %516 : vector<36x16xf32> to vector<1x6x6x16xf32>
    %518 = vector.shape_cast %517 : vector<1x6x6x16xf32> to vector<2x3x6x16xf32>
    %519 = vector.extract_strided_slice %518 {offsets = [0, 0, 0, 0], sizes = [2, 1, 6, 16], strides = [1, 1, 1, 1]} : vector<2x3x6x16xf32> to vector<2x1x6x16xf32>
    %520 = vector.shape_cast %519 : vector<2x1x6x16xf32> to vector<2x6x16xf32>
    %521 = vector.extract_strided_slice %518 {offsets = [0, 1, 0, 0], sizes = [2, 1, 6, 16], strides = [1, 1, 1, 1]} : vector<2x3x6x16xf32> to vector<2x1x6x16xf32>
    %522 = vector.shape_cast %521 : vector<2x1x6x16xf32> to vector<2x6x16xf32>
    %523 = vector.extract_strided_slice %518 {offsets = [0, 2, 0, 0], sizes = [2, 1, 6, 16], strides = [1, 1, 1, 1]} : vector<2x3x6x16xf32> to vector<2x1x6x16xf32>
    %524 = vector.shape_cast %523 : vector<2x1x6x16xf32> to vector<2x6x16xf32>
    %525 = arith.maximumf %520, %522 : vector<2x6x16xf32>
    %526 = arith.maximumf %525, %524 : vector<2x6x16xf32>
    %527 = vector.shape_cast %526 : vector<2x6x16xf32> to vector<2x2x3x16xf32>
    %528 = vector.extract_strided_slice %527 {offsets = [0, 0, 0, 0], sizes = [2, 2, 1, 16], strides = [1, 1, 1, 1]} : vector<2x2x3x16xf32> to vector<2x2x1x16xf32>
    %529 = vector.shape_cast %528 : vector<2x2x1x16xf32> to vector<2x2x16xf32>
    %530 = vector.extract_strided_slice %527 {offsets = [0, 0, 1, 0], sizes = [2, 2, 1, 16], strides = [1, 1, 1, 1]} : vector<2x2x3x16xf32> to vector<2x2x1x16xf32>
    %531 = vector.shape_cast %530 : vector<2x2x1x16xf32> to vector<2x2x16xf32>
    %532 = vector.extract_strided_slice %527 {offsets = [0, 0, 2, 0], sizes = [2, 2, 1, 16], strides = [1, 1, 1, 1]} : vector<2x2x3x16xf32> to vector<2x2x1x16xf32>
    %533 = vector.shape_cast %532 : vector<2x2x1x16xf32> to vector<2x2x16xf32>
    %534 = arith.maximumf %529, %531 : vector<2x2x16xf32>
    %535 = arith.maximumf %534, %533 : vector<2x2x16xf32>
    %536 = vector.shape_cast %535 : vector<2x2x16xf32> to vector<1x2x2x16xf32>
    %537 = vector.shape_cast %536 : vector<1x2x2x16xf32> to vector<1x4x16xf32>
    %c0_114 = arith.constant 0 : index
    %c0_115 = arith.constant 0 : index
    %c0_116 = arith.constant 0 : index
    %538 = vector.load %arg6[%c0_114, %c0_115, %c0_116] : memref<1x4x16xf32, #tpu.memory_space<vmem>>, vector<1x4x16xf32>
    tpu.vector_store %arg6[%c0_114, %c0_115, %c0_116], %537 {strides = array<i32>} : memref<1x4x16xf32, #tpu.memory_space<vmem>>, vector<1x4x16xf32>,
    return
  }
  func.func @transform_0(%arg0: i32) -> i32 {
    %c0_i32 = arith.constant 0 : i32
    %c0_i32_0 = arith.constant 0 : i32
    return %c0_i32 : i32
  }
  func.func @transform_1(%arg0: i32) -> i32 {
    %c0_i32 = arith.constant 0 : i32
    %c0_i32_0 = arith.constant 0 : i32
    return %c0_i32 : i32
  }
  func.func @transform_2(%arg0: i32) -> (i32, i32, i32, i32) {
    %c0_i32 = arith.constant 0 : i32
    %c0_i32_0 = arith.constant 0 : i32
    %c0_i32_1 = arith.constant 0 : i32
    %c0_i32_2 = arith.constant 0 : i32
    return %arg0, %c0_i32, %c0_i32_0, %c0_i32_1 : i32, i32, i32, i32
  }
  func.func @transform_3(%arg0: i32) -> (i32, i32) {
    %c0_i32 = arith.constant 0 : i32
    %c0_i32_0 = arith.constant 0 : i32
    %c0_i32_1 = arith.constant 0 : i32
    return %c0_i32, %c0_i32_0 : i32, i32
  }
  func.func @transform_4(%arg0: i32) -> (i32, i32) {
    %c0_i32 = arith.constant 0 : i32
    %c0_i32_0 = arith.constant 0 : i32
    %c0_i32_1 = arith.constant 0 : i32
    return %c0_i32, %c0_i32_0 : i32, i32
  }
  func.func @transform_5(%arg0: i32) -> (i32, i32, i32) {
    %c0_i32 = arith.constant 0 : i32
    %c0_i32_0 = arith.constant 0 : i32
    %c0_i32_1 = arith.constant 0 : i32
    return %arg0, %c0_i32, %c0_i32_0 : i32, i32, i32
  }
}

</mosaic_0001>

<bundles_post_ra>
// kernel: tpu_custom_call.1
= control target key start
LH: loop header
LB: loop body
LE: loop exit
PB: predicated region body
PF: predicated region fallthrough
CT: control target
= control target key end

     0   :  { %s11775_s0 = inlined_call_operand.vmem [shape: f32[72], index: 0, kind: input, shape index: {}]   ;;  %s11776_s1 = inlined_call_operand.vmem [shape: f32[8], index: 1, kind: input, shape index: {}]   ;;  %s11777_s2 = inlined_call_operand.vmem [shape: f32[2,1,18,18], index: 2, kind: input, shape index: {}]   ;;  %s11778_s3 = inlined_call_operand.vmem [shape: f32[72,16], index: 3, kind: input, shape index: {}]   ;;  %s11779_s4 = inlined_call_operand.vmem [shape: f32[1,16], index: 4, kind: input, shape index: {}]   ;;  %s11780_s5 = inlined_call_operand.hbm [shape: f32[2,4,16], index: 5, kind: output, shape index: {}]  }
   0x1   :  { %11923 = sst [smem:[#allocation126_spill]] %s11775_s0 }
   0x2   :  { %11924 = sst [smem:[#allocation127_spill]] %s11776_s1 }
   0x3   :  { %11925 = sst [smem:[#allocation128_spill]] %s11777_s2 }
   0x4   :  { %10 = vsyncpa [#allocation6], 0 }
   0x5   :  { %11 = vsyncpa [#allocation8], 0 }
   0x6   :  { %12 = vsyncpa [#allocation5], 0 }
   0x7   :  { %14 = vsyncpa [#allocation5 + $0x1], 0  ;;  %s7732_s18 = smov 0   ;;  %s7734_s19 = smov 0  }
   0x8   :  { %s7736_s20 = smov 0   ;;  %s7738_s21 = smov 0  }
   0x9 LB: > { %11926 = sst [smem:[#allocation13_spill]] %s7678_s18  ;;  %s7753_s22 = sadd.s32 4294967295, %s7690_s21   ;;  %s7690_s21 = sphi %s7738_s21, %s12428_s21   ;;  %s7686_s20 = sphi %s7736_s20, %s12433_s20   ;;  %s7682_s19 = sphi %s7734_s19, %s12432_s19   ;;  %s7678_s18 = sphi %s7732_s18, %s12431_s18  }
   0xa   : > { %11927 = sst [smem:[#allocation14_spill]] %s7686_s20  ;;  %s7148_s23 = sadd.s32 4294967294, %s7690_s21  }
   0xb   : > { %s7757_s24 = sadd.s32 1, %s7690_s21   ;;  %s137_s25 = sadd.s32 1, %s7686_s20 }
   0xc   : > { %11928 = sst [smem:[#allocation15_spill]] %s7757_s24  ;;  %s134_s26 = ssub.s32 %s7690_s21, %s7757_s24 }
   0xd   : > { %p147_p0 = scmp.ne.s32.totalorder %s7686_s20, %s7682_s19  ;;  %p135_p1 = scmp.eq.s32.totalorder %s134_s26, 0 }
   0xe   : > { %p148_p2 = scmp.eq.s32.totalorder %s7753_s22, 1  ;;  %p153_p3 = scmp.ne.s32.totalorder %s7682_s19, %s7678_s18 }
   0xf   : > { %p154_p4 = scmp.eq.s32.totalorder %s7148_s23, 1  ;;  %p7149_p7 = scmp.ge.s32.totalorder %s7690_s21, 1 }
  0x10   : > { %s7768_s27 = scalar_select %p135_p1, %s7686_s20, %s137_s25  }
  0x11   : > { %p7770_p5 = por %p148_p2, %p147_p0  ;;  %p7774_p6 = por %p154_p4, %p153_p3 }
  0x12   : > { %11929 = sst [smem:[#allocation16_spill]] %s7768_s27  ;;  %p161_p8 = scmp.lt.s32.totalorder %s7690_s21, 3 }
  0x13   : > { %s11930_s28 = scalar_select %p7770_p5, 1, 0 }
  0x14   : > { %s11931_s29 = scalar_select %p7774_p6, 1, 0 }
  0x15   : > { %p11781_p9 = scmp.eq.s32.totalorder %s7753_s22, 0  ;;  %p7781_p10 = pnand %p7149_p7, %p161_p8 }
  0x16   : > { %11932 = sst [smem:[#allocation17_spill]] %s11931_s29  ;;  %s11934_s0 = sld [smem:[#allocation126_spill]] }
  0x17   : > { %s11933_s30 = scalar_select %p7781_p10, 1, 0 }
  0x18   : > { %p7521_p11 = pneg %p7781_p10  ;;  %s11935_s1 = sld [smem:[#allocation127_spill]] }
  0x1a   : > { %p7795_p12 = pnand %p11781_p9, %p7521_p11 }
  0x1c   : > { %s174_s8 = sshll.u32 %s11934_s0, 4  ;;  %p7592_p0 = pneg %p7795_p12  ;;  %s175_s8 = int_to_ptr.vmem [resolvable:$true] %s174_s8 }
  0x1d   : > { %s7590_s13 = scalar_lea.vmem %s175_s8, 16  ;;  %p7598_p3 = scmp.lt.s32.totalorder %s175_s8, %s175_s8 }
  0x1e   : > { %s185_s11 = sshll.u32 %s11935_s1, 4  ;;  %p7591_p13 = scmp.ne.s32.totalorder %s175_s8, %s7590_s13  ;;  %s186_s11 = int_to_ptr.vmem [resolvable:$true] %s185_s11 }
  0x1f   : > { %p7599_p4 = scmp.lt.s32.totalorder %s7590_s13, %s7590_s13 }
  0x20   : > { %p7593_p1 = pnand %p7592_p0, %p7591_p13 }
  0x21   : > { %p7600_p7 = por %p7599_p4, %p7598_p3 }
  0x22   : > { %p7594_p2 = pneg %p7593_p1 }
  0x24   : > { %p7601_p8 = pnand %p7600_p7, %p7594_p2 }
  0x26   : > { %7604 = shalt.err (!%p7601_p8)
}
  0x27   : > { %s7692_s14 = smov [#allocation4]   ;;  %s7605_s15 = scalar_lea.vmem %s186_s11, 16 }
  0x28   : > { %7524 = dma.vmem_to_smem (!%p7795_p12), %s175_s8, 16, %s7692_s14, [#allocation6]  }
  0x29   : > { %p7606_p11 = scmp.ne.s32.totalorder %s186_s11, %s7605_s15  ;;  %p7613_p5 = scmp.lt.s32.totalorder %s186_s11, %s186_s11 }
  0x2a   : > { %p7614_p10 = scmp.lt.s32.totalorder %s7605_s15, %s7605_s15 }
  0x2b   : > { %p7608_p9 = pnand %p7606_p11, %p7592_p0 }
  0x2c   : > { %p7615_p13 = por %p7614_p10, %p7613_p5 }
  0x2d   : > { %p7609_p6 = pneg %p7608_p9 }
  0x2f   : > { %p7616_p1 = pnand %p7615_p13, %p7609_p6 }
  0x31   : > { %7619 = shalt.err (!%p7616_p1)
}
  0x32   : > { %s7693_s16 = smov [#allocation7]   ;;  %p11937_p2 = scmp.ne.s32.totalorder %s11933_s30, 0 }
  0x33   : > { %7527 = dma.vmem_to_smem (!%p7795_p12), %s186_s11, 16, %s7693_s16, [#allocation8]  }
  0x34   : > { %212 = sbr.rel (%p11937_p2) target bundleno = 1258 (0x4ea), region = 40 }
  0x3b   : > { %p11938_p3 = scmp.eq.s32.totalorder %s7753_s22, 0 }
  0x3d   : > { %7665 = dma.done.wait (%p11938_p3), [#allocation6], 16   ;;  %p11939_p4 = pmov %p11938_p3 }
  0x3e   : > { %p11940_p9 = pmov %p11938_p3 }
  0x3f   : > { %7667 = vsyncadd (%p11939_p4), [#allocation6], 4294967280 }
  0x40   : > { %7669 = dma.done.wait (%p11940_p9), [#allocation8], 16   ;;  %p11941_p5 = pmov %p11938_p3 }
  0x42   : > { %7671 = vsyncadd (%p11941_p5), [#allocation8], 4294967280 }
  0x43   : > { %222 = sfence }
  0x44   : > { %p245_p6 = scmp.lt.s32.totalorder %s7753_s22, 1  ;;  %vm250_vm0 = vcmask 155648   ;;  %vm253_vm1 = vcmask 7168   ;;  %vm258_vm2 = vcmask 162968   ;;  %v11784_v0 = vmov 0.0   ;;  %s11942_s2 = sld [smem:[#allocation128_spill]] }
  0x45   : > { %251 = vst.msk [vmem:[#allocation2] sm:$0x1] %vm250_vm0, %v11784_v0  ;;  %252 = vst.msk [vmem:[#allocation2 + $0x13] sm:$0x1] %vm250_vm0, %v11784_v0  ;;  %vm256_vm3 = vcmask 3072   ;;  %vm261_vm4 = vcmask 158872   ;;  %7355 = vmatprep.subr.mxu0 %v11784_v0  ;;  %7508 = vmatprep.subr.mxu1 %v11784_v0 }
  0x46   : > { %255 = vst.msk [vmem:[#allocation2 + $0x8] sm:$0xff] %vm253_vm1, %v11784_v0  ;;  %s246_s17 = scalar_select %p245_p6, %s7753_s22, 1  ;;  %254 = vst.msk [vmem:[#allocation2] sm:$0xff] %vm253_vm1, %v11784_v0  ;;  %vm299_vm5 = vcmask 154632   ;;  %vm302_vm6 = vcmask 148488   ;;  %vm699_vm7 = vcmask 1046528  }
  0x47   : > { %260 = vst.msk [vmem:[#allocation2 + $0x8] sm:$0xff] %vm258_vm2, %v11784_v0  ;;  %259 = vst.msk [vmem:[#allocation2] sm:$0xff] %vm258_vm2, %v11784_v0  ;;  %s7695_s6 = smov 1   ;;  %s7165_s7 = sld [smem:[#allocation4 + $0x8]]  ;;  %vm1252_vm8 = vcmask 1045504   ;;  %vm3823_vm9 = vcmask 15360  }
  0x48   : > { %257 = vst.msk [vmem:[#allocation2 + $0x10] sm:$0xf] %vm256_vm3, %v11784_v0  ;;  %s7510_s23 = smul.u32 24, %s246_s17  ;;  %s7166_s8 = sld [smem:[#allocation4 + $0x9]]  ;;  %vm3842_vm10 = vcmask 23552   ;;  %vm3861_vm11 = vcmask 31744  }
  0x49   : > { %262 = vst.msk [vmem:[#allocation2 + $0x10] sm:$0xf] %vm261_vm4, %v11784_v0  ;;  %s7167_s9 = sld [smem:[#allocation4 + $0xa]]  ;;  %s11821_s10 = smov 127   ;;  %vm3880_vm12 = vcmask 39936   ;;  %vm3899_vm13 = vcmask 48128  }
  0x4a   : > { %s249_s30 = scalar_lea.vmem %s11942_s2, %s7510_s23  ;;  %s7168_s11 = sld [smem:[#allocation4 + $0xb]]  ;;  %vm3918_vm14 = vcmask 56320   ;;  %vm263_vm15 = vcmask 64512   ;;  %vm267_vm0 = vcmask 57344   ;;  %vm7699_vm2 = vmmov 0  }
  0x4b   : > { %v284_v1 = vld [vmem:[%s249_s30] sm:$0xff]  ;;  %v286_v2 = vld [vmem:[%s249_s30 + $0x10] sm:$0x3]  ;;  %v285_v3 = vld [vmem:[%s249_s30 + $0x8] sm:$0xff]  ;;  %s7169_s12 = sld [smem:[#allocation4 + $0xc]]  ;;  %s7170_s13 = sld [smem:[#allocation4 + $0xd]] }
  0x4c   : > { %290 = vrot.lane.b32.xlu0 %v284_v1, %s7695_s6  ;;  %294 = vrot.lane.b32.xlu1 %v286_v2, %s7695_s6  ;;  %s7171_s14 = sld [smem:[#allocation4 + $0xe]]  ;;  %s7172_s15 = sld [smem:[#allocation4 + $0xf]]  ;;  %vm5262_vm3 = vcmask 1040384   ;;  %vm5263_vm4 = vcmask 1042434  }
  0x4d   : > { %v372_v7 = vstv %s7165_s7  ;;  %s7173_s16 = sld [smem:[#allocation4 + $0x10]]  ;;  %s7174_s17 = sld [smem:[#allocation4 + $0x11]] }
  0x4e   : > { %v392_v14 = vstv %s7166_s8  ;;  %s7175_s23 = sld [smem:[#allocation4 + $0x12]]  ;;  %s7176_s25 = sld [smem:[#allocation4 + $0x13]] }
  0x4f   : > { %v412_v17 = vstv %s7167_s9  ;;  %s11823_s26 = smov 126   ;;  %s7177_s30 = sld [smem:[#allocation4 + $0x14]] }
  0x50   : > { %292 = vrot.lane.b32.xlu0 %v285_v3, %s7695_s6  ;;  %v432_v22 = vstv %s7168_s11  ;;  %s7178_s6 = sld [smem:[#allocation4 + $0x15]]  ;;  %s7179_s7 = sld [smem:[#allocation4 + $0x16]] }
  0x51   : > { %v452_v25 = vstv %s7169_s12  ;;  %v472_v30 = vstv %s7170_s13  ;;  %s7189_s8 = sld [smem:[#allocation4 + $0x20]]  ;;  %s7180_s9 = sld [smem:[#allocation4 + $0x17]] }
  0x52   : > { %v492_v33 = vstv %s7171_s14  ;;  %v512_v38 = vstv %s7172_s15  ;;  %s7190_s11 = sld [smem:[#allocation4 + $0x21]]  ;;  %s7191_s12 = sld [smem:[#allocation4 + $0x22]] }
  0x53   : > { %v7882_v41 = vstv %s7173_s16  ;;  %v7889_v44 = vstv %s7174_s17  ;;  %s7192_s13 = sld [smem:[#allocation4 + $0x23]]  ;;  %s7197_s14 = sld [smem:[#allocation4 + $0x28]] }
  0x54   : > { %v7897_v47 = vstv %s7175_s23  ;;  %v7905_v50 = vstv %s7176_s25  ;;  %s7198_s15 = sld [smem:[#allocation4 + $0x29]]  ;;  %s7193_s16 = sld [smem:[#allocation4 + $0x24]] }
  0x55   : > { %v7913_v53 = vstv %s7177_s30  ;;  %s7199_s17 = sld [smem:[#allocation4 + $0x2a]]  ;;  %s7194_s23 = sld [smem:[#allocation4 + $0x25]] }
  0x56   : > { %v7921_v56 = vstv %s7178_s6  ;;  %v7929_v59 = vstv %s7179_s7  ;;  %s7200_s25 = sld [smem:[#allocation4 + $0x2b]]  ;;  %s7195_s30 = sld [smem:[#allocation4 + $0x26]] }
  0x57   : > { %v845_v62 = vstv %s7189_s8  ;;  %v7937_v63 = vstv %s7180_s9  ;;  %s7201_s6 = sld [smem:[#allocation4 + $0x2c]]  ;;  %s7196_s7 = sld [smem:[#allocation4 + $0x27]] }
  0x58   : > { %s7202_s8 = sld [smem:[#allocation4 + $0x2d]]  ;;  %s7213_s9 = sld [smem:[#allocation4 + $0x38]] }
  0x59   : > { %s8487_s0 = sld [smem:[#allocation4 + $0x1f]]  ;;  %s8489_s1 = sld [smem:[#allocation4 + $0x30]] }
  0x5a   : > { %s8491_s2 = sld [smem:[#allocation4 + $0x31]]  ;;  %s8493_s27 = sld [smem:[#allocation4 + $0x32]] }
  0x5b   : > { %s8503_s20 = sld [smem:[#allocation4 + $0x34]]  ;;  %s12001_s24 = smov 127  }
  0x5c   : > { %s12003_s29 = smov 126   ;;  %s8513_s18 = sld [smem:[#allocation4 + $0x35]] }
  0x5d   : > { %p12424_p12 = scmp.ne.s32.totalorder %s11930_s28, 0 }
  0xbe   : > { %v291_v4 = vpop.permute.xlu0 %290  ;;  %v295_v5 = vpop.permute.xlu1 %294 }
  0xbf   : > { %300 = vst.msk [vmem:[#allocation2 + $0x1] sm:$0xff] %vm299_vm5, %v291_v4 }
  0xc0   : > { %303 = vst.msk [vmem:[#allocation2 + $0x11] sm:$0x3] %vm302_vm6, %v295_v5  ;;  %v870_v5 = vstv %s7190_s11  ;;  %s7214_s11 = sld [smem:[#allocation4 + $0x39]]  ;;  %vm5138_vm6 = vcmask 62464  }
  0xc2   : > { %v293_v6 = vpop.permute.xlu0 %292 }
  0xc3   : > { %301 = vst.msk [vmem:[#allocation2 + $0x9] sm:$0xff] %vm299_vm5, %v293_v6  ;;  %vm5265_vm5 = vcmask 1044484  }
  0xc6   : > { %v7832_v8 = vld [vmem:[#allocation2] sm:$0xff] }
  0xc7   : > { %v373_v9 = vmul.f32 %v372_v7, %v7832_v8  ;;  %v393_v16 = vmul.f32 %v392_v14, %v7832_v8  ;;  %v413_v18 = vmul.f32 %v412_v17, %v7832_v8  ;;  %v433_v24 = vmul.f32 %v432_v22, %v7832_v8 }
  0xc8   : > { %v453_v26 = vmul.f32 %v452_v25, %v7832_v8  ;;  %v473_v32 = vmul.f32 %v472_v30, %v7832_v8  ;;  %v493_v34 = vmul.f32 %v492_v33, %v7832_v8  ;;  %v513_v40 = vmul.f32 %v512_v38, %v7832_v8 }
  0xc9   : > { %379 = vrot.lane.b32.xlu1 %v373_v9, %s11821_s10  ;;  %v533_v42 = vmul.f32 %v7882_v41, %v7832_v8  ;;  %v553_v45 = vmul.f32 %v7889_v44, %v7832_v8  ;;  %v573_v48 = vmul.f32 %v7897_v47, %v7832_v8  ;;  %v593_v51 = vmul.f32 %v7905_v50, %v7832_v8 }
  0xca   : > { %v7836_v10 = vld [vmem:[#allocation2 + $0x8] sm:$0xff]  ;;  %v7838_v11 = vld [vmem:[#allocation2 + $0x10] sm:$0xf]  ;;  %v613_v54 = vmul.f32 %v7913_v53, %v7832_v8  ;;  %v633_v57 = vmul.f32 %v7921_v56, %v7832_v8  ;;  %v653_v60 = vmul.f32 %v7929_v59, %v7832_v8  ;;  %v846_v2 = vmul.f32 %v845_v62, %v7832_v8 }
  0xcb   : > { %v375_v12 = vmul.f32 %v372_v7, %v7838_v11  ;;  %v374_v13 = vmul.f32 %v372_v7, %v7836_v10  ;;  %v394_v15 = vmul.f32 %v392_v14, %v7836_v10  ;;  %v395_v19 = vmul.f32 %v392_v14, %v7838_v11 }
  0xcc   : > { %v415_v20 = vmul.f32 %v412_v17, %v7838_v11  ;;  %v414_v21 = vmul.f32 %v412_v17, %v7836_v10  ;;  %v434_v23 = vmul.f32 %v432_v22, %v7836_v10  ;;  %v435_v27 = vmul.f32 %v432_v22, %v7838_v11 }
  0xcd   : > { %383 = vrot.lane.b32.xlu1 %v375_v12, %s11821_s10  ;;  %381 = vrot.lane.b32.xlu0 %v374_v13, %s11821_s10  ;;  %v455_v28 = vmul.f32 %v452_v25, %v7838_v11  ;;  %v454_v29 = vmul.f32 %v452_v25, %v7836_v10  ;;  %v474_v31 = vmul.f32 %v472_v30, %v7836_v10  ;;  %v852_v12 = vrot.slane %v846_v2, 1 }
  0xce   : > { %v475_v35 = vmul.f32 %v472_v30, %v7838_v11  ;;  %v495_v36 = vmul.f32 %v492_v33, %v7838_v11  ;;  %v494_v37 = vmul.f32 %v492_v33, %v7836_v10  ;;  %v514_v39 = vmul.f32 %v512_v38, %v7836_v10 }
  0xcf   : > { %v515_v43 = vmul.f32 %v512_v38, %v7838_v11  ;;  %v534_v46 = vmul.f32 %v7882_v41, %v7836_v10  ;;  %v554_v49 = vmul.f32 %v7889_v44, %v7836_v10  ;;  %v574_v52 = vmul.f32 %v7897_v47, %v7836_v10 }
  0xd0   : > { %v594_v55 = vmul.f32 %v7905_v50, %v7836_v10  ;;  %v614_v58 = vmul.f32 %v7913_v53, %v7836_v10  ;;  %v634_v61 = vmul.f32 %v7921_v56, %v7836_v10  ;;  %v847_v1 = vmul.f32 %v845_v62, %v7836_v10 }
  0xd1   : > { %401 = vrot.lane.b32.xlu1 %v394_v15, %s11821_s10  ;;  %399 = vrot.lane.b32.xlu0 %v393_v16, %s11821_s10  ;;  %v673_v3 = vmul.f32 %v7937_v63, %v7832_v8  ;;  %v654_v4 = vmul.f32 %v7929_v59, %v7836_v10  ;;  %v872_v7 = vmul.f32 %v870_v5, %v7836_v10  ;;  %v895_v14 = vstv %s7191_s12  ;;  %s7203_s12 = sld [smem:[#allocation4 + $0x2e]] }
  0xd2   : > { %v853_v6 = vrot.slane %v847_v1, 1  ;;  %v7949_v9 = vmul.f32 %v845_v62, %v7838_v11  ;;  %v871_v13 = vmul.f32 %v870_v5, %v7832_v8  ;;  %v674_v15 = vmul.f32 %v7937_v63, %v7836_v10 }
  0xd3   : > { %v897_v16 = vmul.f32 %v895_v14, %v7836_v10  ;;  %v7958_v17 = vmul.f32 %v870_v5, %v7838_v11  ;;  %v920_v25 = vstv %s7192_s13  ;;  %s7215_s13 = sld [smem:[#allocation4 + $0x3a]] }
  0xd4   : > { %v877_v22 = vrot.slane %v871_v13, 1  ;;  %v7984_v38 = vmul.f32 %v920_v25, %v7838_v11 }
  0xd5   : > { %419 = vrot.lane.b32.xlu1 %v413_v18, %s11821_s10  ;;  %403 = vrot.lane.b32.xlu0 %v395_v19, %s11821_s10  ;;  %v854_v18 = vsel %vm699_vm7, %v852_v12, %v853_v6  ;;  %v878_v19 = vrot.slane %v872_v7, 1 }
  0xd9   : > { %423 = vrot.lane.b32.xlu1 %v415_v20, %s11821_s10  ;;  %421 = vrot.lane.b32.xlu0 %v414_v21, %s11821_s10  ;;  %v11802_v20 = vrot.slane %v7949_v9, 1  ;;  %v896_v21 = vmul.f32 %v895_v14, %v7832_v8 }
  0xdb   : > { %v902_v30 = vrot.slane %v896_v21, 1 }
  0xdd   : > { %441 = vrot.lane.b32.xlu1 %v434_v23, %s11821_s10  ;;  %439 = vrot.lane.b32.xlu0 %v433_v24, %s11821_s10  ;;  %v903_v23 = vrot.slane %v897_v16, 1  ;;  %v11800_v24 = vrot.slane %v7958_v17, 1 }
  0xdf   : > { %v881_v33 = vsel %vm699_vm7, %v878_v19, %v11800_v24 }
  0xe1   : > { %459 = vrot.lane.b32.xlu1 %v453_v26, %s11821_s10  ;;  %443 = vrot.lane.b32.xlu0 %v435_v27, %s11821_s10  ;;  %v879_v26 = vsel %vm699_vm7, %v877_v22, %v878_v19  ;;  %v856_v27 = vsel %vm699_vm7, %v853_v6, %v11802_v20  ;;  %v1095_v6 = vstv %s7199_s17  ;;  %s7222_s17 = sld [smem:[#allocation4 + $0x41]] }
  0xe2   : > { %v1097_v13 = vmul.f32 %v1095_v6, %v7836_v10  ;;  %v1096_v16 = vmul.f32 %v1095_v6, %v7832_v8  ;;  %v8027_v21 = vmul.f32 %v1095_v6, %v7838_v11 }
  0xe5   : > { %463 = vrot.lane.b32.xlu1 %v455_v28, %s11821_s10  ;;  %461 = vrot.lane.b32.xlu0 %v454_v29, %s11821_s10  ;;  %v922_v28 = vmul.f32 %v920_v25, %v7836_v10  ;;  %v7972_v29 = vmul.f32 %v895_v14, %v7838_v11 }
  0xe9   : > { %481 = vrot.lane.b32.xlu1 %v474_v31, %s11821_s10  ;;  %479 = vrot.lane.b32.xlu0 %v473_v32, %s11821_s10  ;;  %v921_v31 = vmul.f32 %v920_v25, %v7832_v8  ;;  %v904_v32 = vsel %vm699_vm7, %v902_v30, %v903_v23  ;;  %v1103_v25 = vrot.slane %v1097_v13, 1  ;;  %v1120_v30 = vstv %s7200_s25  ;;  %s7223_s25 = sld [smem:[#allocation4 + $0x42]] }
  0xed   : > { %499 = vrot.lane.b32.xlu1 %v493_v34, %s11821_s10  ;;  %483 = vrot.lane.b32.xlu0 %v475_v35, %s11821_s10  ;;  %v1045_v34 = vstv %s7197_s14  ;;  %v928_v35 = vrot.slane %v922_v28, 1  ;;  %s7204_s14 = sld [smem:[#allocation4 + $0x2f]] }
  0xf1   : > { %503 = vrot.lane.b32.xlu1 %v495_v36, %s11821_s10  ;;  %501 = vrot.lane.b32.xlu0 %v494_v37, %s11821_s10  ;;  %v11799_v36 = vrot.slane %v7972_v29, 1  ;;  %v1047_v37 = vmul.f32 %v1045_v34, %v7836_v10 }
  0xf5   : > { %521 = vrot.lane.b32.xlu1 %v514_v39, %s11821_s10  ;;  %519 = vrot.lane.b32.xlu0 %v513_v40, %s11821_s10  ;;  %v927_v39 = vrot.slane %v921_v31, 1  ;;  %v1046_v40 = vmul.f32 %v1045_v34, %v7832_v8 }
  0xf9   : > { %539 = vrot.lane.b32.xlu1 %v533_v42, %s11823_s26  ;;  %523 = vrot.lane.b32.xlu0 %v515_v43, %s11821_s10  ;;  %v1070_v42 = vstv %s7198_s15  ;;  %s7216_s15 = sld [smem:[#allocation4 + $0x3b]] }
  0xfa   : > { %v1072_v43 = vmul.f32 %v1070_v42, %v7836_v10  ;;  %v8008_v1 = vmul.f32 %v1070_v42, %v7838_v11 }
  0xfc   : > { %v11794_v12 = vrot.slane %v8008_v1, 1 }
  0xfd   : > { %559 = vrot.lane.b32.xlu1 %v553_v45, %s11823_s26  ;;  %541 = vrot.lane.b32.xlu0 %v534_v46, %s11823_s26  ;;  %v7991_v45 = vmul.f32 %v1045_v34, %v7838_v11  ;;  %v929_v46 = vsel %vm699_vm7, %v927_v39, %v928_v35  ;;  %v1121_v39 = vmul.f32 %v1120_v30, %v7832_v8 }
 0x101   : > { %579 = vrot.lane.b32.xlu1 %v573_v48, %s11823_s26  ;;  %561 = vrot.lane.b32.xlu0 %v554_v49, %s11823_s26  ;;  %v906_v48 = vsel %vm699_vm7, %v903_v23, %v11799_v36  ;;  %v1053_v49 = vrot.slane %v1047_v37, 1 }
 0x105   : > { %599 = vrot.lane.b32.xlu1 %v593_v51, %s11823_s26  ;;  %581 = vrot.lane.b32.xlu0 %v574_v52, %s11823_s26  ;;  %v11796_v51 = vrot.slane %v7984_v38, 1  ;;  %v1071_v52 = vmul.f32 %v1070_v42, %v7832_v8  ;;  %v995_v42 = vstv %s7195_s30  ;;  %s7218_s30 = sld [smem:[#allocation4 + $0x3d]] }
 0x106   : > { %v8070_v6 = vmul.f32 %v995_v42, %v7838_v11 }
 0x107   : > { %v1077_v2 = vrot.slane %v1071_v52, 1 }
 0x109   : > { %619 = vrot.lane.b32.xlu1 %v613_v54, %s11823_s26  ;;  %601 = vrot.lane.b32.xlu0 %v594_v55, %s11823_s26  ;;  %v1052_v54 = vrot.slane %v1046_v40, 1  ;;  %v1078_v55 = vrot.slane %v1072_v43, 1 }
 0x10b   : > { %v1081_v23 = vsel %vm699_vm7, %v1078_v55, %v11794_v12 }
 0x10d   : > { %639 = vrot.lane.b32.xlu1 %v633_v57, %s11823_s26  ;;  %621 = vrot.lane.b32.xlu0 %v614_v58, %s11823_s26  ;;  %v11797_v57 = vrot.slane %v7991_v45, 1  ;;  %v945_v58 = vstv %s7193_s16  ;;  %s7221_s16 = sld [smem:[#allocation4 + $0x40]] }
 0x10e   : > { %v947_v62 = vmul.f32 %v945_v58, %v7836_v10  ;;  %v8020_v14 = vmul.f32 %v945_v58, %v7838_v11 }
 0x10f   : > { %v1056_v5 = vsel %vm699_vm7, %v1053_v49, %v11797_v57 }
 0x110   : > { %v953_v7 = vrot.slane %v947_v62, 1 }
 0x111   : > { %659 = vrot.lane.b32.xlu1 %v653_v60, %s11823_s26  ;;  %641 = vrot.lane.b32.xlu0 %v634_v61, %s11823_s26  ;;  %v1054_v60 = vsel %vm699_vm7, %v1052_v54, %v1053_v49  ;;  %v931_v61 = vsel %vm699_vm7, %v928_v35, %v11796_v51  ;;  %v11791_v35 = vrot.slane %v8027_v21, 1  ;;  %v8056_v54 = vmul.f32 %v1120_v30, %v7838_v11 }
 0x113   : > { %v1106_v49 = vsel %vm699_vm7, %v1103_v25, %v11791_v35 }
 0x115   : > { %679 = vrot.lane.b32.xlu1 %v673_v3, %s11823_s26  ;;  %661 = vrot.lane.b32.xlu0 %v654_v4, %s11823_s26  ;;  %v946_v3 = vmul.f32 %v945_v58, %v7832_v8  ;;  %v1079_v4 = vsel %vm699_vm7, %v1077_v2, %v1078_v55  ;;  %v1127_v55 = vrot.slane %v1121_v39, 1  ;;  %v996_v58 = vmul.f32 %v995_v42, %v7832_v8 }
 0x116   : > { %v1145_v2 = vstv %s7201_s6  ;;  %s7224_s6 = sld [smem:[#allocation4 + $0x43]] }
 0x117   : > { %v1146_v13 = vmul.f32 %v1145_v2, %v7832_v8 }
 0x119   : > { %857 = vrot.lane.b32.xlu1 %v854_v18, %s11821_s10  ;;  %681 = vrot.lane.b32.xlu0 %v674_v15, %s11823_s26  ;;  %v952_v15 = vrot.slane %v946_v3, 1  ;;  %v970_v18 = vstv %s7194_s23  ;;  %s7217_s23 = sld [smem:[#allocation4 + $0x3c]] }
 0x11a   : > { %v972_v19 = vmul.f32 %v970_v18, %v7836_v10  ;;  %v971_v28 = vmul.f32 %v970_v18, %v7832_v8  ;;  %v8044_v37 = vmul.f32 %v970_v18, %v7838_v11 }
 0x11b   : > { %v954_v22 = vsel %vm699_vm7, %v952_v15, %v953_v7  ;;  %v1020_v15 = vstv %s7196_s7  ;;  %s7219_s7 = sld [smem:[#allocation4 + $0x3e]] }
 0x11c   : > { %v978_v31 = vrot.slane %v972_v19, 1  ;;  %v977_v40 = vrot.slane %v971_v28, 1  ;;  %v11792_v52 = vrot.slane %v8044_v37, 1  ;;  %v8086_v28 = vmul.f32 %v1145_v2, %v7838_v11 }
 0x11d   : > { %882 = vrot.lane.b32.xlu1 %v879_v26, %s11821_s10  ;;  %859 = vrot.lane.b32.xlu0 %v856_v27, %s11821_s10  ;;  %v11795_v26 = vrot.slane %v8020_v14, 1  ;;  %v1102_v27 = vrot.slane %v1096_v16, 1 }
 0x11e   : > { %v981_v3 = vsel %vm699_vm7, %v978_v31, %v11792_v52 }
 0x11f   : > { %v956_v34 = vsel %vm699_vm7, %v953_v7, %v11795_v26  ;;  %v1002_v7 = vrot.slane %v996_v58, 1  ;;  %v1473_v26 = vstv %s7216_s15  ;;  %s8439_s15 = sld [smem:[#allocation4 + $0x1]] }
 0x121   : > { %907 = vrot.lane.b32.xlu1 %v904_v32, %s11821_s10  ;;  %884 = vrot.lane.b32.xlu0 %v881_v33, %s11821_s10  ;;  %v1122_v32 = vmul.f32 %v1120_v30, %v7836_v10  ;;  %v1104_v33 = vsel %vm699_vm7, %v1102_v27, %v1103_v25  ;;  %v11790_v27 = vrot.slane %v8070_v6, 1  ;;  %v1021_v30 = vmul.f32 %v1020_v15, %v7832_v8 }
 0x123   : > { %v1128_v43 = vrot.slane %v1122_v32, 1  ;;  %v1170_v32 = vstv %s7202_s8  ;;  %s7225_s8 = sld [smem:[#allocation4 + $0x44]] }
 0x125   : > { %932 = vrot.lane.b32.xlu1 %v929_v46, %s11821_s10  ;;  %909 = vrot.lane.b32.xlu0 %v906_v48, %s11821_s10  ;;  %v997_v46 = vmul.f32 %v995_v42, %v7836_v10  ;;  %v979_v48 = vsel %vm699_vm7, %v977_v40, %v978_v31  ;;  %v1152_v31 = vrot.slane %v1146_v13, 1  ;;  %v1172_v40 = vmul.f32 %v1170_v32, %v7836_v10 }
 0x127   : > { %v1003_v62 = vrot.slane %v997_v46, 1  ;;  %v11786_v46 = vrot.slane %v8086_v28, 1 }
 0x129   : > { %1057 = vrot.lane.b32.xlu1 %v1054_v60, %s11823_s26  ;;  %934 = vrot.lane.b32.xlu0 %v931_v61, %s11821_s10  ;;  %v1129_v61 = vsel %vm699_vm7, %v1127_v55, %v1128_v43  ;;  %v1004_v19 = vsel %vm699_vm7, %v1002_v7, %v1003_v62  ;;  %v1171_v55 = vmul.f32 %v1170_v32, %v7832_v8 }
 0x12d   : > { %1082 = vrot.lane.b32.xlu1 %v1079_v4, %s11823_s26  ;;  %1059 = vrot.lane.b32.xlu0 %v1056_v5, %s11823_s26  ;;  %v11788_v4 = vrot.slane %v8056_v54, 1  ;;  %v1147_v5 = vmul.f32 %v1145_v2, %v7836_v10 }
 0x12f   : > { %v1153_v25 = vrot.slane %v1147_v5, 1 }
 0x131   : > { %957 = vrot.lane.b32.xlu1 %v954_v22, %s11821_s10  ;;  %1084 = vrot.lane.b32.xlu0 %v1081_v23, %s11823_s26  ;;  %v1022_v22 = vmul.f32 %v1020_v15, %v7836_v10  ;;  %v1131_v23 = vsel %vm699_vm7, %v1128_v43, %v11788_v4  ;;  %v1154_v42 = vsel %vm699_vm7, %v1152_v31, %v1153_v25 }
 0x132   : > { %v1006_v43 = vsel %vm699_vm7, %v1003_v62, %v11790_v27  ;;  %v1178_v62 = vrot.slane %v1172_v40, 1  ;;  %v1156_v5 = vsel %vm699_vm7, %v1153_v25, %v11786_v46 }
 0x133   : > { %v1028_v39 = vrot.slane %v1022_v22, 1 }
 0x135   : > { %1107 = vrot.lane.b32.xlu1 %v1104_v33, %s11823_s26  ;;  %959 = vrot.lane.b32.xlu0 %v956_v34, %s11821_s10 }
 0x139   : > { %982 = vrot.lane.b32.xlu1 %v979_v48, %s11821_s10  ;;  %1109 = vrot.lane.b32.xlu0 %v1106_v49, %s11823_s26  ;;  %v8102_v48 = vmul.f32 %v1020_v15, %v7838_v11  ;;  %v1027_v49 = vrot.slane %v1021_v30, 1  ;;  %v8118_v15 = vmul.f32 %v1170_v32, %v7838_v11 }
 0x13b   : > { %v8061_v60 = vpop.permute.xlu1 %379  ;;  %v1029_v2 = vsel %vm699_vm7, %v1027_v49, %v1028_v39  ;;  %v11787_v7 = vrot.slane %v8102_v48, 1 }
 0x13d   : > { %1132 = vrot.lane.b32.xlu1 %v1129_v61, %s11823_s26  ;;  %984 = vrot.lane.b32.xlu0 %v981_v3, %s11821_s10  ;;  %v1398_v3 = vstv %s7213_s9  ;;  %v1031_v32 = vsel %vm699_vm7, %v1028_v39, %v11787_v7  ;;  %s7220_s9 = sld [smem:[#allocation4 + $0x3f]] }
 0x13e   : > { %v1400_v13 = vmul.f32 %v1398_v3, %v7836_v10  ;;  %v1399_v22 = vmul.f32 %v1398_v3, %v7832_v8  ;;  %v8134_v49 = vmul.f32 %v1398_v3, %v7838_v11 }
 0x13f   : > { %v8075_v16 = vpop.permute.xlu1 %383  ;;  %v8077_v18 = vpop.permute.xlu0 %381 }
 0x140   : > { %11943 = vst [vmem:[#allocation18_spill] sm:$0xff] %v8075_v16 }
 0x141   : > { %1007 = vrot.lane.b32.xlu1 %v1004_v19, %s11821_s10  ;;  %1134 = vrot.lane.b32.xlu0 %v1131_v23, %s11823_s26  ;;  %v1177_v19 = vrot.slane %v1171_v55, 1  ;;  %v1423_v23 = vstv %s7214_s11  ;;  %s7226_s11 = sld [smem:[#allocation4 + $0x45]] }
 0x142   : > { %v1425_v40 = vmul.f32 %v1423_v23, %v7836_v10  ;;  %v1424_v55 = vmul.f32 %v1423_v23, %v7832_v8  ;;  %v8150_v46 = vmul.f32 %v1423_v23, %v7838_v11 }
 0x143   : > { %v8091_v33 = vpop.permute.xlu1 %401  ;;  %v8093_v34 = vpop.permute.xlu0 %399  ;;  %v1179_v25 = vsel %vm699_vm7, %v1177_v19, %v1178_v62 }
 0x144   : > { %11944 = vst [vmem:[#allocation19_spill] sm:$0xff] %v8091_v33  ;;  %v1431_v39 = vrot.slane %v1425_v40, 2 }
 0x145   : > { %1157 = vrot.lane.b32.xlu1 %v1154_v42, %s11823_s26  ;;  %1009 = vrot.lane.b32.xlu0 %v1006_v43, %s11821_s10  ;;  %v1406_v42 = vrot.slane %v1400_v13, 2  ;;  %v11789_v43 = vrot.slane %v8118_v15, 1 }
 0x147   : > { %v8107_v58 = vpop.permute.xlu1 %419  ;;  %v8109_v61 = vpop.permute.xlu0 %403 }
 0x148   : > { %11945 = vst [vmem:[#allocation20_spill] sm:$0xff] %v8107_v58  ;;  %11946 = vst [vmem:[#allocation21_spill] sm:$0xff] %v8109_v61 }
 0x149   : > { %1032 = vrot.lane.b32.xlu1 %v1029_v2, %s11821_s10  ;;  %1159 = vrot.lane.b32.xlu0 %v1156_v5, %s11823_s26  ;;  %v1405_v2 = vrot.slane %v1399_v22, 2  ;;  %v1195_v5 = vstv %s7203_s12  ;;  %v1430_v22 = vrot.slane %v1424_v55, 2  ;;  %s7227_s12 = sld [smem:[#allocation4 + $0x46]] }
 0x14a   : > { %v1197_v13 = vmul.f32 %v1195_v5, %v7836_v10  ;;  %v1196_v40 = vmul.f32 %v1195_v5, %v7832_v8  ;;  %v8166_v55 = vmul.f32 %v1195_v5, %v7838_v11 }
 0x14b   : > { %v8123_v30 = vpop.permute.xlu1 %423  ;;  %v8125_v31 = vpop.permute.xlu0 %421  ;;  %v1407_v3 = vsel %vm1252_vm8, %v1405_v2, %v1406_v42  ;;  %v1432_v4 = vsel %vm1252_vm8, %v1430_v22, %v1431_v39 }
 0x14c   : > { %11947 = vst [vmem:[#allocation22_spill] sm:$0xff] %v8123_v30  ;;  %11948 = vst [vmem:[#allocation23_spill] sm:$0xff] %v8125_v31  ;;  %v1202_v27 = vrot.slane %v1196_v40, 1 }
 0x14d   : > { %1182 = vrot.lane.b32.xlu1 %v1179_v25, %s11823_s26  ;;  %1034 = vrot.lane.b32.xlu0 %v1031_v32, %s11821_s10  ;;  %v1181_v25 = vsel %vm699_vm7, %v1178_v62, %v11789_v43  ;;  %v11793_v32 = vrot.slane %v8134_v49, 2  ;;  %v1203_v62 = vrot.slane %v1197_v13, 1  ;;  %v1448_v43 = vstv %s7215_s13  ;;  %s7228_s13 = sld [smem:[#allocation4 + $0x47]] }
 0x14e   : > { %v1449_v22 = vmul.f32 %v1448_v43, %v7832_v8  ;;  %v1220_v13 = vstv %s7204_s14  ;;  %v8182_v40 = vmul.f32 %v1448_v43, %v7838_v11  ;;  %s8435_s14 = sld [smem:[#allocation4]] }
 0x14f   : > { %v8139_v19 = vpop.permute.xlu1 %441  ;;  %v8141_v0 = vpop.permute.xlu0 %439  ;;  %v1409_v23 = vsel %vm1252_vm8, %v1406_v42, %v11793_v32  ;;  %v1204_v42 = vsel %vm699_vm7, %v1202_v27, %v1203_v62  ;;  %v1222_v32 = vmul.f32 %v1220_v13, %v7836_v10  ;;  %v1221_v12 = vmul.f32 %v1220_v13, %v7832_v8 }
 0x150   : > { %11949 = vst [vmem:[#allocation24_spill] sm:$0xff] %v8139_v19  ;;  %11950 = vst [vmem:[#allocation25_spill] sm:$0xff] %v8141_v0  ;;  %v1455_v27 = vrot.slane %v1449_v22, 2 }
 0x151   : > { %1410 = vrot.lane.b32.xlu1 %v1407_v3, %s11821_s10  ;;  %1184 = vrot.lane.b32.xlu0 %v1181_v25, %s11823_s26  ;;  %v11798_v3 = vrot.slane %v8150_v46, 2  ;;  %v1450_v25 = vmul.f32 %v1448_v43, %v7836_v10  ;;  %v1227_v22 = vrot.slane %v1221_v12, 1  ;;  %v8214_v12 = vmul.f32 %v1473_v26, %v7838_v11 }
 0x153   : > { %v8155_v7 = vpop.permute.xlu1 %459  ;;  %v8157_v2 = vpop.permute.xlu0 %443  ;;  %v1434_v5 = vsel %vm1252_vm8, %v1431_v39, %v11798_v3  ;;  %v1228_v39 = vrot.slane %v1222_v32, 1  ;;  %v1474_v32 = vmul.f32 %v1473_v26, %v7832_v8 }
 0x154   : > { %11951 = vst [vmem:[#allocation26_spill] sm:$0xff] %v8155_v7  ;;  %11952 = vst [vmem:[#allocation27_spill] sm:$0xff] %v8157_v2  ;;  %v1673_v2 = vstv %s7224_s6  ;;  %s8459_s6 = sld [smem:[#allocation4 + $0x7]] }
 0x155   : > { %1435 = vrot.lane.b32.xlu1 %v1432_v4, %s11821_s10  ;;  %1412 = vrot.lane.b32.xlu0 %v1409_v23, %s11821_s10  ;;  %v1456_v4 = vrot.slane %v1450_v25, 2  ;;  %v11801_v23 = vrot.slane %v8166_v55, 1  ;;  %v1475_v25 = vmul.f32 %v1473_v26, %v7836_v10  ;;  %v1229_v24 = vsel %vm699_vm7, %v1227_v22, %v1228_v39 }
 0x156   : > { %v1480_v20 = vrot.slane %v1474_v32, 2 }
 0x157   : > { %v8171_v35 = vpop.permute.xlu1 %463  ;;  %v8173_v52 = vpop.permute.xlu0 %461  ;;  %v1457_v3 = vsel %vm1252_vm8, %v1455_v27, %v1456_v4  ;;  %v1206_v43 = vsel %vm699_vm7, %v1203_v62, %v11801_v23  ;;  %v1481_v62 = vrot.slane %v1475_v25, 2  ;;  %v1598_v23 = vstv %s7221_s16  ;;  %s8441_s16 = sld [smem:[#allocation4 + $0x2]] }
 0x158   : > { %11953 = vst [vmem:[#allocation28_spill] sm:$0xff] %v8171_v35  ;;  %11954 = vst [vmem:[#allocation29_spill] sm:$0xff] %v8173_v52  ;;  %v1599_v22 = vmul.f32 %v1598_v23, %v7832_v8  ;;  %v1623_v25 = vstv %s7222_s17  ;;  %v8230_v32 = vmul.f32 %v1598_v23, %v7838_v11  ;;  %s8443_s17 = sld [smem:[#allocation4 + $0x3]] }
 0x159   : > { %1207 = vrot.lane.b32.xlu1 %v1204_v42, %s11823_s26  ;;  %1437 = vrot.lane.b32.xlu0 %v1434_v5, %s11821_s10  ;;  %v11803_v42 = vrot.slane %v8182_v40, 2  ;;  %v8198_v5 = vmul.f32 %v1220_v13, %v7838_v11 }
 0x15b   : > { %v8187_v51 = vpop.permute.xlu1 %481  ;;  %v8189_v57 = vpop.permute.xlu0 %479  ;;  %v1459_v13 = vsel %vm1252_vm8, %v1456_v4, %v11803_v42  ;;  %v1482_v4 = vsel %vm1252_vm8, %v1480_v20, %v1481_v62  ;;  %v1625_v42 = vmul.f32 %v1623_v25, %v7836_v10  ;;  %v1605_v20 = vrot.slane %v1599_v22, 2 }
 0x15c   : > { %11955 = vst [vmem:[#allocation30_spill] sm:$0xff] %v8187_v51  ;;  %11956 = vst [vmem:[#allocation31_spill] sm:$0xff] %v8189_v57 }
 0x15d   : > { %1460 = vrot.lane.b32.xlu1 %v1457_v3, %s11821_s10  ;;  %1209 = vrot.lane.b32.xlu0 %v1206_v43, %s11823_s26  ;;  %v11804_v3 = vrot.slane %v8198_v5, 1  ;;  %v1600_v43 = vmul.f32 %v1598_v23, %v7836_v10 }
 0x15f   : > { %v8203_v36 = vpop.permute.xlu1 %499  ;;  %v8205_v27 = vpop.permute.xlu0 %483  ;;  %v1231_v26 = vsel %vm699_vm7, %v1228_v39, %v11804_v3  ;;  %v1631_v39 = vrot.slane %v1625_v42, 2 }
 0x160   : > { %11957 = vst [vmem:[#allocation32_spill] sm:$0xff] %v8203_v36  ;;  %11958 = vst [vmem:[#allocation33_spill] sm:$0xff] %v8205_v27 }
 0x161   : > { %1232 = vrot.lane.b32.xlu1 %v1229_v24, %s11823_s26  ;;  %1462 = vrot.lane.b32.xlu0 %v1459_v13, %s11821_s10  ;;  %v1606_v24 = vrot.slane %v1600_v43, 2  ;;  %v11805_v13 = vrot.slane %v8214_v12, 2 }
 0x163   : > { %v8219_v16 = vpop.permute.xlu1 %503  ;;  %v8221_v27 = vpop.permute.xlu0 %501  ;;  %v1607_v3 = vsel %vm1252_vm8, %v1605_v20, %v1606_v24  ;;  %v1484_v23 = vsel %vm1252_vm8, %v1481_v62, %v11805_v13  ;;  %v1648_v13 = vstv %s7223_s25  ;;  %s8455_s25 = sld [smem:[#allocation4 + $0x5]] }
 0x164   : > { %11959 = vst [vmem:[#allocation34_spill] sm:$0xff] %v8219_v16  ;;  %11960 = vst [vmem:[#allocation35_spill] sm:$0xff] %v8221_v27  ;;  %v1624_v16 = vmul.f32 %v1623_v25, %v7832_v8  ;;  %v1498_v27 = vstv %s7217_s23  ;;  %s8445_s23 = sld [smem:[#allocation4 + $0x4]] }
 0x165   : > { %1485 = vrot.lane.b32.xlu1 %v1482_v4, %s11821_s10  ;;  %1234 = vrot.lane.b32.xlu0 %v1231_v26, %s11823_s26  ;;  %v1500_v43 = vmul.f32 %v1498_v27, %v7836_v10  ;;  %v11806_v4 = vrot.slane %v8230_v32, 2  ;;  %v8246_v26 = vmul.f32 %v1623_v25, %v7838_v11  ;;  %v1499_v42 = vmul.f32 %v1498_v27, %v7832_v8 }
 0x166   : > { %v1630_v22 = vrot.slane %v1624_v16, 2  ;;  %v8262_v16 = vmul.f32 %v1498_v27, %v7838_v11 }
 0x167   : > { %v8235_v36 = vpop.permute.xlu1 %521  ;;  %v8237_v57 = vpop.permute.xlu0 %519  ;;  %11963 = vst [vmem:[#allocation38_spill] sm:$0xff] %v8246_v26  ;;  %v1506_v62 = vrot.slane %v1500_v43, 2  ;;  %v1609_v25 = vsel %vm1252_vm8, %v1606_v24, %v11806_v4  ;;  %v1523_v43 = vstv %s7218_s30  ;;  %s8457_s30 = sld [smem:[#allocation4 + $0x6]] }
 0x168   : > { %11961 = vst [vmem:[#allocation36_spill] sm:$0xff] %v8235_v36  ;;  %11962 = vst [vmem:[#allocation37_spill] sm:$0xff] %v8237_v57  ;;  %v1632_v36 = vsel %vm1252_vm8, %v1630_v22, %v1631_v39  ;;  %v1649_v22 = vmul.f32 %v1648_v13, %v7832_v8  ;;  %v1525_v4 = vmul.f32 %v1523_v43, %v7836_v10 }
 0x169   : > { %1610 = vrot.lane.b32.xlu1 %v1607_v3, %s11823_s26  ;;  %1487 = vrot.lane.b32.xlu0 %v1484_v23, %s11821_s10  ;;  %v11807_v3 = vrot.slane %v8246_v26, 2  ;;  %v1650_v23 = vmul.f32 %v1648_v13, %v7836_v10  ;;  %11965 = vst [vmem:[#allocation40_spill] sm:$0xff] %v8262_v16  ;;  %v1524_v35 = vmul.f32 %v1523_v43, %v7832_v8  ;;  %v8605_v26 = vstv %s8513_s18  ;;  %s9128_s18 = sld [smem:[#allocation7 + $0x2]] }
 0x16b   : > { %v8251_v57 = vpop.permute.xlu1 %539  ;;  %v8253_v20 = vpop.permute.xlu0 %523  ;;  %v1634_v27 = vsel %vm1252_vm8, %v1631_v39, %v11807_v3  ;;  %v1531_v39 = vrot.slane %v1525_v4, 2  ;;  %v1674_v4 = vmul.f32 %v1673_v2, %v7832_v8 }
 0x16c   : > { %11964 = vst [vmem:[#allocation39_spill] sm:$0xff] %v8253_v20  ;;  %v1505_v20 = vrot.slane %v1499_v42, 2  ;;  %v8278_v42 = vmul.f32 %v1648_v13, %v7838_v11 }
 0x16d   : > { %1635 = vrot.lane.b32.xlu1 %v1632_v36, %s11823_s26  ;;  %1612 = vrot.lane.b32.xlu0 %v1609_v25, %s11823_s26  ;;  %v1656_v36 = vrot.slane %v1650_v23, 2  ;;  %v11808_v25 = vrot.slane %v8262_v16, 2  ;;  %v1675_v23 = vmul.f32 %v1673_v2, %v7836_v10 }
 0x16e   : > { %v1507_v24 = vsel %vm1252_vm8, %v1505_v20, %v1506_v62  ;;  %11966 = vst [vmem:[#allocation41_spill] sm:$0xff] %v8278_v42  ;;  %v1655_v20 = vrot.slane %v1649_v22, 2  ;;  %v1530_v22 = vrot.slane %v1524_v35, 2  ;;  %v8310_v35 = vmul.f32 %v1673_v2, %v7838_v11 }
 0x16f   : > { %v8267_v51 = vpop.permute.xlu1 %559  ;;  %v8269_v52 = vpop.permute.xlu0 %541  ;;  %v1509_v13 = vsel %vm1252_vm8, %v1506_v62, %v11808_v25  ;;  %v1681_v62 = vrot.slane %v1675_v23, 2  ;;  %v1548_v25 = vstv %s7219_s7  ;;  %v1698_v23 = vstv %s7225_s8  ;;  %s8461_s7 = sld [smem:[#allocation4 + $0x18]]  ;;  %s8465_s8 = sld [smem:[#allocation4 + $0x19]] }
 0x170   : > { %v1657_v3 = vsel %vm1252_vm8, %v1655_v20, %v1656_v36  ;;  %v1532_v19 = vsel %vm1252_vm8, %v1530_v22, %v1531_v39  ;;  %11972 = vst [vmem:[#allocation47_spill] sm:$0xff] %v8310_v35  ;;  %v1549_v22 = vmul.f32 %v1548_v25, %v7832_v8 }
 0x171   : > { %1510 = vrot.lane.b32.xlu1 %v1507_v24, %s11821_s10  ;;  %1637 = vrot.lane.b32.xlu0 %v1634_v27, %s11823_s26  ;;  %v11810_v24 = vrot.slane %v8278_v42, 2  ;;  %v8294_v27 = vmul.f32 %v1523_v43, %v7838_v11 }
 0x173   : > { %v8283_v7 = vpop.permute.xlu1 %579  ;;  %v8285_v0 = vpop.permute.xlu0 %561  ;;  %11969 = vst [vmem:[#allocation44_spill] sm:$0xff] %v8294_v27  ;;  %v1659_v43 = vsel %vm1252_vm8, %v1656_v36, %v11810_v24  ;;  %v1700_v24 = vmul.f32 %v1698_v23, %v7836_v10 }
 0x174   : > { %11967 = vst [vmem:[#allocation42_spill] sm:$0xff] %v8283_v7  ;;  %11968 = vst [vmem:[#allocation43_spill] sm:$0xff] %v8285_v0 }
 0x175   : > { %1660 = vrot.lane.b32.xlu1 %v1657_v3, %s11823_s26  ;;  %1512 = vrot.lane.b32.xlu0 %v1509_v13, %s11821_s10  ;;  %v11812_v3 = vrot.slane %v8294_v27, 2  ;;  %v1550_v13 = vmul.f32 %v1548_v25, %v7836_v10 }
 0x177   : > { %v8299_v7 = vpop.permute.xlu1 %599  ;;  %v8301_v20 = vpop.permute.xlu0 %581  ;;  %v1534_v2 = vsel %vm1252_vm8, %v1531_v39, %v11812_v3  ;;  %v1706_v39 = vrot.slane %v1700_v24, 2 }
 0x178   : > { %11970 = vst [vmem:[#allocation45_spill] sm:$0xff] %v8299_v7  ;;  %11971 = vst [vmem:[#allocation46_spill] sm:$0xff] %v8301_v20  ;;  %v1680_v7 = vrot.slane %v1674_v4, 2  ;;  %v8326_v4 = vmul.f32 %v1548_v25, %v7838_v11 }
 0x179   : > { %1535 = vrot.lane.b32.xlu1 %v1532_v19, %s11821_s10  ;;  %1662 = vrot.lane.b32.xlu0 %v1659_v43, %s11823_s26  ;;  %v1556_v19 = vrot.slane %v1550_v13, 2  ;;  %v11814_v43 = vrot.slane %v8310_v35, 2 }
 0x17a   : > { %v1682_v36 = vsel %vm1252_vm8, %v1680_v7, %v1681_v62  ;;  %11975 = vst [vmem:[#allocation50_spill] sm:$0xff] %v8326_v4  ;;  %v1573_v7 = vstv %s7220_s9  ;;  %s8467_s9 = sld [smem:[#allocation4 + $0x1a]] }
 0x17b   : > { %v8315_v20 = vpop.permute.xlu1 %619  ;;  %v8317_v42 = vpop.permute.xlu0 %601  ;;  %v1575_v13 = vmul.f32 %v1573_v7, %v7836_v10  ;;  %v1684_v25 = vsel %vm1252_vm8, %v1681_v62, %v11814_v43  ;;  %v1574_v24 = vmul.f32 %v1573_v7, %v7832_v8 }
 0x17c   : > { %11973 = vst [vmem:[#allocation48_spill] sm:$0xff] %v8315_v20  ;;  %11974 = vst [vmem:[#allocation49_spill] sm:$0xff] %v8317_v42  ;;  %v1699_v20 = vmul.f32 %v1698_v23, %v7832_v8  ;;  %v1555_v42 = vrot.slane %v1549_v22, 2 }
 0x17d   : > { %1685 = vrot.lane.b32.xlu1 %v1682_v36, %s11823_s26  ;;  %1537 = vrot.lane.b32.xlu0 %v1534_v2, %s11821_s10  ;;  %v11817_v36 = vrot.slane %v8326_v4, 2  ;;  %v8342_v2 = vmul.f32 %v1698_v23, %v7838_v11 }
 0x17e   : > { %v1557_v3 = vsel %vm1252_vm8, %v1555_v42, %v1556_v19  ;;  %v1705_v22 = vrot.slane %v1699_v20, 2  ;;  %v8358_v20 = vmul.f32 %v1573_v7, %v7838_v11 }
 0x17f   : > { %v8331_v31 = vpop.permute.xlu1 %639  ;;  %v8333_v27 = vpop.permute.xlu0 %621  ;;  %11978 = vst [vmem:[#allocation53_spill] sm:$0xff] %v8342_v2  ;;  %v1559_v23 = vsel %vm1252_vm8, %v1556_v19, %v11817_v36  ;;  %v1773_v36 = vstv %s7228_s13  ;;  %s8481_s13 = sld [smem:[#allocation4 + $0x1d]] }
 0x180   : > { %11976 = vst [vmem:[#allocation51_spill] sm:$0xff] %v8331_v31  ;;  %11977 = vst [vmem:[#allocation52_spill] sm:$0xff] %v8333_v27  ;;  %v1723_v31 = vstv %s7226_s11  ;;  %v1707_v35 = vsel %vm1252_vm8, %v1705_v22, %v1706_v39  ;;  %v1580_v22 = vrot.slane %v1574_v24, 2  ;;  %v8378_v24 = vld [vmem:[#allocation2] sm:$0xff]  ;;  %s8469_s11 = sld [smem:[#allocation4 + $0x1b]] }
 0x181   : > { %1560 = vrot.lane.b32.xlu1 %v1557_v3, %s11821_s10  ;;  %1687 = vrot.lane.b32.xlu0 %v1684_v25, %s11823_s26  ;;  %v1725_v62 = vmul.f32 %v1723_v31, %v7836_v10  ;;  %v1581_v3 = vrot.slane %v1575_v13, 2  ;;  %v11816_v25 = vrot.slane %v8342_v2, 2  ;;  %11981 = vst [vmem:[#allocation56_spill] sm:$0xff] %v8358_v20  ;;  %v1724_v43 = vmul.f32 %v1723_v31, %v7832_v8 }
 0x183   : > { %v8347_v27 = vpop.permute.xlu1 %659  ;;  %v8349_v42 = vpop.permute.xlu0 %641  ;;  %v1731_v4 = vrot.slane %v1725_v62, 2  ;;  %v1582_v13 = vsel %vm1252_vm8, %v1580_v22, %v1581_v3  ;;  %v1709_v7 = vsel %vm1252_vm8, %v1706_v39, %v11816_v25  ;;  %v1730_v8 = vrot.slane %v1724_v43, 2 }
 0x184   : > { %11979 = vst [vmem:[#allocation54_spill] sm:$0xff] %v8347_v27  ;;  %11980 = vst [vmem:[#allocation55_spill] sm:$0xff] %v8349_v42  ;;  %v1748_v27 = vstv %s7227_s12  ;;  %s8479_s12 = sld [smem:[#allocation4 + $0x1c]] }
 0x185   : > { %1710 = vrot.lane.b32.xlu1 %v1707_v35, %s11823_s26  ;;  %1562 = vrot.lane.b32.xlu0 %v1559_v23, %s11821_s10  ;;  %v1750_v19 = vmul.f32 %v1748_v27, %v7836_v10  ;;  %v11818_v35 = vrot.slane %v8358_v20, 2  ;;  %v8374_v23 = vmul.f32 %v1723_v31, %v7838_v11  ;;  %v1749_v10 = vmul.f32 %v8378_v24, %v1748_v27 }
 0x186   : > { %v1732_v39 = vsel %vm1252_vm8, %v1730_v8, %v1731_v4  ;;  %v1774_v8 = vmul.f32 %v8378_v24, %v1773_v36 }
 0x187   : > { %v8363_v42 = vpop.permute.xlu1 %679  ;;  %v8365_v30 = vpop.permute.xlu0 %661  ;;  %11984 = vst [vmem:[#allocation59_spill] sm:$0xff] %v8374_v23  ;;  %v1756_v25 = vrot.slane %v1750_v19, 2  ;;  %v1584_v11 = vsel %vm1252_vm8, %v1581_v3, %v11818_v35  ;;  %v11831_v31 = vrot.slane %v8374_v23, 2  ;;  %v1755_v19 = vrot.slane %v1749_v10, 2 }
 0x188   : > { %11982 = vst [vmem:[#allocation57_spill] sm:$0xff] %v8363_v42  ;;  %11983 = vst [vmem:[#allocation58_spill] sm:$0xff] %v8365_v30  ;;  %v1780_v10 = vrot.slane %v1774_v8, 2 }
 0x189   : > { %1585 = vrot.lane.b32.xlu1 %v1582_v13, %s11821_s10  ;;  %1712 = vrot.lane.b32.xlu0 %v1709_v7, %s11823_s26  ;;  %v8390_v13 = vld [vmem:[#allocation2 + $0x8] sm:$0xff]  ;;  %v8393_v7 = vld [vmem:[#allocation2 + $0x10] sm:$0xf]  ;;  %v1757_v35 = vsel %vm1252_vm8, %v1755_v19, %v1756_v25  ;;  %v1734_v42 = vsel %vm1252_vm8, %v1731_v4, %v11831_v31  ;;  %v356_v31 = vstv %s8457_s30 }
 0x18a   : > { %v1775_v43 = vmul.f32 %v8390_v13, %v1773_v36  ;;  %v8396_v30 = vmul.f32 %v8393_v7, %v1748_v27  ;;  %v8536_v23 = vstv %s8479_s12 }
 0x18b   : > { %v8381_v62 = vpop.permute.xlu1 %857  ;;  %v8383_v22 = vpop.permute.xlu0 %681  ;;  %v8716_v16 = vmul.f32 %v8393_v7, %v8536_v23 }
 0x18c   : > { %11985 = vst [vmem:[#allocation60_spill] sm:$0xff] %v8383_v22  ;;  %11986 = vst [vmem:[#allocation61_spill] sm:$0xff] %v8396_v30  ;;  %v1781_v2 = vrot.slane %v1775_v43, 2  ;;  %v11832_v27 = vrot.slane %v8396_v30, 2  ;;  %v12006_v30 = vrot.slane %v7958_v17, 1 }
 0x18d   : > { %1735 = vrot.lane.b32.xlu1 %v1732_v39, %s11823_s26  ;;  %1587 = vrot.lane.b32.xlu0 %v1584_v11, %s11821_s10  ;;  %v8411_v39 = vmul.f32 %v8393_v7, %v1773_v36  ;;  %s8483_s10 = sld [smem:[#allocation4 + $0x1e]]  ;;  %12041 = vst [vmem:[#allocation107_spill] sm:$0xff] %v8716_v16 }
 0x18e   : > { %v1782_v19 = vsel %vm1252_vm8, %v1780_v10, %v1781_v2  ;;  %v1759_v4 = vsel %vm1252_vm8, %v1756_v25, %v11832_v27  ;;  %v555_v10 = vmul.f32 %v8393_v7, %v7889_v44  ;;  %v364_v27 = vstv %s8459_s6 }
 0x18f   : > { %v8401_v22 = vpop.permute.xlu1 %882  ;;  %v8403_v3 = vpop.permute.xlu0 %859  ;;  %11989 = vst [vmem:[#allocation64_spill] sm:$0xff] %v8411_v39  ;;  %v11830_v43 = vrot.slane %v8411_v39, 2  ;;  %v8533_v39 = vstv %s8469_s11 }
 0x190   : > { %11987 = vst [vmem:[#allocation62_spill] sm:$0xff] %v8401_v22  ;;  %11988 = vst [vmem:[#allocation63_spill] sm:$0xff] %v8403_v3 }
 0x191   : > { %1760 = vrot.lane.b32.xlu1 %v1757_v35, %s11823_s26  ;;  %1737 = vrot.lane.b32.xlu0 %v1734_v42, %s11823_s26  ;;  %v535_v35 = vmul.f32 %v8393_v7, %v7882_v41  ;;  %v1784_v8 = vsel %vm1252_vm8, %v1781_v2, %v11830_v43  ;;  %v575_v2 = vmul.f32 %v8393_v7, %v7897_v47  ;;  %v348_v43 = vstv %s8455_s25 }
 0x193   : > { %v8415_v11 = vpop.permute.xlu1 %907  ;;  %v8417_v20 = vpop.permute.xlu0 %884 }
 0x194   : > { %11990 = vst [vmem:[#allocation65_spill] sm:$0xff] %v8415_v11  ;;  %11991 = vst [vmem:[#allocation66_spill] sm:$0xff] %v8417_v20  ;;  %v8557_v11 = vstv %s8491_s2  ;;  %v675_v20 = vmul.f32 %v8393_v7, %v7937_v63  ;;  %s9070_s2 = sld [smem:[#allocation7 + $0x1]] }
 0x195   : > { %1785 = vrot.lane.b32.xlu1 %v1782_v19, %s11823_s26  ;;  %1762 = vrot.lane.b32.xlu0 %v1759_v4, %s11823_s26  ;;  %v615_v19 = vmul.f32 %v8393_v7, %v7913_v53  ;;  %v595_v4 = vmul.f32 %v8393_v7, %v7905_v50 }
 0x197   : > { %v8426_v36 = vpop.permute.xlu1 %932  ;;  %v8428_v42 = vpop.permute.xlu0 %909 }
 0x198   : > { %11992 = vst [vmem:[#allocation67_spill] sm:$0xff] %v8426_v36  ;;  %11993 = vst [vmem:[#allocation68_spill] sm:$0xff] %v8428_v42  ;;  %v8530_v36 = vstv %s8467_s9  ;;  %v8543_v42 = vstv %s8481_s13 }
 0x199   : > { %543 = vrot.lane.b32.xlu1 %v535_v35, %s11823_s26  ;;  %1787 = vrot.lane.b32.xlu0 %v1784_v8, %s11823_s26  ;;  %v635_v35 = vmul.f32 %v8393_v7, %v7921_v56  ;;  %v8506_v8 = vstv %s8435_s14  ;;  %v324_v56 = vstv %s8441_s16  ;;  %s8548_s14 = sld [smem:[#allocation4 + $0x36]]  ;;  %v790_v33 = vmul.f32 %v8390_v13, %v8543_v42 }
 0x19a   : > { %12000 = vst [vmem:[#allocation75_spill] sm:$0xff] %v8506_v8  ;;  %v8580_v61 = vmul.f32 %v8390_v13, %v8506_v8  ;;  %v8595_v63 = vmul.f32 %v8393_v7, %v324_v56  ;;  %v8598_v58 = vmul.f32 %v8390_v13, %v324_v56 }
 0x19b   : > { %v8447_v25 = vpop.permute.xlu1 %1057  ;;  %v8449_v41 = vpop.permute.xlu0 %934 }
 0x19c   : > { %11994 = vst [vmem:[#allocation69_spill] sm:$0xff] %v8447_v25  ;;  %11995 = vst [vmem:[#allocation70_spill] sm:$0xff] %v8449_v41  ;;  %v712_v41 = vstv %s8465_s8 }
 0x19d   : > { %583 = vrot.lane.b32.xlu1 %v575_v2, %s11823_s26  ;;  %563 = vrot.lane.b32.xlu0 %v555_v10, %s11823_s26  ;;  %v316_v2 = vstv %s8439_s15  ;;  %v12002_v10 = vrot.slane %v7949_v9, 1  ;;  %12011 = vst [vmem:[#allocation82_spill] sm:$0xff] %v8595_v63  ;;  %12012 = vst [vmem:[#allocation83_spill] sm:$0xff] %v8598_v58 }
 0x19e   : > { %v8583_v3 = vmul.f32 %v8390_v13, %v316_v2  ;;  %v8586_v22 = vmul.f32 %v8378_v24, %v316_v2 }
 0x19f   : > { %v8471_v47 = vpop.permute.xlu1 %1082  ;;  %v8473_v44 = vpop.permute.xlu0 %1059 }
 0x1a0   : > { %11996 = vst [vmem:[#allocation71_spill] sm:$0xff] %v8471_v47  ;;  %11997 = vst [vmem:[#allocation72_spill] sm:$0xff] %v8473_v44  ;;  %v8576_v47 = vstv %s8503_s20  ;;  %s9161_s20 = sld [smem:[#allocation7 + $0x3]] }
 0x1a1   : > { %623 = vrot.lane.b32.xlu1 %v615_v19, %s11823_s26  ;;  %603 = vrot.lane.b32.xlu0 %v595_v4, %s11823_s26  ;;  %s8501_s26 = sld [smem:[#allocation4 + $0x33]]  ;;  %v332_v19 = vstv %s8443_s17  ;;  %v340_v4 = vstv %s8445_s23 }
 0x1a2   : > { %v8616_v63 = vmul.f32 %v8378_v24, %v340_v4 }
 0x1a3   : > { %v8495_v50 = vpop.permute.xlu1 %957  ;;  %v8497_v53 = vpop.permute.xlu0 %1084 }
 0x1a4   : > { %11998 = vst [vmem:[#allocation73_spill] sm:$0xff] %v8495_v50  ;;  %11999 = vst [vmem:[#allocation74_spill] sm:$0xff] %v8497_v53  ;;  %v692_v50 = vstv %s8461_s7  ;;  %v8560_v53 = vstv %s8493_s27  ;;  %s9323_s27 = sld [smem:[#allocation7 + $0x5]] }
 0x1a5   : > { %861 = vrot.lane.b32.xlu1 %v12002_v10, %s12001_s24  ;;  %643 = vrot.lane.b32.xlu0 %v635_v35, %s12003_s29  ;;  %v655_v35 = vmul.f32 %v8393_v7, %v7929_v59  ;;  %v8551_v59 = vstv %s8487_s0  ;;  %s8607_s0 = sld [smem:[#allocation4 + $0x37]]  ;;  %12016 = vst [vmem:[#allocation86_spill] sm:$0xff] %v8616_v63  ;;  %v8638_v63 = vmul.f32 %v8378_v24, %v348_v43 }
 0x1a7   : > { %v8522_v9 = vpop.permute.xlu1 %1107  ;;  %v8524_v10 = vpop.permute.xlu0 %959  ;;  %v8573_v44 = vstv %s8501_s26  ;;  %12023 = vst [vmem:[#allocation93_spill] sm:$0xff] %v8638_v63  ;;  %v8661_v63 = vstv %s8548_s14 }
 0x1a8   : > { %12004 = vst [vmem:[#allocation76_spill] sm:$0xff] %v8522_v9  ;;  %12005 = vst [vmem:[#allocation77_spill] sm:$0xff] %v8524_v10  ;;  %v8546_v10 = vstv %s8483_s10  ;;  %v8554_v9 = vstv %s8489_s1  ;;  %s9015_s1 = sld [smem:[#allocation7]]  ;;  %s9409_s10 = sld [smem:[#allocation7 + $0x7]] }
 0x1a9   : > { %663 = vrot.lane.b32.xlu1 %v655_v35, %s12003_s29  ;;  %886 = vrot.lane.b32.xlu0 %v12006_v30, %s12001_s24  ;;  %v8564_v35 = vmul.f32 %v8378_v24, %v8506_v8  ;;  %v12013_v8 = vrot.slane %v7972_v29, 1  ;;  %v8622_v29 = vmul.f32 %v8393_v7, %v332_v19 }
 0x1ab   : > { %v8566_v17 = vpop.permute.xlu1 %982  ;;  %v8568_v30 = vpop.permute.xlu0 %1109  ;;  %12017 = vst [vmem:[#allocation87_spill] sm:$0xff] %v8622_v29  ;;  %v751_v29 = vmul.f32 %v8378_v24, %v8533_v39 }
 0x1ac   : > { %12007 = vst [vmem:[#allocation78_spill] sm:$0xff] %v8566_v17  ;;  %12008 = vst [vmem:[#allocation79_spill] sm:$0xff] %v8568_v30  ;;  %v8589_v17 = vmul.f32 %v8378_v24, %v324_v56  ;;  %v8592_v30 = vmul.f32 %v8393_v7, %v316_v2  ;;  %v8613_v2 = vmul.f32 %v8378_v24, %v332_v19 }
 0x1ad   : > { %683 = vrot.lane.b32.xlu1 %v675_v20, %s12003_s29  ;;  %911 = vrot.lane.b32.xlu0 %v12013_v8, %s12001_s24  ;;  %v8619_v56 = vmul.f32 %v8390_v13, %v692_v50  ;;  %v8625_v20 = vmul.f32 %v8393_v7, %v340_v4  ;;  %v8628_v8 = vmul.f32 %v8390_v13, %v340_v4 }
 0x1ae   : > { %12009 = vst [vmem:[#allocation80_spill] sm:$0xff] %v8589_v17  ;;  %12010 = vst [vmem:[#allocation81_spill] sm:$0xff] %v8592_v30  ;;  %v8610_v17 = vmul.f32 %v8390_v13, %v332_v19  ;;  %v8641_v30 = vmul.f32 %v8378_v24, %v356_v31  ;;  %v693_v19 = vmul.f32 %v8378_v24, %v692_v50 }
 0x1af   : > { %12015 = vst [vmem:[#allocation85_spill] sm:$0xff] %v8613_v2  ;;  %12018 = vst [vmem:[#allocation88_spill] sm:$0xff] %v8625_v20  ;;  %v8633_v2 = vpop.permute.xlu1 %1132  ;;  %v8635_v58 = vpop.permute.xlu0 %984  ;;  %v714_v20 = vmul.f32 %v8390_v13, %v712_v41  ;;  %v8646_v4 = vmul.f32 %v8393_v7, %v348_v43 }
 0x1b0   : > { %12014 = vst [vmem:[#allocation84_spill] sm:$0xff] %v8610_v17  ;;  %12019 = vst [vmem:[#allocation89_spill] sm:$0xff] %v8628_v8  ;;  %v8631_v17 = vmul.f32 %v8390_v13, %v348_v43  ;;  %v8649_v8 = vmul.f32 %v8393_v7, %v356_v31  ;;  %v8667_v43 = vmul.f32 %v8378_v24, %v364_v27 }
 0x1b1   : > { %12021 = vst [vmem:[#allocation91_spill] sm:$0xff] %v8633_v2  ;;  %12022 = vst [vmem:[#allocation92_spill] sm:$0xff] %v8635_v58  ;;  %v8652_v2 = vmul.f32 %v8390_v13, %v356_v31  ;;  %v12028_v58 = vrot.slane %v7991_v45, 1  ;;  %v713_v31 = vmul.f32 %v8378_v24, %v712_v41  ;;  %v8672_v45 = vmul.f32 %v8393_v7, %v364_v27 }
 0x1b2   : > { %12020 = vst [vmem:[#allocation90_spill] sm:$0xff] %v8631_v17  ;;  %12024 = vst [vmem:[#allocation94_spill] sm:$0xff] %v8641_v30  ;;  %v12029_v30 = vrot.slane %v7984_v38, 1  ;;  %v8664_v17 = vmul.f32 %v8390_v13, %v364_v27  ;;  %v733_v38 = vmul.f32 %v8390_v13, %v8530_v36  ;;  %v8690_v27 = vmul.f32 %v8393_v7, %v8530_v36 }
 0x1b3   : > { %12025 = vst [vmem:[#allocation95_spill] sm:$0xff] %v8646_v4  ;;  %12026 = vst [vmem:[#allocation96_spill] sm:$0xff] %v8649_v8  ;;  %1061 = vrot.lane.b32.xlu1 %v12028_v58, %s12003_s29  ;;  %v701_v8 = vrot.slane %v8619_v56, 1  ;;  %v8675_v58 = vmul.f32 %v8393_v7, %v692_v50  ;;  %v700_v56 = vrot.slane %v693_v19, 1  ;;  %v752_v4 = vmul.f32 %v8390_v13, %v8533_v39 }
 0x1b4   : > { %12027 = vst [vmem:[#allocation97_spill] sm:$0xff] %v8652_v2  ;;  %936 = vrot.lane.b32.xlu0 %v12029_v30, %s12001_s24  ;;  %12030 = vst [vmem:[#allocation98_spill] sm:$0xff] %v8664_v17  ;;  %v8680_v30 = vmul.f32 %v8393_v7, %v712_v41  ;;  %v8682_v17 = vpop.permute.xlu1 %1007  ;;  %v720_v2 = vrot.slane %v714_v20, 1  ;;  %v732_v50 = vmul.f32 %v8378_v24, %v8530_v36  ;;  %v12039_v20 = vrot.slane %v8020_v14, 1 }
 0x1b5   : > { %12031 = vst [vmem:[#allocation99_spill] sm:$0xff] %v8667_v43  ;;  %12032 = vst [vmem:[#allocation100_spill] sm:$0xff] %v8672_v45  ;;  %v8684_v43 = vpop.permute.xlu0 %1134  ;;  %v8696_v41 = vmul.f32 %v8393_v7, %v8533_v39  ;;  %v771_v45 = vmul.f32 %v8390_v13, %v8536_v23  ;;  %v12040_v19 = vrot.slane %v8008_v1, 1  ;;  %v719_v36 = vrot.slane %v713_v31, 1 }
 0x1b6   : > { %12033 = vst [vmem:[#allocation101_spill] sm:$0xff] %v8675_v58  ;;  %12034 = vst [vmem:[#allocation102_spill] sm:$0xff] %v8680_v30  ;;  %v770_v1 = vmul.f32 %v8378_v24, %v8536_v23  ;;  %v758_v39 = vrot.slane %v752_v4, 1  ;;  %v738_v14 = vrot.slane %v732_v50, 1  ;;  %v8735_v23 = vmul.f32 %v8393_v7, %v8543_v42 }
 0x1b7   : > { %12035 = vst [vmem:[#allocation103_spill] sm:$0xff] %v8682_v17  ;;  %12036 = vst [vmem:[#allocation104_spill] sm:$0xff] %v8684_v43  ;;  %961 = vrot.lane.b32.xlu1 %v12039_v20, %s12001_s24  ;;  %v8707_v17 = vstv %s8607_s0  ;;  %v8710_v43 = vsel %vm699_vm7, %v700_v56, %v701_v8  ;;  %v739_v20 = vrot.slane %v733_v38, 1  ;;  %v8727_v31 = vsel %vm699_vm7, %v719_v36, %v720_v2 }
 0x1b8   : > { %12037 = vst [vmem:[#allocation105_spill] sm:$0xff] %v8690_v27  ;;  %12038 = vst [vmem:[#allocation106_spill] sm:$0xff] %v8696_v41  ;;  %1086 = vrot.lane.b32.xlu0 %v12040_v19, %s12003_s29  ;;  %v8722_v19 = vpop.permute.xlu1 %1157  ;;  %v777_v0 = vrot.slane %v771_v45, 1  ;;  %v12046_v4 = vrot.slane %v8027_v21, 1  ;;  %v757_v36 = vrot.slane %v751_v29, 1  ;;  %v789_v50 = vmul.f32 %v8378_v24, %v8543_v42 }
 0x1b9   : > { %12042 = vst [vmem:[#allocation108_spill] sm:$0xff] %v8722_v19  ;;  %v8724_v56 = vpop.permute.xlu0 %1009  ;;  %12044 = vst [vmem:[#allocation110_spill] sm:$0xff] %v8735_v23  ;;  %v809_v45 = vmul.f32 %v8390_v13, %v8546_v10  ;;  %v12047_v38 = vrot.slane %v8675_v58, 1  ;;  %v12048_v21 = vrot.slane %v8680_v30, 1  ;;  %v12051_v58 = vrot.slane %v8690_v27, 1 }
 0x1ba   : > { %12043 = vst [vmem:[#allocation109_spill] sm:$0xff] %v8724_v56  ;;  %v12045_v56 = vrot.slane %v8044_v37, 1  ;;  %v8754_v37 = vsel %vm699_vm7, %v738_v14, %v739_v20  ;;  %v8766_v25 = vsel %vm699_vm7, %v757_v36, %v758_v39  ;;  %v796_v14 = vrot.slane %v790_v33, 1 }
 0x1bb   : > { %v8751_v19 = vsel %vm699_vm7, %v701_v8, %v12047_v38  ;;  %v8759_v29 = vsel %vm699_vm7, %v720_v2, %v12048_v21  ;;  %v8771_v8 = vsel %vm699_vm7, %v739_v20, %v12051_v58  ;;  %v808_v38 = vmul.f32 %v8378_v24, %v8546_v10 }
 0x1bc   : > { %986 = vrot.lane.b32.xlu1 %v12045_v56, %s12001_s24  ;;  %1111 = vrot.lane.b32.xlu0 %v12046_v4, %s12003_s29  ;;  %v776_v56 = vrot.slane %v770_v1, 1  ;;  %v8761_v4 = vpop.permute.xlu1 %1032  ;;  %v12052_v2 = vrot.slane %v8696_v41, 1  ;;  %v8786_v27 = vmul.f32 %v8393_v7, %v8546_v10  ;;  %v12054_v33 = vrot.slane %v8070_v6, 1 }
 0x1bd   : > { %12049 = vst [vmem:[#allocation111_spill] sm:$0xff] %v8761_v4  ;;  %v8763_v42 = vpop.permute.xlu0 %1159  ;;  %v12055_v58 = vrot.slane %v8056_v54, 1  ;;  %v12056_v20 = vrot.slane %v8716_v16, 1  ;;  %v828_v36 = vmul.f32 %v8390_v13, %v8551_v59  ;;  %v827_v10 = vmul.f32 %v8378_v24, %v8551_v59 }
 0x1be   : > { %12050 = vst [vmem:[#allocation112_spill] sm:$0xff] %v8763_v42  ;;  %v8778_v1 = vsel %vm699_vm7, %v758_v39, %v12052_v2  ;;  %v8781_v21 = vsel %vm699_vm7, %v776_v56, %v777_v0  ;;  %12053 = vst [vmem:[#allocation113_spill] sm:$0xff] %v8786_v27  ;;  %v795_v56 = vrot.slane %v789_v50, 1  ;;  %v815_v2 = vrot.slane %v809_v45, 1 }
 0x1bf   : > { %v8797_v39 = vsel %vm699_vm7, %v777_v0, %v12056_v20  ;;  %v8807_v6 = vmul.f32 %v8393_v7, %v8551_v59  ;;  %v1247_v0 = vmul.f32 %v8390_v13, %v8554_v9  ;;  %v1267_v50 = vmul.f32 %v8390_v13, %v8557_v11 }
 0x1c0   : > { %1011 = vrot.lane.b32.xlu1 %v12054_v33, %s12001_s24  ;;  %1136 = vrot.lane.b32.xlu0 %v12055_v58, %s12003_s29  ;;  %v8803_v41 = vpop.permute.xlu1 %1182  ;;  %v8816_v45 = vsel %vm699_vm7, %v795_v56, %v796_v14  ;;  %v814_v33 = vrot.slane %v808_v38, 1  ;;  %v1246_v58 = vmul.f32 %v8378_v24, %v8554_v9  ;;  %v8822_v20 = vmul.f32 %v8393_v7, %v8554_v9 }
 0x1c1   : > { %12057 = vst [vmem:[#allocation114_spill] sm:$0xff] %v8803_v41  ;;  %12058 = vst [vmem:[#allocation115_spill] sm:$0xff] %v8807_v6  ;;  %v8809_v54 = vpop.permute.xlu0 %1034  ;;  %v12061_v59 = vrot.slane %v8735_v23, 1  ;;  %v12063_v38 = vrot.slane %v8086_v28, 1  ;;  %v1266_v56 = vmul.f32 %v8378_v24, %v8557_v11  ;;  %v8840_v9 = vmul.f32 %v8393_v7, %v8557_v11 }
 0x1c2   : > { %12059 = vst [vmem:[#allocation116_spill] sm:$0xff] %v8809_v54  ;;  %12060 = vst [vmem:[#allocation117_spill] sm:$0xff] %v8822_v20  ;;  %v12062_v54 = vrot.slane %v8102_v48, 1  ;;  %v1286_v30 = vmul.f32 %v8390_v13, %v8560_v53  ;;  %v8849_v48 = vmul.f32 %v8393_v7, %v8560_v53  ;;  %v833_v28 = vrot.slane %v827_v10, 1 }
 0x1c3   : > { %v8827_v16 = vsel %vm699_vm7, %v796_v14, %v12061_v59  ;;  %12064 = vst [vmem:[#allocation118_spill] sm:$0xff] %v8840_v9  ;;  %v8843_v14 = vsel %vm699_vm7, %v814_v33, %v815_v2  ;;  %v834_v59 = vrot.slane %v828_v36, 1  ;;  %v1273_v11 = vrot.slane %v1267_v50, 2 }
 0x1c4   : > { %1036 = vrot.lane.b32.xlu1 %v12062_v54, %s12001_s24  ;;  %1161 = vrot.lane.b32.xlu0 %v12063_v38, %s12003_s29  ;;  %12065 = vst [vmem:[#allocation119_spill] sm:$0xff] %v8849_v48  ;;  %v1254_v38 = vrot.slane %v1247_v0, 2  ;;  %v8852_v23 = vpop.permute.xlu1 %1410  ;;  %v1253_v4 = vrot.slane %v1246_v58, 2  ;;  %v1285_v36 = vmul.f32 %v8378_v24, %v8560_v53  ;;  %v1305_v42 = vmul.f32 %v8390_v13, %v8573_v44 }
 0x1c5   : > { %v8854_v41 = vpop.permute.xlu0 %1184  ;;  %v12067_v10 = vrot.slane %v8134_v49, 2  ;;  %v12068_v0 = vrot.slane %v8118_v15, 1  ;;  %v1272_v54 = vrot.slane %v1266_v56, 2  ;;  %v1304_v58 = vmul.f32 %v8378_v24, %v8573_v44 }
 0x1c6   : > { %12066 = vst [vmem:[#allocation120_spill] sm:$0xff] %v8854_v41  ;;  %v8872_v53 = vmul.f32 %v8393_v7, %v8573_v44  ;;  %v12070_v33 = vrot.slane %v8786_v27, 1  ;;  %v8880_v49 = vsel %vm699_vm7, %v833_v28, %v834_v59  ;;  %v1292_v15 = vrot.slane %v1286_v30, 2 }
 0x1c7   : > { %v8889_v50 = vsel %vm1252_vm8, %v1253_v4, %v1254_v38  ;;  %v8892_v44 = vsel %vm1252_vm8, %v1272_v54, %v1273_v11  ;;  %v1323_v30 = vmul.f32 %v8378_v24, %v8576_v47  ;;  %v12072_v28 = vrot.slane %v8822_v20, 2 }
 0x1c8   : > { %1414 = vrot.lane.b32.xlu1 %v12067_v10, %s12001_s24  ;;  %1186 = vrot.lane.b32.xlu0 %v12068_v0, %s12003_s29  ;;  %12069 = vst [vmem:[#allocation121_spill] sm:$0xff] %v8872_v53  ;;  %v8877_v41 = vsel %vm699_vm7, %v815_v2, %v12070_v33  ;;  %v12071_v10 = vrot.slane %v8807_v6, 1  ;;  %v8894_v27 = vpop.permute.xlu1 %1435  ;;  %v1324_v4 = vmul.f32 %v8390_v13, %v8576_v47  ;;  %v12073_v54 = vrot.slane %v8166_v55, 1 }
 0x1c9   : > { %v8896_v2 = vpop.permute.xlu0 %1412  ;;  %v8903_v33 = vsel %vm1252_vm8, %v1254_v38, %v12072_v28  ;;  %v12074_v56 = vrot.slane %v8150_v46, 2  ;;  %v12075_v6 = vrot.slane %v8840_v9, 2  ;;  %v1310_v38 = vrot.slane %v1304_v58, 2 }
 0x1ca   : > { %v8886_v0 = vsel %vm699_vm7, %v834_v59, %v12071_v10  ;;  %v1291_v59 = vrot.slane %v1285_v36, 2  ;;  %v1311_v10 = vrot.slane %v1305_v42, 2  ;;  %v8921_v42 = vmul.f32 %v8393_v7, %v8576_v47 }
 0x1cb   : > { %v8916_v20 = vsel %vm1252_vm8, %v1273_v11, %v12075_v6  ;;  %v388_v55 = vadd.f32 %v8061_v60, %v8564_v35  ;;  %v12077_v46 = vrot.slane %v8849_v48, 2  ;;  %v1343_v6 = vmul.f32 %v8390_v13, %v8605_v26 }
 0x1cc   : > { %1211 = vrot.lane.b32.xlu1 %v12073_v54, %s12003_s29  ;;  %1439 = vrot.lane.b32.xlu0 %v12074_v56, %s12001_s24  ;;  %12076 = vst [vmem:[#allocation122_spill] sm:$0xff] %v8921_v42  ;;  %v8926_v28 = vsel %vm1252_vm8, %v1291_v59, %v1292_v15  ;;  %v8935_v11 = vpop.permute.xlu1 %1207  ;;  %v1329_v47 = vrot.slane %v1323_v30, 2  ;;  %v1342_v54 = vmul.f32 %v8378_v24, %v8605_v26  ;;  %v12080_v30 = vrot.slane %v8198_v5, 1 }
 0x1cd   : > { %v8931_v56 = vsel %vm1252_vm8, %v1292_v15, %v12077_v46  ;;  %v8937_v58 = vpop.permute.xlu0 %1437  ;;  %v8943_v60 = vmul.f32 %v8393_v7, %v8605_v26  ;;  %v1362_v35 = vmul.f32 %v8390_v13, %v8661_v63  ;;  %v548_v15 = vadd.f32 %v8251_v57, %v388_v55 }
 0x1ce   : > { %v8949_v59 = vsel %vm1252_vm8, %v1310_v38, %v1311_v10  ;;  %v1330_v46 = vrot.slane %v1324_v4, 2  ;;  %v8953_v36 = vmul.f32 %v8393_v7, %v8661_v63  ;;  %v12081_v26 = vrot.slane %v8182_v40, 2 }
 0x1cf   : > { %12078 = vst [vmem:[#allocation123_spill] sm:$0xff] %v8943_v60  ;;  %v12082_v48 = vrot.slane %v8872_v53, 2  ;;  %v1361_v4 = vmul.f32 %v8378_v24, %v8661_v63  ;;  %v1381_v55 = vmul.f32 %v8390_v13, %v8707_v17  ;;  %v389_v5 = vadd.f32 %v8077_v18, %v8580_v61 }
 0x1d0   : > { %12079 = vst [vmem:[#allocation124_spill] sm:$0xff] %v8953_v36  ;;  %1236 = vrot.lane.b32.xlu1 %v12080_v30, %s12003_s29  ;;  %1464 = vrot.lane.b32.xlu0 %v12081_v26, %s12001_s24  ;;  %v408_v40 = vadd.f32 %v8093_v34, %v8586_v22  ;;  %v1349_v30 = vrot.slane %v1343_v6, 2  ;;  %v8977_v26 = vmul.f32 %v8393_v7, %v8707_v17  ;;  %v1348_v38 = vrot.slane %v1342_v54, 2 }
 0x1d1   : > { %v8964_v57 = vsel %vm1252_vm8, %v1311_v10, %v12082_v48  ;;  %v8979_v48 = vpop.permute.xlu1 %1460  ;;  %v8981_v10 = vpop.permute.xlu0 %1209  ;;  %v11851_v63 = vrot.slane %v8943_v60, 2  ;;  %v1368_v53 = vrot.slane %v1362_v35, 2  ;;  %v1380_v13 = vmul.f32 %v8378_v24, %v8707_v17  ;;  %v12109_v60 = vld [vmem:[#allocation23_spill] sm:$0xff] }
 0x1d2   : > { %12083 = vst [vmem:[#allocation125_spill] sm:$0xff] %v8977_v26  ;;  %v568_v18 = vadd.f32 %v8267_v51, %v408_v40  ;;  %v549_v34 = vadd.f32 %v8269_v52, %v389_v5  ;;  %v708_v61 = vadd.f32 %v8710_v43, %v548_v15  ;;  %v11850_v22 = vrot.slane %v8953_v36, 2  ;;  %v12108_v36 = vld [vmem:[#allocation83_spill] sm:$0xff] }
 0x1d3   : > { %v12084_v7 = vrot.slane %v8230_v32, 2  ;;  %v12085_v6 = vrot.slane %v8214_v12, 2  ;;  %v8997_v54 = vsel %vm1252_vm8, %v1329_v47, %v1330_v46  ;;  %v12086_v24 = vrot.slane %v8921_v42, 2  ;;  %v12087_v12 = vld [vmem:[#allocation19_spill] sm:$0xff] }
 0x1d4   : > { %v1367_v52 = vrot.slane %v1361_v4, 2  ;;  %v1387_v17 = vrot.slane %v1381_v55, 2  ;;  %v866_v43 = vadd.f32 %v8381_v62, %v708_v61  ;;  %v9006_v35 = vsel %vm1252_vm8, %v1348_v38, %v1349_v30 }
 0x1d5   : > { %1614 = vrot.lane.b32.xlu1 %v12084_v7, %s12003_s29  ;;  %1489 = vrot.lane.b32.xlu0 %v12085_v6, %s12001_s24  ;;  %v9002_v51 = vsel %vm1252_vm8, %v1330_v46, %v12086_v24  ;;  %v11854_v32 = vrot.slane %v8977_v26, 2  ;;  %v409_v15 = vadd.f32 %v12087_v12, %v8583_v3  ;;  %v9011_v5 = vpop.permute.xlu1 %1232  ;;  %v9013_v47 = vpop.permute.xlu0 %1462  ;;  %v9020_v46 = vsel %vm1252_vm8, %v1349_v30, %v11851_v63  ;;  %v12089_v3 = vld [vmem:[#allocation69_spill] sm:$0xff]  ;;  %v12091_v7 = vld [vmem:[#allocation43_spill] sm:$0xff]  ;;  %v12092_v30 = vld [vmem:[#allocation40_spill] sm:$0xff] }
 0x1d6   : > { %v9023_v62 = vsel %vm1252_vm8, %v1367_v52, %v1368_v53  ;;  %v1386_v38 = vrot.slane %v1380_v13, 2  ;;  %v727_v4 = vadd.f32 %v8727_v31, %v568_v18  ;;  %v709_v55 = vadd.f32 %v8751_v19, %v549_v34  ;;  %v12094_v52 = vld [vmem:[#allocation38_spill] sm:$0xff]  ;;  %v12098_v12 = vld [vmem:[#allocation20_spill] sm:$0xff] }
 0x1d7   : > { %12088 = vst [vmem:[#allocation19_spill] sm:$0xff] %v9023_v62  ;;  %v1066_v40 = vadd.f32 %v12089_v3, %v866_v43  ;;  %v9031_v61 = vsel %vm1252_vm8, %v1368_v53, %v11850_v22  ;;  %v569_v6 = vadd.f32 %v12091_v7, %v409_v15  ;;  %v12093_v24 = vrot.slane %v12092_v30, 2  ;;  %v12097_v43 = vld [vmem:[#allocation80_spill] sm:$0xff]  ;;  %v12099_v3 = vld [vmem:[#allocation62_spill] sm:$0xff]  ;;  %v12100_v15 = vld [vmem:[#allocation63_spill] sm:$0xff] }
 0x1d8   : > { %12090 = vst [vmem:[#allocation69_spill] sm:$0xff] %v9031_v61  ;;  %v12095_v13 = vrot.slane %v12094_v52, 2  ;;  %v7698_v31 = vmov 1966171168   ;;  %v1812_v19 = vlaneseq  ;;  %v9041_v34 = vsel %vm1252_vm8, %v1386_v38, %v1387_v17  ;;  %v12103_v52 = vld [vmem:[#allocation21_spill] sm:$0xff]  ;;  %v12106_v63 = vld [vmem:[#allocation22_spill] sm:$0xff] }
 0x1d9   : > { %1514 = vrot.lane.b32.xlu1 %v12093_v24, %s12001_s24  ;;  %v1810_v18 = vunpack.c.l.s4 %v7698_v31  ;;  %12096 = vst [vmem:[#allocation43_spill] sm:$0xff] %v9041_v34  ;;  %v428_v53 = vadd.f32 %v12098_v12, %v12097_v43  ;;  %v891_v22 = vadd.f32 %v12099_v3, %v727_v4  ;;  %v867_v7 = vadd.f32 %v12100_v15, %v709_v55  ;;  %v12102_v24 = vld [vmem:[#allocation81_spill] sm:$0xff]  ;;  %v12105_v31 = vld [vmem:[#allocation82_spill] sm:$0xff]  ;;  %v12110_v12 = vld [vmem:[#allocation84_spill] sm:$0xff]  ;;  %v9066_v55 = vpop.permute.xlu1 %1485  ;;  %v9068_v15 = vpop.permute.xlu0 %1234 }
 0x1da   : > { %1639 = vrot.lane.b32.xlu0 %v12095_v13, %s12003_s29  ;;  %v9050_v30 = vsel %vm1252_vm8, %v1387_v17, %v11854_v32  ;;  %v9054_v13 = vadd.f32 %v12103_v52, %v12102_v24  ;;  %v9058_v38 = vadd.f32 %v12106_v63, %v12105_v31  ;;  %v429_v43 = vadd.f32 %v12109_v60, %v12108_v36  ;;  %v12111_v4 = vld [vmem:[#allocation24_spill] sm:$0xff]  ;;  %v12112_v17 = vld [vmem:[#allocation42_spill] sm:$0xff]  ;;  %v12113_v52 = vld [vmem:[#allocation71_spill] sm:$0xff] }
 0x1db   : > { %12101 = vst [vmem:[#allocation40_spill] sm:$0xff] %v9050_v30  ;;  %v9064_v3 = vadd.f32 %v12111_v4, %v12110_v12  ;;  %v588_v24 = vadd.f32 %v12112_v17, %v428_v53  ;;  %v1091_v32 = vadd.f32 %v12113_v52, %v891_v22  ;;  %v12114_v26 = vld [vmem:[#allocation72_spill] sm:$0xff]  ;;  %v1261_v31 = vadd.f32 %v8889_v50, %v1066_v40  ;;  %v12115_v36 = vld [vmem:[#allocation85_spill] sm:$0xff]  ;;  %v12122_v17 = vld [vmem:[#allocation86_spill] sm:$0xff] }
 0x1dc   : > { %12104 = vst [vmem:[#allocation38_spill] sm:$0xff] %v9054_v13  ;;  %12107 = vst [vmem:[#allocation80_spill] sm:$0xff] %v9058_v38  ;;  %v1067_v63 = vadd.f32 %v12114_v26, %v867_v7  ;;  %v12116_v60 = vld [vmem:[#allocation25_spill] sm:$0xff]  ;;  %v728_v12 = vadd.f32 %v8759_v29, %v569_v6  ;;  %v12117_v4 = vld [vmem:[#allocation44_spill] sm:$0xff]  ;;  %v1811_v53 = vunpack.c.0.s8 %v1810_v18  ;;  %v9085_v22 = vshrl.u32 %v1812_v19, 7 }
 0x1dd   : > { %v448_v42 = vadd.f32 %v12116_v60, %v12115_v36  ;;  %v12118_v9 = vrot.slane %v12117_v4, 2  ;;  %v12119_v38 = vld [vmem:[#allocation41_spill] sm:$0xff]  ;;  %v12123_v26 = vld [vmem:[#allocation26_spill] sm:$0xff]  ;;  %v12124_v50 = vld [vmem:[#allocation87_spill] sm:$0xff]  ;;  %v9109_v34 = vpop.permute.xlu0 %1487  ;;  %vm5267_vm7 = vcmask 1046534  }
 0x1de   : > { %v12120_v13 = vrot.slane %v12119_v38, 2  ;;  %12121 = vst [vmem:[#allocation20_spill] sm:$0xff] %v9085_v22  ;;  %v9089_v7 = vadd.f32 %v12123_v26, %v12122_v17  ;;  %v12125_v40 = vld [vmem:[#allocation27_spill] sm:$0xff]  ;;  %v12127_v29 = vld [vmem:[#allocation88_spill] sm:$0xff]  ;;  %v12130_v60 = vld [vmem:[#allocation89_spill] sm:$0xff]  ;;  %v9107_v17 = vstv %s9015_s1  ;;  %v1611_v26 = vpop.permute.xlu1 %1610 }
 0x1df   : > { %1539 = vrot.lane.b32.xlu1 %v12118_v9, %s12001_s24  ;;  %v9093_v52 = vadd.f32 %v12125_v40, %v12124_v50  ;;  %v12128_v6 = vld [vmem:[#allocation28_spill] sm:$0xff]  ;;  %v1419_v9 = vadd.f32 %v8852_v23, %v1261_v31  ;;  %v12131_v38 = vld [vmem:[#allocation29_spill] sm:$0xff]  ;;  %v12132_v18 = vld [vmem:[#allocation46_spill] sm:$0xff]  ;;  %12134 = vst [vmem:[#allocation81_spill] sm:$0xff] %v9107_v17  ;;  %v746_v50 = vadd.f32 %v8754_v37, %v588_v24 }
 0x1e0   : > { %1664 = vrot.lane.b32.xlu0 %v12120_v13, %s12003_s29  ;;  %v9097_v36 = vadd.f32 %v12128_v6, %v12127_v29  ;;  %v9102_v13 = vadd.f32 %v12131_v38, %v12130_v60  ;;  %v589_v19 = vadd.f32 %v12132_v18, %v429_v43  ;;  %v12133_v4 = vld [vmem:[#allocation66_spill] sm:$0xff]  ;;  %v1280_v40 = vadd.f32 %v8892_v44, %v1091_v32  ;;  %v12140_v37 = vld [vmem:[#allocation47_spill] sm:$0xff]  ;;  %vm5264_vm8 = vmor %vm5262_vm3, %vm5263_vm4 }
 0x1e1   : > { %12126 = vst [vmem:[#allocation62_spill] sm:$0xff] %v9093_v52  ;;  %v892_v30 = vadd.f32 %v12133_v4, %v728_v12  ;;  %v1262_v23 = vadd.f32 %v8903_v33, %v1067_v63  ;;  %v1619_v31 = vadd.f32 %v1611_v26, %v1419_v9  ;;  %v12135_v29 = vld [vmem:[#allocation90_spill] sm:$0xff]  ;;  %v9120_v12 = vsub.s32 %v1811_v53, %v9085_v22  ;;  %v12142_v33 = vld [vmem:[#allocation65_spill] sm:$0xff]  ;;  %v12144_v9 = vld [vmem:[#allocation31_spill] sm:$0xff] }
 0x1e2   : > { %12129 = vst [vmem:[#allocation63_spill] sm:$0xff] %v9097_v36  ;;  %v12136_v6 = vld [vmem:[#allocation30_spill] sm:$0xff]  ;;  %v12141_v44 = vrot.slane %v12140_v37, 2  ;;  %v916_v32 = vadd.f32 %v12142_v33, %v746_v50  ;;  %v1444_v24 = vadd.f32 %v8894_v27, %v1280_v40  ;;  %v12143_v53 = vld [vmem:[#allocation93_spill] sm:$0xff]  ;;  %v1636_v37 = vpop.permute.xlu1 %1635  ;;  %v1613_v50 = vpop.permute.xlu0 %1612 }
 0x1e3   : > { %v9116_v60 = vadd.f32 %v12136_v6, %v12135_v29  ;;  %v12137_v43 = vld [vmem:[#allocation74_spill] sm:$0xff]  ;;  %v1420_v63 = vadd.f32 %v8896_v2, %v1262_v23  ;;  %v9136_v26 = vadd.f32 %v12144_v9, %v12143_v53  ;;  %v12146_v6 = vld [vmem:[#allocation32_spill] sm:$0xff]  ;;  %v12150_v33 = vld [vmem:[#allocation33_spill] sm:$0xff] }
 0x1e4   : > { %v1092_v38 = vadd.f32 %v12137_v43, %v892_v30  ;;  %v12138_v18 = vld [vmem:[#allocation50_spill] sm:$0xff]  ;;  %1689 = vrot.lane.b32.xlu0 %v12141_v44, %s12003_s29  ;;  %v1799_v30 = vadd.f32 %v9107_v17, %v1619_v31  ;;  %v12148_v44 = vld [vmem:[#allocation76_spill] sm:$0xff]  ;;  %v1644_v2 = vadd.f32 %v1636_v37, %v1444_v24  ;;  %v12149_v31 = vld [vmem:[#allocation95_spill] sm:$0xff] }
 0x1e5   : > { %v12139_v4 = vrot.slane %v12138_v18, 2  ;;  %v12145_v29 = vld [vmem:[#allocation94_spill] sm:$0xff]  ;;  %v747_v18 = vadd.f32 %v8771_v8, %v589_v19  ;;  %v1116_v27 = vadd.f32 %v12148_v44, %v916_v32  ;;  %v1620_v23 = vadd.f32 %v1613_v50, %v1420_v63  ;;  %v12152_v9 = vld [vmem:[#allocation68_spill] sm:$0xff]  ;;  %v12157_v32 = vld [vmem:[#allocation97_spill] sm:$0xff] }
 0x1e6   : > { %v9140_v43 = vadd.f32 %v12146_v6, %v12145_v29  ;;  %v9147_v40 = vmax.f32 %v1799_v30, 0.0  ;;  %v9151_v53 = vadd.f32 %v12150_v33, %v12149_v31  ;;  %v1281_v29 = vadd.f32 %v8916_v20, %v1092_v38  ;;  %v12153_v8 = vld [vmem:[#allocation56_spill] sm:$0xff]  ;;  %v12155_v6 = vld [vmem:[#allocation53_spill] sm:$0xff]  ;;  %v12158_v24 = vld [vmem:[#allocation35_spill] sm:$0xff] }
 0x1e7   : > { %1564 = vrot.lane.b32.xlu1 %v12139_v4, %s12001_s24  ;;  %v9144_v4 = vstv %s9070_s2  ;;  %v917_v52 = vadd.f32 %v12152_v9, %v747_v18  ;;  %v12154_v19 = vrot.slane %v12153_v8, 2  ;;  %v12156_v36 = vrot.slane %v12155_v6, 2  ;;  %v12159_v38 = vld [vmem:[#allocation98_spill] sm:$0xff]  ;;  %v12160_v37 = vld [vmem:[#allocation36_spill] sm:$0xff]  ;;  %v12161_v44 = vld [vmem:[#allocation99_spill] sm:$0xff]  ;;  %v1638_v6 = vpop.permute.xlu0 %1637 }
 0x1e8   : > { %12147 = vst [vmem:[#allocation21_spill] sm:$0xff] %v9144_v4  ;;  %12151 = vst [vmem:[#allocation82_spill] sm:$0xff] %v9151_v53  ;;  %v9165_v63 = vadd.f32 %v12158_v24, %v12157_v32  ;;  %v1815_v30 = vrot.slane %v9147_v40, %v9120_v12  ;;  %v1960_v18 = vadd.f32 %v9144_v4, %v1644_v2  ;;  %v12163_v33 = vld [vmem:[#allocation79_spill] sm:$0xff]  ;;  %v12164_v32 = vld [vmem:[#allocation45_spill] sm:$0xff] }
 0x1e9   : > { %1714 = vrot.lane.b32.xlu0 %v12156_v36, %s12003_s29  ;;  %v1800_v20 = vadd.f32 %v9107_v17, %v1620_v23  ;;  %v9173_v50 = vadd.f32 %v12160_v37, %v12159_v38  ;;  %v12162_v36 = vld [vmem:[#allocation37_spill] sm:$0xff]  ;;  %v1117_v9 = vadd.f32 %v12163_v33, %v917_v52  ;;  %v1445_v8 = vadd.f32 %v8937_v58, %v1281_v29  ;;  %v12167_v52 = vld [vmem:[#allocation59_spill] sm:$0xff] }
 0x1ea   : > { %v9177_v31 = vadd.f32 %v12162_v36, %v12161_v44  ;;  %v608_v2 = vadd.f32 %v12164_v32, %v448_v42  ;;  %v1299_v24 = vadd.f32 %v8926_v28, %v1116_v27  ;;  %v1823_v23 = vcombine.high %v1815_v30, %v1815_v30  ;;  %v12165_v44 = vld [vmem:[#allocation61_spill] sm:$0xff] }
 0x1eb   : > { %1589 = vrot.lane.b32.xlu1 %v12154_v19, %s12001_s24  ;;  %v9181_v19 = vpop.permute.xlu1 %1510  ;;  %v9185_v17 = vmax.f32 %v1960_v18, 0.0  ;;  %v9187_v38 = vmax.f32 %v1800_v20, 0.0  ;;  %v1645_v37 = vadd.f32 %v1638_v6, %v1445_v8  ;;  %v12166_v36 = vrot.slane %v12165_v44, 2  ;;  %v12170_v33 = vld [vmem:[#allocation49_spill] sm:$0xff]  ;;  %s9296_s24 = sld [smem:[#allocation7 + $0x4]] }
 0x1ec   : > { %v12168_v58 = vrot.slane %v12167_v52, 2  ;;  %v9196_v29 = vstv %s9128_s18  ;;  %v9199_v42 = vsub.s32 0, %v9085_v22  ;;  %v1469_v28 = vadd.f32 %v8979_v48, %v1299_v24  ;;  %v9214_v24 = vpop.permute.xlu0 %1512 }
 0x1ed   : > { %12169 = vst [vmem:[#allocation22_spill] sm:$0xff] %v9196_v29  ;;  %v1831_v27 = vrot.slane %v1815_v30, %v9120_v12  ;;  %v1976_v18 = vrot.slane %v9185_v17, %v9120_v12  ;;  %v9206_v20 = vrot.slane %v1823_v23, %v9120_v12  ;;  %v609_v8 = vadd.f32 %v12170_v33, %v9064_v3  ;;  %v12171_v30 = vld [vmem:[#allocation48_spill] sm:$0xff] }
 0x1ee   : > { %1739 = vrot.lane.b32.xlu0 %v12168_v58, %s12003_s29  ;;  %v1300_v6 = vadd.f32 %v8931_v56, %v1117_v9  ;;  %v1864_v32 = vrot.slane %v9187_v38, %v9120_v12  ;;  %v1961_v44 = vadd.f32 %v9144_v4, %v1645_v37  ;;  %v765_v52 = vadd.f32 %v8766_v25, %v608_v2  ;;  %v12172_v9 = vld [vmem:[#allocation64_spill] sm:$0xff] }
 0x1ef   : > { %1764 = vrot.lane.b32.xlu1 %v12166_v36, %s12003_s29  ;;  %v1661_v48 = vpop.permute.xlu1 %1660  ;;  %v628_v36 = vadd.f32 %v12171_v30, %v9089_v7  ;;  %v1984_v23 = vcombine.high %v1976_v18, %v1976_v18  ;;  %v1992_v3 = vrot.slane %v1976_v18, %v9120_v12  ;;  %v12173_v33 = vrot.slane %v12172_v9, 2 }
 0x1f0   : > { %v1669_v58 = vadd.f32 %v1661_v48, %v1469_v28  ;;  %v1470_v22 = vadd.f32 %v9013_v47, %v1300_v6  ;;  %v9221_v56 = vmax.f32 %v1961_v44, 0.0  ;;  %v9227_v37 = vstv %s9161_s20  ;;  %v1663_v44 = vpop.permute.xlu0 %1662 }
 0x1f1   : > { %12174 = vst [vmem:[#allocation83_spill] sm:$0xff] %v9227_v37  ;;  %v1853_v53 = vcombine.high %v1831_v27, %v1831_v27  ;;  %v1946_v7 = vmax.f32 %v1831_v27, %v9206_v20  ;;  %v9232_v25 = vrot.slane %v1984_v23, %v9120_v12  ;;  %v766_v47 = vadd.f32 %v8778_v1, %v609_v8  ;;  %v12178_v8 = vld [vmem:[#allocation67_spill] sm:$0xff] }
 0x1f2   : > { %1789 = vrot.lane.b32.xlu0 %v12173_v33, %s12003_s29  ;;  %v2121_v4 = vadd.f32 %v9196_v29, %v1669_v58  ;;  %v1872_v2 = vcombine.high %v1864_v32, %v1864_v32  ;;  %v9236_v28 = vrot.slane %v1864_v32, %v9120_v12  ;;  %v2025_v18 = vrot.slane %v9221_v56, %v9120_v12  ;;  %v12177_v58 = vld [vmem:[#allocation52_spill] sm:$0xff]  ;;  %s9339_s29 = sld [smem:[#allocation7 + $0x6]] }
 0x1f3   : > { %v9240_v6 = vpop.permute.xlu1 %1535  ;;  %v9243_v48 = vadd.f32 %v8781_v21, %v628_v36  ;;  %v1670_v27 = vadd.f32 %v1663_v44, %v1470_v22  ;;  %v1952_v23 = vmax.f32 %v1946_v7, %v1853_v53  ;;  %v629_v1 = vadd.f32 %v12177_v58, %v9102_v13  ;;  %v12182_v44 = vld [vmem:[#allocation91_spill] sm:$0xff] }
 0x1f4   : > { %12175 = vst [vmem:[#allocation23_spill] sm:$0xff] %v9236_v28  ;;  %12176 = vst [vmem:[#allocation84_spill] sm:$0xff] %v9240_v6  ;;  %v9245_v30 = vmax.f32 %v2121_v4, 0.0  ;;  %v941_v9 = vadd.f32 %v12178_v8, %v765_v52  ;;  %v2014_v32 = vcombine.high %v1992_v3, %v1992_v3  ;;  %v2107_v33 = vmax.f32 %v1992_v3, %v9232_v25  ;;  %v9260_v53 = vpop.permute.xlu0 %1537  ;;  %v12181_v3 = vld [vmem:[#allocation51_spill] sm:$0xff] }
 0x1f5   : > { %v2033_v61 = vcombine.high %v2025_v18, %v2025_v18  ;;  %v2122_v62 = vadd.f32 %v9196_v29, %v1670_v27  ;;  %v9255_v21 = vrot.slane %v1952_v23, %v9199_v42  ;;  %v9258_v22 = vrot.slane %v2025_v18, %v9120_v12 }
 0x1f6   : > { %v2137_v6 = vrot.slane %v9245_v30, %v9120_v12  ;;  %v2113_v13 = vmax.f32 %v2107_v33, %v2014_v32  ;;  %v1894_v36 = vrot.slane %v1872_v2, %v9120_v12  ;;  %v1902_v52 = vcombine.high %v9236_v28, %v9236_v28  ;;  %v12184_v33 = vld [vmem:[#allocation55_spill] sm:$0xff] }
 0x1f7   : > { %12179 = vst [vmem:[#allocation24_spill] sm:$0xff] %v9255_v21  ;;  %12180 = vst [vmem:[#allocation42_spill] sm:$0xff] %v9258_v22  ;;  %v1686_v4 = vpop.permute.xlu1 %1685  ;;  %v648_v7 = vadd.f32 %v12181_v3, %v9136_v26  ;;  %v1141_v27 = vadd.f32 %v12182_v44, %v941_v9  ;;  %v9268_v23 = vmax.f32 %v2122_v62, 0.0  ;;  %3090 = vbcast.lane.b32.xlu1 %v9255_v21, 256  ;;  %v12185_v3 = vld [vmem:[#allocation70_spill] sm:$0xff] }
 0x1f8   : > { %v2145_v58 = vcombine.high %v2137_v6, %v2137_v6  ;;  %v785_v18 = vadd.f32 %v8797_v39, %v629_v1  ;;  %v2153_v8 = vrot.slane %v2137_v6, %v9120_v12  ;;  %v9274_v32 = vrot.slane %v2113_v13, %v9199_v42  ;;  %v1688_v6 = vpop.permute.xlu0 %1687 }
 0x1f9   : > { %v1904_v2 = vcombine.high %v1894_v36, %v1894_v36  ;;  %v649_v29 = vadd.f32 %v12184_v33, %v9116_v60  ;;  %v2186_v26 = vrot.slane %v9268_v23, %v9120_v12  ;;  %v1949_v9 = vmax.f32 %v1894_v36, %v1902_v52 }
 0x1fa   : > { %12183 = vst [vmem:[#allocation71_spill] sm:$0xff] %v9274_v32  ;;  %v2055_v62 = vrot.slane %v2033_v61, %v9120_v12  ;;  %v942_v44 = vadd.f32 %v12185_v3, %v766_v47  ;;  %v1857_v39 = vcombine.high %v9187_v38, %v9187_v38  ;;  %v2063_v13 = vcombine.high %v9258_v22, %v9258_v22  ;;  %v12187_v38 = vld [vmem:[#allocation104_spill] sm:$0xff] }
 0x1fb   : > { %v9284_v1 = vpop.permute.xlu1 %1560  ;;  %v9289_v28 = vrot.slane %v2145_v58, %v9120_v12  ;;  %v9292_v60 = vadd.f32 %v8816_v45, %v648_v7  ;;  %v1318_v36 = vadd.f32 %v8949_v59, %v1141_v27  ;;  %v2194_v61 = vcombine.high %v2186_v26, %v2186_v26  ;;  %3180 = vbcast.lane.b32.xlu1 %v9274_v32, 256  ;;  %v12190_v27 = vld [vmem:[#allocation54_spill] sm:$0xff] }
 0x1fc   : > { %12186 = vst [vmem:[#allocation72_spill] sm:$0xff] %v9284_v1  ;;  %v1955_v47 = vmax.f32 %v1949_v9, %v1904_v2  ;;  %v1142_v52 = vadd.f32 %v12187_v38, %v942_v44  ;;  %v1808_v33 = vcombine.high %v9147_v40, %v9147_v40  ;;  %v2065_v3 = vcombine.high %v2055_v62, %v2055_v62  ;;  %v9316_v38 = vpop.permute.xlu0 %1562 }
 0x1fd   : > { %v2175_v22 = vcombine.high %v2153_v8, %v2153_v8  ;;  %v9302_v58 = vrot.slane %v2186_v26, %v9120_v12  ;;  %v2110_v59 = vmax.f32 %v2055_v62, %v2063_v13  ;;  %v2268_v7 = vmax.f32 %v2153_v8, %v9289_v28 }
 0x1fe   : > { %v9305_v45 = vrot.slane %v1955_v47, %v9199_v42  ;;  %v668_v2 = vadd.f32 %v12190_v27, %v9140_v43  ;;  %v9311_v9 = vadd.f32 %v8827_v16, %v649_v29  ;;  %v1871_v44 = vrot.slane %v1857_v39, %v9120_v12  ;;  %v12191_v47 = vld [vmem:[#allocation57_spill] sm:$0xff]  ;;  %v12192_v16 = vld [vmem:[#allocation58_spill] sm:$0xff] }
 0x1ff   : > { %12188 = vst [vmem:[#allocation85_spill] sm:$0xff] %v9302_v58  ;;  %v9314_v40 = vpop.permute.xlu1 %1710  ;;  %v2216_v26 = vrot.slane %v2194_v61, %v9120_v12  ;;  %v688_v1 = vadd.f32 %v12191_v47, %v9177_v31  ;;  %v1494_v62 = vadd.f32 %v9066_v55, %v1318_v36  ;;  %v2116_v8 = vmax.f32 %v2110_v59, %v2065_v3  ;;  %v12193_v39 = vld [vmem:[#allocation73_spill] sm:$0xff] }
 0x200   : > { %12189 = vst [vmem:[#allocation25_spill] sm:$0xff] %v9305_v45  ;;  %3135 = vbcast.lane.b32.xlu0 %v9305_v45, 256  ;;  %v2274_v43 = vmax.f32 %v2268_v7, %v2175_v22  ;;  %v669_v29 = vadd.f32 %v12192_v16, %v9165_v63  ;;  %v966_v13 = vadd.f32 %v12193_v39, %v9243_v48  ;;  %v12196_v63 = vld [vmem:[#allocation60_spill] sm:$0xff]  ;;  %v12197_v3 = vld [vmem:[#allocation77_spill] sm:$0xff] }
 0x201   : > { %v1822_v27 = vrot.slane %v1808_v33, %v9120_v12  ;;  %v1319_v61 = vadd.f32 %v8964_v57, %v1142_v52  ;;  %v1694_v31 = vadd.f32 %v1686_v4, %v1494_v62  ;;  %v9332_v55 = vrot.slane %v2116_v8, %v9199_v42  ;;  %v1713_v57 = vpop.permute.xlu0 %1712  ;;  %v12198_v52 = vld [vmem:[#allocation108_spill] sm:$0xff] }
 0x202   : > { %v9335_v36 = vrot.slane %v2274_v43, %v9199_v42  ;;  %v2224_v22 = vcombine.high %v9302_v58, %v9302_v58  ;;  %v689_v48 = vadd.f32 %v12196_v63, %v9173_v50  ;;  %v967_v33 = vadd.f32 %v12197_v3, %v785_v18  ;;  %v12200_v63 = vld [vmem:[#allocation112_spill] sm:$0xff] }
 0x203   : > { %12194 = vst [vmem:[#allocation44_spill] sm:$0xff] %v9332_v55  ;;  %v1873_v59 = vcombine.high %v1871_v44, %v1871_v44  ;;  %v9344_v7 = vpop.permute.xlu1 %1585  ;;  %v2226_v4 = vcombine.high %v2216_v26, %v2216_v26  ;;  %v1166_v47 = vadd.f32 %v12198_v52, %v966_v13  ;;  %v1495_v62 = vadd.f32 %v9109_v34, %v1319_v61 }
 0x204   : > { %12195 = vst [vmem:[#allocation41_spill] sm:$0xff] %v9335_v36  ;;  %3225 = vbcast.lane.b32.xlu0 %v9332_v55, 256  ;;  %v9350_v8 = vstv %s9296_s24  ;;  %3270 = vbcast.lane.b32.xlu1 %v9335_v36, 256  ;;  %v2271_v43 = vmax.f32 %v2216_v26, %v2224_v22  ;;  %v822_v50 = vadd.f32 %v8843_v14, %v668_v2  ;;  %s242_s24 = sand.u32 1, %s7682_s19  }
 0x205   : > { %12199 = vst [vmem:[#allocation86_spill] sm:$0xff] %v9350_v8  ;;  %v823_v18 = vadd.f32 %v8877_v41, %v669_v29  ;;  %v1969_v16 = vcombine.high %v9185_v17, %v9185_v17  ;;  %v1824_v39 = vcombine.high %v1822_v27, %v1822_v27  ;;  %v1167_v13 = vadd.f32 %v12200_v63, %v967_v33  ;;  %v9361_v58 = vpop.permute.xlu0 %1587  ;;  %v12207_v63 = vld [vmem:[#allocation103_spill] sm:$0xff]  ;;  %s7054_s23 = scalar_lea.sflag [#allocation5], %s242_s24 }
 0x206   : > { %v2282_v34 = vadd.f32 %v9227_v37, %v1694_v31  ;;  %v1695_v61 = vadd.f32 %v1688_v6, %v1495_v62  ;;  %v2277_v3 = vmax.f32 %v2271_v43, %v2226_v4  ;;  %v9364_v14 = vrot.slane %v1822_v27, %v9120_v12 }
 0x207   : > { %v9359_v52 = vpop.permute.xlu1 %1735  ;;  %v1855_v41 = vcombine.high %v9206_v20, %v9206_v20  ;;  %v1887_v17 = vrot.slane %v1871_v44, %v9120_v12  ;;  %v9370_v2 = vrot.slane %v1873_v59, %v9120_v12  ;;  %v841_v26 = vadd.f32 %v8880_v49, %v688_v1 }
 0x208   : > { %v842_v6 = vadd.f32 %v8886_v0, %v689_v48  ;;  %v1337_v29 = vadd.f32 %v8997_v54, %v1166_v47  ;;  %3094 = vbcast.lane.b32.xlu1 %v9255_v21, 264  ;;  %v9377_v31 = vstv %s9323_s27  ;;  %v1983_v27 = vrot.slane %v1969_v16, %v9120_v12  ;;  %v12206_v16 = vld [vmem:[#allocation92_spill] sm:$0xff]  ;;  %s7156_s27 = sshll.u32 %s242_s24, 2 }
 0x209   : > { %12201 = vst [vmem:[#allocation26_spill] sm:$0xff] %v9370_v2  ;;  %12202 = vst [vmem:[#allocation87_spill] sm:$0xff] %v9377_v31  ;;  %v9381_v22 = vrot.slane %v2277_v3, %v9199_v42  ;;  %v9384_v20 = vrot.slane %v1824_v39, %v9120_v12  ;;  %v1947_v44 = vmax.f32 %v1855_v41, %v9364_v14  ;;  %v9388_v1 = vmax.f32 %v2282_v34, 0.0  ;;  %v9400_v47 = vpop.permute.xlu0 %1737 }
 0x20a   : > { %v1338_v49 = vadd.f32 %v9002_v51, %v1167_v13  ;;  %v9391_v0 = vstv %s9339_s29  ;;  %v1950_v54 = vmax.f32 %v1887_v17, %v9370_v2  ;;  %v1519_v48 = vadd.f32 %v9181_v19, %v1337_v29  ;;  %v12205_v51 = vld [vmem:[#allocation78_spill] sm:$0xff]  ;;  %s7298_s29 = sshll.u32 %s7753_s22, 6  ;;  %s7701_s22 = smov [#allocation9]  }
 0x20b   : > { %12203 = vst [vmem:[#allocation27_spill] sm:$0xff] %v9381_v22  ;;  %12204 = vst [vmem:[#allocation88_spill] sm:$0xff] %v9391_v0  ;;  %v2283_v33 = vadd.f32 %v9227_v37, %v1695_v61  ;;  %3315 = vbcast.lane.b32.xlu0 %v9381_v22, 256  ;;  %v1953_v59 = vmax.f32 %v1947_v44, %v9384_v20  ;;  %v9398_v4 = vpop.permute.xlu1 %1760  ;;  %v1903_v62 = vcombine.high %v1887_v17, %v1887_v17  ;;  %v12209_v17 = vld [vmem:[#allocation109_spill] sm:$0xff]  ;;  %s11733_s17 = scalar_lea.hbm %s11780_s5, %s7298_s29  ;;  %s7624_s30 = sshll.u32 %s7701_s22, 4  ;;  %s7625_s30 = int_to_ptr.vmem [resolvable:$false] %s7624_s30 }
 0x20c   : > { %v991_v43 = vadd.f32 %v12205_v51, %v9292_v60  ;;  %v992_v39 = vadd.f32 %v12206_v16, %v9311_v9  ;;  %v1016_v13 = vadd.f32 %v12207_v63, %v822_v50  ;;  %v1520_v19 = vadd.f32 %v9214_v24, %v1338_v49  ;;  %3139 = vbcast.lane.b32.xlu1 %v9305_v45, 264  ;;  %s7626_s6 = scalar_lea.vmem %s7625_s30, 128 }
 0x20d   : > { %v1719_v34 = vadd.f32 %v9314_v40, %v1519_v48  ;;  %v9413_v61 = vrot.slane %v1953_v59, %v9199_v42  ;;  %v1956_v3 = vmax.f32 %v1950_v54, %v1903_v62  ;;  %v1985_v41 = vcombine.high %v1983_v27, %v1983_v27  ;;  %v12210_v40 = vld [vmem:[#allocation111_spill] sm:$0xff]  ;;  %v12211_v59 = vld [vmem:[#allocation114_spill] sm:$0xff] }
 0x20e   : > { %v2018_v60 = vcombine.high %v9221_v56, %v9221_v56  ;;  %v2298_v9 = vrot.slane %v9388_v1, %v9120_v12  ;;  %v9420_v50 = vrot.slane %v1983_v27, %v9120_v12  ;;  %v2016_v24 = vcombine.high %v9232_v25, %v9232_v25  ;;  %v9431_v56 = vpop.permute.xlu0 %1762  ;;  %v12212_v27 = vld [vmem:[#allocation120_spill] sm:$0xff] }
 0x20f   : > { %12208 = vst [vmem:[#allocation28_spill] sm:$0xff] %v9413_v61  ;;  %v1017_v29 = vadd.f32 %v12209_v17, %v823_v18  ;;  %v1041_v44 = vadd.f32 %v12210_v40, %v841_v26  ;;  %v9426_v49 = vmax.f32 %v2283_v33, 0.0  ;;  %v1720_v54 = vadd.f32 %v1713_v57, %v1520_v19  ;;  %3105 = vbcast.lane.b32.xlu0 %v9413_v61, 256  ;;  %v9429_v48 = vpop.permute.xlu1 %1785  ;;  %v12217_v40 = vld [vmem:[#allocation19_spill] sm:$0xff] }
 0x210   : > { %v1191_v62 = vadd.f32 %v12211_v59, %v991_v43  ;;  %v1192_v51 = vadd.f32 %v12212_v27, %v992_v39  ;;  %v1216_v16 = vadd.f32 %v8935_v11, %v1016_v13  ;;  %3184 = vbcast.lane.b32.xlu1 %v9274_v32, 264  ;;  %v2108_v25 = vmax.f32 %v2016_v24, %v9420_v50  ;;  %v12214_v43 = vld [vmem:[#allocation116_spill] sm:$0xff]  ;;  %v12219_v27 = vld [vmem:[#allocation69_spill] sm:$0xff] }
 0x211   : > { %v2179_v18 = vcombine.high %v9268_v23, %v9268_v23  ;;  %v2443_v57 = vadd.f32 %v9350_v8, %v1719_v34  ;;  %v9442_v26 = vrot.slane %v1956_v3, %v9199_v42  ;;  %v9445_v33 = vrot.slane %v1985_v41, %v9120_v12 }
 0x212   : > { %v1042_v39 = vadd.f32 %v12214_v43, %v842_v6  ;;  %v1217_v11 = vadd.f32 %v8981_v10, %v1017_v29  ;;  %v2032_v63 = vrot.slane %v2018_v60, %v9120_v12  ;;  %v2306_v13 = vcombine.high %v2298_v9, %v2298_v9  ;;  %v9458_v24 = vpop.permute.xlu0 %1787 }
 0x213   : > { %12213 = vst [vmem:[#allocation89_spill] sm:$0xff] %v9442_v26  ;;  %v1241_v19 = vadd.f32 %v9011_v5, %v1041_v44  ;;  %v2347_v23 = vrot.slane %v9426_v49, %v9120_v12  ;;  %v2444_v34 = vadd.f32 %v9350_v8, %v1720_v54  ;;  %3150 = vbcast.lane.b32.xlu0 %v9442_v26, 256  ;;  %v9456_v41 = vpop.permute.xlu1 %543  ;;  %v9465_v60 = vstv %s9409_s10  ;;  %s244_s10 = scalar_lea.vmem [#allocation9], %s7156_s27 }
 0x214   : > { %v2114_v3 = vmax.f32 %v2108_v25, %v9445_v33  ;;  %12215 = vst [vmem:[#allocation29_spill] sm:$0xff] %v9456_v41  ;;  %v1242_v10 = vadd.f32 %v9068_v15, %v1042_v39  ;;  %v2130_v6 = vcombine.high %v9245_v30, %v9245_v30  ;;  %v1356_v5 = vadd.f32 %v9006_v35, %v1191_v62  ;;  %s7067_s26 = sshll.u32 %s244_s10, 4  ;;  %s11735_s26 = int_to_ptr.vmem [resolvable:$true] %s7067_s26 }
 0x215   : > { %12216 = vst [vmem:[#allocation46_spill] sm:$0xff] %v9465_v60  ;;  %3229 = vbcast.lane.b32.xlu1 %v9332_v55, 264  ;;  %v9469_v17 = vrot.slane %v2179_v18, %v9120_v12  ;;  %v1357_v29 = vadd.f32 %v9020_v46, %v1192_v51  ;;  %v1375_v44 = vadd.f32 %v12217_v40, %v1216_v16  ;;  %v9473_v54 = vmax.f32 %v2443_v57, 0.0  ;;  %v12220_v18 = vld [vmem:[#allocation43_spill] sm:$0xff]  ;;  %s7620_s25 = scalar_lea.vmem %s11735_s26, 64  ;;  %p7627_p8 = scmp.lt.s32.totalorder %s11735_s26, %s7625_s30 }
 0x216   : > { %v2034_v59 = vcombine.high %v2032_v63, %v2032_v63  ;;  %v2314_v15 = vrot.slane %v2298_v9, %v9120_v12  ;;  %v9477_v30 = vrot.slane %v2114_v3, %v9199_v42  ;;  %v9480_v35 = vrot.slane %v2306_v13, %v9120_v12  ;;  %v9488_v51 = vpop.permute.xlu0 %563  ;;  %v12221_v9 = vld [vmem:[#allocation84_spill] sm:$0xff]  ;;  %p7621_p10 = scmp.ne.s32.totalorder %s11735_s26, %s7620_s25  ;;  %p7628_p11 = scmp.lt.s32.totalorder %s7626_s6, %s7620_s25 }
 0x217   : > { %v2355_v62 = vcombine.high %v2347_v23, %v2347_v23  ;;  %v1376_v25 = vadd.f32 %v12219_v27, %v1217_v11  ;;  %v1394_v43 = vadd.f32 %v12220_v18, %v1241_v19  ;;  %v9484_v39 = vmax.f32 %v2444_v34, 0.0  ;;  %v9486_v46 = vpop.permute.xlu1 %583  ;;  %v12222_v13 = vld [vmem:[#allocation40_spill] sm:$0xff] }
 0x218   : > { %12218 = vst [vmem:[#allocation66_spill] sm:$0xff] %v9477_v30  ;;  %v2144_v16 = vrot.slane %v2130_v6, %v9120_v12  ;;  %v1544_v57 = vadd.f32 %v12221_v9, %v1356_v5  ;;  %v9493_v3 = vrot.slane %v2347_v23, %v9120_v12  ;;  %v1395_v40 = vadd.f32 %v12222_v13, %v1242_v10  ;;  %v12223_v34 = vld [vmem:[#allocation72_spill] sm:$0xff]  ;;  %p7622_p0 = pnand %p7621_p10, %p12424_p12  ;;  %p7629_p13 = por %p7628_p11, %p7627_p8 }
 0x219   : > { %3195 = vbcast.lane.b32.xlu0 %v9477_v30, 256  ;;  %v2195_v11 = vcombine.high %v9469_v17, %v9469_v17  ;;  %v1545_v19 = vadd.f32 %v9260_v53, %v1357_v29  ;;  %v1569_v27 = vadd.f32 %v12223_v34, %v1375_v44  ;;  %v2459_v18 = vrot.slane %v9473_v54, %v9120_v12 }
 0x21a   : > { %v2336_v6 = vcombine.high %v2314_v15, %v2314_v15  ;;  %v2429_v5 = vmax.f32 %v2314_v15, %v9480_v35  ;;  %v2048_v23 = vrot.slane %v2032_v63, %v9120_v12  ;;  %v9506_v9 = vrot.slane %v2034_v59, %v9120_v12  ;;  %v9516_v34 = vpop.permute.xlu0 %603  ;;  %p7623_p7 = pneg %p7622_p0 }
 0x21b   : > { %v1570_v13 = vadd.f32 %v9316_v38, %v1376_v25  ;;  %v2508_v53 = vrot.slane %v9484_v39, %v9120_v12  ;;  %v2377_v29 = vrot.slane %v2355_v62, %v9120_v12  ;;  %v9514_v44 = vpop.permute.xlu1 %623  ;;  %v2385_v59 = vcombine.high %v9493_v3, %v9493_v3 }
 0x21c   : > { %12224 = vst [vmem:[#allocation90_spill] sm:$0xff] %v9506_v9  ;;  %v2435_v15 = vmax.f32 %v2429_v5, %v2336_v6  ;;  %v2064_v2 = vcombine.high %v2048_v23, %v2048_v23  ;;  %v2111_v63 = vmax.f32 %v2048_v23, %v9506_v9  ;;  %v2340_v10 = vcombine.high %v9426_v49, %v9426_v49  ;;  %v12245_v9 = vld [vmem:[#allocation38_spill] sm:$0xff]  ;;  %p7630_p1 = pnand %p7629_p13, %p7623_p7 }
 0x21d   : > { %v1744_v38 = vadd.f32 %v9359_v52, %v1544_v57  ;;  %v1745_v25 = vadd.f32 %v9400_v47, %v1545_v19  ;;  %v2387_v41 = vcombine.high %v2377_v29, %v2377_v29  ;;  %v2467_v62 = vcombine.high %v2459_v18, %v2459_v18 }
 0x21e   : > { %v9526_v55 = vrot.slane %v2435_v15, %v9199_v42  ;;  %v2117_v45 = vmax.f32 %v2111_v63, %v2064_v2  ;;  %v2432_v6 = vmax.f32 %v2377_v29, %v2385_v59  ;;  %v2475_v5 = vrot.slane %v2459_v18, %v9120_v12  ;;  %v9532_v49 = vpop.permute.xlu0 %643 }
 0x21f   : > { %v1594_v23 = vadd.f32 %v9344_v7, %v1394_v43  ;;  %v2516_v32 = vcombine.high %v2508_v53, %v2508_v53  ;;  %v2146_v21 = vcombine.high %v2144_v16, %v2144_v16  ;;  %v9530_v8 = vpop.permute.xlu1 %861  ;;  %v9539_v57 = vrot.slane %v2144_v16, %v9120_v12 }
 0x220   : > { %12225 = vst [vmem:[#allocation30_spill] sm:$0xff] %v9526_v55  ;;  %12226 = vst [vmem:[#allocation74_spill] sm:$0xff] %v9530_v8  ;;  %3360 = vbcast.lane.b32.xlu1 %v9526_v55, 256  ;;  %v9536_v52 = vrot.slane %v2117_v45, %v9199_v42  ;;  %v2438_v47 = vmax.f32 %v2432_v6, %v2387_v41  ;;  %v2177_v2 = vcombine.high %v9289_v28, %v9289_v28 }
 0x221   : > { %12228 = vst [vmem:[#allocation47_spill] sm:$0xff] %v9539_v57  ;;  %v9544_v7 = vrot.slane %v2508_v53, %v9120_v12  ;;  %v2604_v43 = vadd.f32 %v9377_v31, %v1744_v38  ;;  %v1769_v19 = vadd.f32 %v9398_v4, %v1569_v27  ;;  %v2605_v18 = vadd.f32 %v9377_v31, %v1745_v25 }
 0x222   : > { %12227 = vst [vmem:[#allocation50_spill] sm:$0xff] %v9536_v52  ;;  %v1794_v29 = vadd.f32 %v9429_v48, %v1594_v23  ;;  %3240 = vbcast.lane.b32.xlu0 %v9536_v52, 256  ;;  %v9552_v45 = vrot.slane %v2146_v21, %v9120_v12  ;;  %v2269_v41 = vmax.f32 %v2177_v2, %v9539_v57  ;;  %v9569_v21 = vpop.permute.xlu0 %886 }
 0x223   : > { %12229 = vst [vmem:[#allocation65_spill] sm:$0xff] %v9544_v7  ;;  %v9556_v28 = vrot.slane %v2467_v62, %v9120_v12  ;;  %v1770_v16 = vadd.f32 %v9431_v56, %v1570_v13  ;;  %v9560_v53 = vrot.slane %v2438_v47, %v9199_v42  ;;  %v2209_v4 = vrot.slane %v9469_v17, %v9120_v12  ;;  %v9567_v27 = vpop.permute.xlu1 %663 }
 0x224   : > { %12230 = vst [vmem:[#allocation93_spill] sm:$0xff] %v9552_v45  ;;  %v9565_v48 = vrot.slane %v2195_v11, %v9120_v12  ;;  %3274 = vbcast.lane.b32.xlu1 %v9335_v36, 264  ;;  %v2275_v15 = vmax.f32 %v2269_v41, %v9552_v45  ;;  %v2497_v63 = vcombine.high %v2475_v5, %v2475_v5  ;;  %v2607_v62 = vmax.f32 %v2604_v43, 0.0 }
 0x225   : > { %12231 = vst [vmem:[#allocation31_spill] sm:$0xff] %v9560_v53  ;;  %v2590_v56 = vmax.f32 %v2475_v5, %v9556_v28  ;;  %v2538_v13 = vrot.slane %v2516_v32, %v9120_v12  ;;  %v1595_v59 = vadd.f32 %v9361_v58, %v1395_v40  ;;  %v2765_v17 = vadd.f32 %v9391_v0, %v1769_v19 }
 0x226   : > { %12232 = vst [vmem:[#allocation94_spill] sm:$0xff] %v9565_v48  ;;  %v2272_v11 = vmax.f32 %v2209_v4, %v9565_v48  ;;  %v2546_v38 = vcombine.high %v9544_v7, %v9544_v7  ;;  %v2501_v25 = vcombine.high %v9484_v39, %v9484_v39  ;;  %3405 = vbcast.lane.b32.xlu0 %v9560_v53, 256  ;;  %v2608_v5 = vmax.f32 %v2605_v18, 0.0  ;;  %v9588_v2 = vpop.permute.xlu0 %911  ;;  %v12234_v18 = vld [vmem:[#allocation34_spill] sm:$0xff] }
 0x227   : > { %v2596_v6 = vmax.f32 %v2590_v56, %v2497_v63  ;;  %v2225_v23 = vcombine.high %v2209_v4, %v2209_v4  ;;  %v2926_v32 = vadd.f32 %v9465_v60, %v1794_v29  ;;  %v2766_v58 = vadd.f32 %v9391_v0, %v1770_v16  ;;  %v9586_v47 = vpop.permute.xlu1 %683  ;;  %v12233_v4 = vld [vmem:[#allocation96_spill] sm:$0xff] }
 0x228   : > { %v1795_v40 = vadd.f32 %v9458_v24, %v1595_v59  ;;  %3319 = vbcast.lane.b32.xlu1 %v9381_v22, 264  ;;  %v9592_v39 = vrot.slane %v2275_v15, %v9199_v42  ;;  %v2548_v19 = vcombine.high %v2538_v13, %v2538_v13  ;;  %v2593_v41 = vmax.f32 %v2538_v13, %v2546_v38  ;;  %v12236_v38 = vld [vmem:[#allocation39_spill] sm:$0xff] }
 0x229   : > { %v2278_v43 = vmax.f32 %v2272_v11, %v2225_v23  ;;  %v9596_v63 = vadd.f32 %v12234_v18, %v12233_v4  ;;  %v9599_v29 = vrot.slane %v2340_v10, %v9120_v12  ;;  %v2452_v24 = vcombine.high %v9473_v54, %v9473_v54  ;;  %v12235_v11 = vld [vmem:[#allocation100_spill] sm:$0xff] }
 0x22a   : > { %v2768_v16 = vmax.f32 %v2765_v17, 0.0  ;;  %v9604_v56 = vrot.slane %v2501_v25, %v9120_v12  ;;  %v2613_v59 = vcombine.high %v2607_v62, %v2607_v62  ;;  %v2620_v15 = vrot.slane %v2607_v62, %v9120_v12  ;;  %3285 = vbcast.lane.b32.xlu0 %v9592_v39, 256  ;;  %v9620_v25 = vpop.permute.xlu0 %936 }
 0x22b   : > { %v9609_v13 = vrot.slane %v2596_v6, %v9199_v42  ;;  %v9613_v23 = vadd.f32 %v12236_v38, %v12235_v11  ;;  %v2662_v10 = vcombine.high %v2608_v5, %v2608_v5  ;;  %v9615_v4 = vmax.f32 %v2926_v32, 0.0  ;;  %v9618_v17 = vpop.permute.xlu1 %1061 }
 0x22c   : > { %v2927_v54 = vadd.f32 %v9465_v60, %v1795_v40  ;;  %12238 = vst [vmem:[#allocation76_spill] sm:$0xff] %v9618_v17  ;;  %v12239_v62 = vcombine.high %v9388_v1, %v9388_v1  ;;  %v2769_v6 = vmax.f32 %v2766_v58, 0.0  ;;  %v9628_v11 = vrot.slane %v2278_v43, %v9199_v42 }
 0x22d   : > { %12237 = vst [vmem:[#allocation32_spill] sm:$0xff] %v9615_v4  ;;  %3450 = vbcast.lane.b32.xlu1 %v9609_v13, 256  ;;  %v2599_v38 = vmax.f32 %v2593_v41, %v2548_v19  ;;  %v2356_v32 = vcombine.high %v9599_v29, %v9599_v29  ;;  %v2774_v40 = vcombine.high %v2768_v16, %v2768_v16 }
 0x22e   : > { %v2305_v18 = vrot.slane %v12239_v62, %v9120_v12  ;;  %v9633_v17 = vrot.slane %v2768_v16, %v9120_v12  ;;  %v2669_v8 = vrot.slane %v2608_v5, %v9120_v12  ;;  %v9637_v22 = vrot.slane %v2452_v24, %v9120_v12  ;;  %3330 = vbcast.lane.b32.xlu0 %v9628_v11, 256  ;;  %v9655_v62 = vpop.permute.xlu0 %1086 }
 0x22f   : > { %v9642_v58 = vrot.slane %v2613_v59, %v9120_v12  ;;  %v2628_v43 = vcombine.high %v2620_v15, %v2620_v15  ;;  %v2636_v19 = vrot.slane %v2620_v15, %v9120_v12  ;;  %v9647_v41 = vrot.slane %v2662_v10, %v9120_v12  ;;  %v9653_v16 = vpop.permute.xlu1 %961 }
 0x230   : > { %v9651_v5 = vrot.slane %v9615_v4, %v9120_v12  ;;  %v2930_v24 = vmax.f32 %v2927_v54, 0.0  ;;  %v2823_v1 = vcombine.high %v2769_v6, %v2769_v6  ;;  %v9658_v59 = vrot.slane %v2769_v6, %v9120_v12 }
 0x231   : > { %12240 = vst [vmem:[#allocation95_spill] sm:$0xff] %v9647_v41  ;;  %3109 = vbcast.lane.b32.xlu1 %v9413_v61, 264  ;;  %v9662_v15 = vrot.slane %v2599_v38, %v9199_v42  ;;  %v2338_v10 = vcombine.high %v9480_v35, %v9480_v35  ;;  %v9667_v36 = vrot.slane %v2774_v40, %v9120_v12 }
 0x232   : > { %v9673_v4 = vrot.slane %v9633_v17, %v9120_v12  ;;  %v2677_v6 = vcombine.high %v2669_v8, %v2669_v8  ;;  %v9676_v60 = vrot.slane %v2669_v8, %v9120_v12  ;;  %v2307_v38 = vcombine.high %v2305_v18, %v2305_v18  ;;  %v9695_v48 = vpop.permute.xlu0 %1111 }
 0x233   : > { %12241 = vst [vmem:[#allocation33_spill] sm:$0xff] %v9662_v15  ;;  %3495 = vbcast.lane.b32.xlu0 %v9662_v15, 256  ;;  %v9680_v61 = vrot.slane %v2305_v18, %v9120_v12  ;;  %v9683_v35 = vrot.slane %v2628_v43, %v9120_v12  ;;  %v9691_v31 = vrot.slane %v9651_v5, %v9120_v12  ;;  %v9693_v0 = vpop.permute.xlu1 %986 }
 0x234   : > { %v2984_v8 = vcombine.high %v2930_v24, %v2930_v24  ;;  %v9698_v18 = vrot.slane %v2823_v1, %v9120_v12  ;;  %v9705_v54 = vrot.slane %v2356_v32, %v9120_v12  ;;  %v9709_v37 = vrot.slane %v9658_v59, %v9120_v12 }
 0x235   : > { %12242 = vst [vmem:[#allocation68_spill] sm:$0xff] %v9691_v31  ;;  %3199 = vbcast.lane.b32.xlu1 %v9477_v30, 264  ;;  %v2430_v40 = vmax.f32 %v2338_v10, %v9680_v61  ;;  %v570_v7 = vadd.f32 %v9488_v51, %v12245_v9  ;;  %v1854_v1 = vcombine.high %v9364_v14, %v9364_v14  ;;  %v12247_v14 = vld [vmem:[#allocation80_spill] sm:$0xff]  ;;  %v12249_v31 = vld [vmem:[#allocation62_spill] sm:$0xff] }
 0x236   : > { %12243 = vst [vmem:[#allocation56_spill] sm:$0xff] %v9698_v18  ;;  %12244 = vst [vmem:[#allocation53_spill] sm:$0xff] %v9705_v54  ;;  %v1856_v43 = vcombine.high %v9384_v20, %v9384_v20  ;;  %v9718_v30 = vrot.slane %v2930_v24, %v9120_v12  ;;  %v9722_v32 = vrot.slane %v2307_v38, %v9120_v12  ;;  %v9734_v24 = vpop.permute.xlu0 %1136 }
 0x237   : > { %3154 = vbcast.lane.b32.xlu0 %v9442_v26, 264  ;;  %v2751_v10 = vmax.f32 %v2636_v19, %v9683_v35  ;;  %v2370_v57 = vrot.slane %v9599_v29, %v9120_v12  ;;  %v9728_v51 = vrot.slane %v2984_v8, %v9120_v12  ;;  %v590_v9 = vadd.f32 %v9486_v46, %v12247_v14  ;;  %v9732_v45 = vpop.permute.xlu1 %1011 }
 0x238   : > { %v2658_v20 = vcombine.high %v2636_v19, %v2636_v19  ;;  %v9736_v26 = vmax.f32 %v1854_v1, %v1856_v43  ;;  %v2436_v38 = vmax.f32 %v2430_v40, %v9722_v32  ;;  %v2699_v29 = vrot.slane %v2677_v6, %v9120_v12  ;;  %v12248_v19 = vld [vmem:[#allocation63_spill] sm:$0xff]  ;;  %v12250_v1 = vld [vmem:[#allocation102_spill] sm:$0xff]  ;;  %v12253_v40 = vld [vmem:[#allocation105_spill] sm:$0xff] }
 0x239   : > { %12246 = vst [vmem:[#allocation97_spill] sm:$0xff] %v9728_v51  ;;  %3364 = vbcast.lane.b32.xlu1 %v9526_v55, 264  ;;  %v2433_v41 = vmax.f32 %v2370_v57, %v9705_v54  ;;  %v2707_v8 = vcombine.high %v9676_v60, %v9676_v60  ;;  %v630_v14 = vadd.f32 %v9514_v44, %v12248_v19  ;;  %v12251_v55 = vrot.slane %v12250_v1, 1  ;;  %v12252_v19 = vld [vmem:[#allocation82_spill] sm:$0xff] }
 0x23a   : > { %v610_v43 = vadd.f32 %v9516_v34, %v12249_v31  ;;  %v9756_v6 = vrot.slane %v9718_v30, %v9120_v12  ;;  %v2757_v54 = vmax.f32 %v2751_v10, %v2658_v20  ;;  %v2386_v46 = vcombine.high %v2370_v57, %v2370_v57  ;;  %v9768_v1 = vpop.permute.xlu0 %1161 }
 0x23b   : > { %v729_v15 = vadd.f32 %v12251_v55, %v570_v7  ;;  %3244 = vbcast.lane.b32.xlu0 %v9536_v52, 264  ;;  %v650_v31 = vadd.f32 %v9532_v49, %v12252_v19  ;;  %v670_v55 = vadd.f32 %v9567_v27, %v9596_v63  ;;  %v9766_v7 = vpop.permute.xlu1 %1036  ;;  %v9772_v10 = vrot.slane %v2436_v38, %v9199_v42  ;;  %v12255_v19 = vld [vmem:[#allocation106_spill] sm:$0xff]  ;;  %v12257_v63 = vld [vmem:[#allocation107_spill] sm:$0xff] }
 0x23c   : > { %v2439_v57 = vmax.f32 %v2433_v41, %v2386_v46  ;;  %v2709_v20 = vcombine.high %v2699_v29, %v2699_v29  ;;  %v2754_v44 = vmax.f32 %v2699_v29, %v2707_v8  ;;  %v12254_v52 = vrot.slane %v12253_v40, 1  ;;  %v12262_v8 = vld [vmem:[#allocation110_spill] sm:$0xff] }
 0x23d   : > { %v893_v34 = vadd.f32 %v9569_v21, %v729_v15  ;;  %3409 = vbcast.lane.b32.xlu1 %v9560_v53, 264  ;;  %v12256_v51 = vrot.slane %v12255_v19, 1  ;;  %v12258_v21 = vrot.slane %v12257_v63, 1  ;;  %v2499_v18 = vcombine.high %v9556_v28, %v9556_v28 }
 0x23e   : > { %v748_v49 = vadd.f32 %v12254_v52, %v590_v9  ;;  %v690_v53 = vadd.f32 %v9586_v47, %v9613_v23  ;;  %v9786_v41 = vrot.slane %v2757_v54, %v9199_v42  ;;  %v12259_v52 = vcombine.high %v9633_v17, %v9633_v17  ;;  %v9804_v54 = vpop.permute.xlu0 %1186 }
 0x23f   : > { %v767_v27 = vadd.f32 %v12256_v51, %v610_v43  ;;  %v786_v15 = vadd.f32 %v12258_v21, %v630_v14  ;;  %3375 = vbcast.lane.b32.xlu0 %v9772_v10, 256  ;;  %v12260_v51 = vcombine.high %v9604_v56, %v9604_v56  ;;  %v1093_v47 = vadd.f32 %v9655_v62, %v893_v34  ;;  %v9802_v23 = vpop.permute.xlu1 %1414 }
 0x240   : > { %v9792_v9 = vrot.slane %v12259_v52, %v9120_v12  ;;  %v918_v28 = vadd.f32 %v9588_v2, %v748_v49  ;;  %12261 = vst [vmem:[#allocation35_spill] sm:$0xff] %v9802_v23  ;;  %v2468_v29 = vcombine.high %v9637_v22, %v9637_v22  ;;  %v9810_v17 = vrot.slane %v9637_v22, %v9120_v12 }
 0x241   : > { %v9798_v38 = vrot.slane %v12260_v51, %v9120_v12  ;;  %v12263_v46 = vrot.slane %v12262_v8, 1  ;;  %3540 = vbcast.lane.b32.xlu1 %v9786_v41, 256  ;;  %v9816_v2 = vrot.slane %v2439_v57, %v9199_v42  ;;  %v2760_v62 = vmax.f32 %v2754_v44, %v2709_v20  ;;  %v12265_v44 = vld [vmem:[#allocation113_spill] sm:$0xff] }
 0x242   : > { %v2531_v43 = vrot.slane %v9604_v56, %v9120_v12  ;;  %v943_v40 = vadd.f32 %v9620_v25, %v767_v27  ;;  %v2591_v34 = vmax.f32 %v2499_v18, %v9810_v17  ;;  %v12264_v22 = vcombine.high %v9658_v59, %v9658_v59  ;;  %v12267_v27 = vld [vmem:[#allocation115_spill] sm:$0xff]  ;;  %v1440_v8 = vpop.permute.xlu0 %1439 }
 0x243   : > { %v805_v14 = vadd.f32 %v12263_v46, %v650_v31  ;;  %v2868_v31 = vcombine.high %v9709_v37, %v9709_v37  ;;  %v1118_v19 = vadd.f32 %v9695_v48, %v918_v28  ;;  %3420 = vbcast.lane.b32.xlu0 %v9816_v2, 256  ;;  %v12266_v57 = vrot.slane %v12265_v44, 1  ;;  %v9841_v52 = vpop.permute.xlu1 %1211  ;;  %v12269_v48 = vld [vmem:[#allocation118_spill] sm:$0xff]  ;;  %v12271_v44 = vld [vmem:[#allocation119_spill] sm:$0xff] }
 0x244   : > { %v2860_v49 = vrot.slane %v12264_v22, %v9120_v12  ;;  %v2912_v56 = vmax.f32 %v9673_v4, %v9792_v9  ;;  %v2594_v25 = vmax.f32 %v2531_v43, %v9798_v38  ;;  %v968_v18 = vadd.f32 %v9653_v16, %v786_v15 }
 0x245   : > { %v824_v20 = vadd.f32 %v12266_v57, %v670_v55  ;;  %v12268_v59 = vrot.slane %v12267_v27, 1  ;;  %v9839_v21 = vrot.slane %v2468_v29, %v9120_v12  ;;  %v12270_v51 = vrot.slane %v12269_v48, 2  ;;  %3289 = vbcast.lane.b32.xlu1 %v9592_v39, 264 }
 0x246   : > { %v9846_v55 = vadd.f32 %v9693_v0, %v805_v14  ;;  %v9850_v46 = vrot.slane %v2760_v62, %v9199_v42  ;;  %v2547_v16 = vcombine.high %v2531_v43, %v2531_v43  ;;  %v2870_v29 = vcombine.high %v2860_v49, %v2860_v49 }
 0x247   : > { %v843_v63 = vadd.f32 %v12268_v59, %v690_v53  ;;  %v1282_v28 = vadd.f32 %v12270_v51, %v1093_v47  ;;  %v2819_v53 = vcombine.high %v9673_v4, %v9673_v4  ;;  %v2597_v15 = vmax.f32 %v2591_v34, %v9839_v21  ;;  %v9862_v59 = vpop.permute.xlu1 %1236  ;;  %v1465_v4 = vpop.permute.xlu0 %1464 }
 0x248   : > { %v2915_v22 = vmax.f32 %v2860_v49, %v2868_v31  ;;  %v2017_v47 = vcombine.high %v9445_v33, %v9445_v33  ;;  %3585 = vbcast.lane.b32.xlu0 %v9850_v46, 256  ;;  %v2600_v14 = vmax.f32 %v2594_v25, %v2547_v16  ;;  %v12272_v57 = vrot.slane %v12271_v44, 2 }
 0x249   : > { %v2918_v0 = vmax.f32 %v2912_v56, %v2819_v53  ;;  %v2660_v62 = vcombine.high %v9683_v35, %v9683_v35  ;;  %v2015_v43 = vcombine.high %v9420_v50, %v9420_v50  ;;  %v2629_v34 = vcombine.high %v9642_v58, %v9642_v58  ;;  %3454 = vbcast.lane.b32.xlu1 %v9609_v13, 264  ;;  %v12273_v35 = vld [vmem:[#allocation23_spill] sm:$0xff] }
 0x24a   : > { %v1301_v27 = vadd.f32 %v12272_v57, %v1118_v19  ;;  %v2337_v33 = vcombine.high %v9680_v61, %v9680_v61  ;;  %v2339_v49 = vcombine.high %v9722_v32, %v9722_v32  ;;  %v1143_v31 = vadd.f32 %v9734_v24, %v943_v40 }
 0x24b   : > { %v1954_v19 = vmax.f32 %v9736_v26, %v12273_v35  ;;  %v2643_v56 = vrot.slane %v9642_v58, %v9120_v12  ;;  %v12274_v50 = vcombine.high %v9651_v5, %v9651_v5  ;;  %v1168_v61 = vadd.f32 %v9768_v1, %v968_v18  ;;  %v9902_v18 = vpop.permute.xlu1 %1614  ;;  %v1490_v53 = vpop.permute.xlu0 %1489 }
 0x24c   : > { %v2921_v48 = vmax.f32 %v2915_v22, %v2870_v29  ;;  %v2109_v32 = vmax.f32 %v2015_v43, %v2017_v47  ;;  %v9885_v51 = vmax.f32 %v2337_v33, %v2339_v49  ;;  %v9888_v24 = vadd.f32 %v9732_v45, %v824_v20  ;;  %3334 = vbcast.lane.b32.xlu0 %v9628_v11, 264  ;;  %v12277_v22 = vld [vmem:[#allocation121_spill] sm:$0xff]  ;;  %v12289_v20 = vld [vmem:[#allocation123_spill] sm:$0xff] }
 0x24d   : > { %v9882_v25 = vrot.slane %v12274_v50, %v9120_v12  ;;  %v9892_v26 = vrot.slane %v2597_v15, %v9199_v42  ;;  %v2752_v58 = vmax.f32 %v2660_v62, %v2643_v56  ;;  %v2790_v5 = vcombine.high %v9667_v36, %v9667_v36  ;;  %12275 = vst [vmem:[#allocation98_spill] sm:$0xff] %v9902_v18  ;;  %v12276_v15 = vld [vmem:[#allocation33_spill] sm:$0xff]  ;;  %v12280_v62 = vld [vmem:[#allocation42_spill] sm:$0xff] }
 0x24e   : > { %v9897_v40 = vrot.slane %v2918_v0, %v9199_v42  ;;  %v9900_v1 = vrot.slane %v2600_v14, %v9199_v42  ;;  %v2657_v45 = vrot.slane %v2629_v34, %v9120_v12  ;;  %v9908_v16 = vadd.f32 %v9766_v7, %v843_v63  ;;  %3499 = vbcast.lane.b32.xlu1 %v12276_v15, 264  ;;  %v12279_v14 = vld [vmem:[#allocation68_spill] sm:$0xff]  ;;  %v12281_v34 = vld [vmem:[#allocation122_spill] sm:$0xff] }
 0x24f   : > { %v9912_v29 = vrot.slane %v1954_v19, %v9199_v42  ;;  %v12278_v47 = vrot.slane %v12277_v22, 2  ;;  %v3073_v44 = vmax.f32 %v12279_v14, %v9882_v25  ;;  %v9919_v57 = vrot.slane %v2921_v48, %v9199_v42  ;;  %v1515_v50 = vpop.permute.xlu1 %1514  ;;  %v1640_v48 = vpop.permute.xlu0 %1639 }
 0x250   : > { %v2115_v43 = vmax.f32 %v2109_v32, %v12280_v62  ;;  %v12282_v33 = vrot.slane %v12281_v34, 2  ;;  %v2980_v63 = vcombine.high %v12279_v14, %v12279_v14  ;;  %3465 = vbcast.lane.b32.xlu0 %v9892_v26, 256  ;;  %v1446_v49 = vadd.f32 %v1440_v8, %v1282_v28  ;;  %v12285_v62 = vld [vmem:[#allocation93_spill] sm:$0xff] }
 0x251   : > { %v1320_v0 = vadd.f32 %v12278_v47, %v1143_v31  ;;  %v2758_v35 = vmax.f32 %v2752_v58, %v2657_v45  ;;  %v9930_v31 = vrot.slane %v2790_v5, %v9120_v12  ;;  %v2500_v19 = vcombine.high %v9839_v21, %v9839_v21  ;;  %v12283_v58 = vld [vmem:[#allocation95_spill] sm:$0xff]  ;;  %v12286_v34 = vld [vmem:[#allocation21_spill] sm:$0xff] }
 0x252   : > { %v9924_v7 = vadd.f32 %v12282_v33, %v1168_v61  ;;  %v9936_v32 = vrot.slane %v9667_v36, %v9120_v12  ;;  %v2498_v61 = vcombine.high %v9810_v17, %v9810_v17  ;;  %v2659_v22 = vcombine.high %v2643_v56, %v2643_v56  ;;  %3630 = vbcast.lane.b32.xlu1 %v9897_v40, 256 }
 0x253   : > { %v2661_v47 = vcombine.high %v2657_v45, %v2657_v45  ;;  %v1646_v28 = vadd.f32 %v1640_v48, %v1446_v49  ;;  %v3079_v8 = vmax.f32 %v3073_v44, %v2980_v63  ;;  %v2692_v5 = vrot.slane %v12283_v58, %v9120_v12  ;;  %v12287_v63 = vld [vmem:[#allocation47_spill] sm:$0xff] }
 0x254   : > { %v12284_v21 = vcombine.high %v12283_v58, %v12283_v58  ;;  %v9950_v36 = vrot.slane %v2115_v43, %v9199_v42  ;;  %v2178_v17 = vcombine.high %v12285_v62, %v12285_v62  ;;  %v9954_v56 = vmax.f32 %v2498_v61, %v2500_v19  ;;  %3510 = vbcast.lane.b32.xlu0 %v9900_v1, 256  ;;  %v1540_v58 = vpop.permute.xlu1 %1539  ;;  %v12288_v19 = vld [vmem:[#allocation65_spill] sm:$0xff] }
 0x255   : > { %v9956_v45 = vmax.f32 %v2659_v22, %v2661_v47  ;;  %v1193_v44 = vadd.f32 %v9804_v54, %v9846_v55  ;;  %v1962_v33 = vadd.f32 %v12286_v34, %v1646_v28  ;;  %v2176_v49 = vcombine.high %v12287_v63, %v12287_v63 }
 0x256   : > { %v9947_v14 = vrot.slane %v12284_v21, %v9120_v12  ;;  %v2822_v43 = vcombine.high %v9930_v31, %v9930_v31  ;;  %v1471_v48 = vadd.f32 %v1465_v4, %v1301_v27  ;;  %v1665_v21 = vpop.permute.xlu0 %1664  ;;  %v2820_v54 = vcombine.high %v9936_v32, %v9936_v32  ;;  %3120 = vbcast.lane.b32.xlu1 %v9912_v29, 256 }
 0x257   : > { %v1965_v55 = vmax.f32 %v1962_v33, 0.0  ;;  %v9974_v47 = vrot.slane %v2758_v35, %v9199_v42  ;;  %v9977_v28 = vrot.slane %v3079_v8, %v9199_v42  ;;  %v2708_v27 = vcombine.high %v2692_v5, %v2692_v5 }
 0x258   : > { %v1671_v4 = vadd.f32 %v1665_v21, %v1471_v48  ;;  %v2755_v62 = vmax.f32 %v2692_v5, %v9947_v14  ;;  %v2270_v34 = vmax.f32 %v2176_v49, %v2178_v17  ;;  %v9980_v63 = vmax.f32 %v2820_v54, %v2822_v43  ;;  %3675 = vbcast.lane.b32.xlu0 %v9919_v57, 256  ;;  %v12292_v5 = vld [vmem:[#allocation22_spill] sm:$0xff] }
 0x259   : > { %v1496_v22 = vadd.f32 %v1490_v53, %v1320_v0  ;;  %v2073_v61 = vrot.slane %v1965_v55, %v9120_v12  ;;  %v12290_v33 = vrot.slane %v12289_v20, 2  ;;  %v12291_v35 = vcombine.high %v9718_v30, %v9718_v30  ;;  %v1565_v49 = vpop.permute.xlu1 %1564  ;;  %v12293_v21 = vld [vmem:[#allocation90_spill] sm:$0xff] }
 0x25a   : > { %v1218_v48 = vadd.f32 %v9841_v52, %v9888_v24  ;;  %v2123_v17 = vadd.f32 %v12292_v5, %v1671_v4  ;;  %v1690_v43 = vpop.permute.xlu0 %1689  ;;  %v3029_v53 = vcombine.high %v9756_v6, %v9756_v6  ;;  %3379 = vbcast.lane.b32.xlu1 %v9772_v10, 264  ;;  %v2066_v54 = vcombine.high %v12293_v21, %v12293_v21  ;;  %v12294_v4 = vld [vmem:[#allocation85_spill] sm:$0xff]  ;;  %v12295_v5 = vld [vmem:[#allocation83_spill] sm:$0xff] }
 0x25b   : > { %v1358_v18 = vadd.f32 %v12290_v33, %v1193_v44  ;;  %v3021_v8 = vrot.slane %v12291_v35, %v9120_v12  ;;  %v2074_v20 = vcombine.high %v2073_v61, %v2073_v61  ;;  %v2081_v44 = vrot.slane %v2073_v61, %v9120_v12 }
 0x25c   : > { %v1696_v30 = vadd.f32 %v1690_v43, %v1496_v22  ;;  %v1243_v52 = vadd.f32 %v9862_v59, %v9908_v16  ;;  %v2126_v24 = vmax.f32 %v2123_v17, 0.0  ;;  %v2761_v55 = vmax.f32 %v2755_v62, %v2708_v27  ;;  %3210 = vbcast.lane.b32.xlu0 %v9950_v36, 256  ;;  %v12296_v62 = vld [vmem:[#allocation124_spill] sm:$0xff] }
 0x25d   : > { %v2276_v33 = vmax.f32 %v2270_v34, %v12294_v4  ;;  %v1521_v35 = vadd.f32 %v1515_v50, %v9924_v7  ;;  %v10008_v23 = vrot.slane %v2074_v20, %v9120_v12  ;;  %v10010_v61 = vmax.f32 %v2066_v54, %v2081_v44  ;;  %v1590_v43 = vpop.permute.xlu1 %1589  ;;  %v12304_v20 = vld [vmem:[#allocation53_spill] sm:$0xff] }
 0x25e   : > { %v2284_v0 = vadd.f32 %v12295_v5, %v1696_v30  ;;  %v2234_v22 = vrot.slane %v2126_v24, %v9120_v12  ;;  %v1715_v21 = vpop.permute.xlu0 %1714  ;;  %v3031_v59 = vcombine.high %v3021_v8, %v3021_v8  ;;  %v3076_v16 = vmax.f32 %v3021_v8, %v3029_v53  ;;  %3544 = vbcast.lane.b32.xlu1 %v9786_v41, 264  ;;  %v12298_v8 = vld [vmem:[#allocation94_spill] sm:$0xff] }
 0x25f   : > { %v2821_v27 = vcombine.high %v9792_v9, %v9792_v9  ;;  %v12297_v7 = vrot.slane %v12296_v62, 2  ;;  %v1721_v17 = vadd.f32 %v1715_v21, %v1521_v35  ;;  %v10022_v54 = vrot.slane %v2761_v55, %v9199_v42  ;;  %v12301_v35 = vld [vmem:[#allocation86_spill] sm:$0xff] }
 0x260   : > { %v2287_v34 = vmax.f32 %v2284_v0, 0.0  ;;  %v2235_v44 = vcombine.high %v2234_v22, %v2234_v22  ;;  %v2242_v30 = vrot.slane %v2234_v22, %v9120_v12  ;;  %v2227_v53 = vcombine.high %v12298_v8, %v12298_v8  ;;  %3424 = vbcast.lane.b32.xlu0 %v9816_v2, 264 }
 0x261   : > { %v1377_v50 = vadd.f32 %v12297_v7, %v1218_v48  ;;  %v12299_v48 = vld [vmem:[#allocation125_spill] sm:$0xff]  ;;  %v2445_v5 = vadd.f32 %v12301_v35, %v1721_v17  ;;  %v1546_v21 = vadd.f32 %v1540_v58, %v1358_v18  ;;  %v1765_v62 = vpop.permute.xlu1 %1764  ;;  %v2388_v8 = vcombine.high %v12304_v20, %v12304_v20  ;;  %v12305_v20 = vld [vmem:[#allocation88_spill] sm:$0xff] }
 0x262   : > { %v2395_v24 = vrot.slane %v2287_v34, %v9120_v12  ;;  %v12300_v0 = vrot.slane %v12299_v48, 2  ;;  %v1740_v7 = vpop.permute.xlu0 %1739  ;;  %v10032_v22 = vrot.slane %v2235_v44, %v9120_v12  ;;  %v10034_v55 = vmax.f32 %v2227_v53, %v2242_v30  ;;  %3589 = vbcast.lane.b32.xlu1 %v9850_v46, 264 }
 0x263   : > { %v1571_v9 = vadd.f32 %v1565_v49, %v1377_v50  ;;  %v2448_v34 = vmax.f32 %v2445_v5, 0.0  ;;  %v10041_v18 = vrot.slane %v2276_v33, %v9199_v42  ;;  %v1746_v58 = vadd.f32 %v1740_v7, %v1546_v21 }
 0x264   : > { %v1396_v4 = vadd.f32 %v12300_v0, %v1243_v52  ;;  %12302 = vst [vmem:[#allocation36_spill] sm:$0xff] %v10032_v22  ;;  %12303 = vst [vmem:[#allocation99_spill] sm:$0xff] %v10034_v55  ;;  %v2396_v49 = vcombine.high %v2395_v24, %v2395_v24  ;;  %v2403_v50 = vrot.slane %v2395_v24, %v9120_v12  ;;  %3555 = vbcast.lane.b32.xlu0 %v9974_v47, 256 }
 0x265   : > { %v1771_v52 = vadd.f32 %v1765_v62, %v1571_v9  ;;  %v2556_v44 = vrot.slane %v2448_v34, %v9120_v12  ;;  %v3082_v9 = vmax.f32 %v3076_v16, %v3031_v59  ;;  %v2549_v21 = vcombine.high %v9798_v38, %v9798_v38  ;;  %v12326_v34 = vld [vmem:[#allocation44_spill] sm:$0xff] }
 0x266   : > { %v1596_v48 = vadd.f32 %v1590_v43, %v1396_v4  ;;  %v10049_v53 = vrot.slane %v2396_v49, %v9120_v12  ;;  %v10051_v24 = vmax.f32 %v2388_v8, %v2403_v50  ;;  %v12308_v43 = vld [vmem:[#allocation87_spill] sm:$0xff]  ;;  %v1790_v33 = vpop.permute.xlu0 %1789  ;;  %v12309_v4 = vld [vmem:[#allocation56_spill] sm:$0xff]  ;;  %3720 = vbcast.lane.b32.xlu1 %v9977_v28, 256  ;;  %v2913_v59 = vmax.f32 %v2821_v27, %v9936_v32  ;;  %v12314_v27 = vld [vmem:[#allocation97_spill] sm:$0xff] }
 0x267   : > { %v2767_v30 = vadd.f32 %v12305_v20, %v1771_v52  ;;  %v2606_v0 = vadd.f32 %v12308_v43, %v1746_v58  ;;  %v12310_v35 = vcombine.high %v12309_v4, %v12309_v4  ;;  %v2557_v62 = vcombine.high %v2556_v44, %v2556_v44  ;;  %v12311_v52 = vld [vmem:[#allocation46_spill] sm:$0xff] }
 0x268   : > { %12306 = vst [vmem:[#allocation37_spill] sm:$0xff] %v10049_v53  ;;  %12307 = vst [vmem:[#allocation79_spill] sm:$0xff] %v10051_v24  ;;  %v2564_v7 = vrot.slane %v2556_v44, %v9120_v12  ;;  %v1796_v8 = vadd.f32 %v1790_v33, %v1596_v48  ;;  %v2853_v16 = vrot.slane %v12309_v4, %v9120_v12  ;;  %3600 = vbcast.lane.b32.xlu0 %v10022_v54, 256  ;;  %v12336_v24 = vld [vmem:[#allocation66_spill] sm:$0xff] }
 0x269   : > { %v2867_v5 = vrot.slane %v12310_v35, %v9120_v12  ;;  %v2770_v49 = vmax.f32 %v2767_v30, 0.0  ;;  %v2609_v50 = vmax.f32 %v2606_v0, 0.0  ;;  %v10071_v20 = vrot.slane %v2557_v62, %v9120_v12 }
 0x26a   : > { %v2928_v58 = vadd.f32 %v12311_v52, %v1796_v8  ;;  %v10073_v44 = vmax.f32 %v2549_v21, %v2564_v7  ;;  %v10076_v48 = vrot.slane %v3082_v9, %v9199_v42  ;;  %v12315_v30 = vcombine.high %v12314_v27, %v12314_v27  ;;  %3300 = vbcast.lane.b32.xlu1 %v10041_v18, 256  ;;  %v12325_v21 = vld [vmem:[#allocation25_spill] sm:$0xff] }
 0x26b   : > { %v2878_v38 = vrot.slane %v2770_v49, %v9120_v12  ;;  %12312 = vst [vmem:[#allocation45_spill] sm:$0xff] %v10071_v20  ;;  %v2717_v32 = vrot.slane %v2609_v50, %v9120_v12  ;;  %v2871_v0 = vcombine.high %v2867_v5, %v2867_v5  ;;  %v2919_v7 = vmax.f32 %v2913_v59, %v9930_v31  ;;  %v10107_v59 = vpop.permute.xlu1 %3090 }
 0x26c   : > { %12313 = vst [vmem:[#allocation61_spill] sm:$0xff] %v10073_v44  ;;  %v10083_v43 = vrot.slane %v12315_v30, %v9120_v12  ;;  %v2931_v35 = vmax.f32 %v2928_v58, 0.0  ;;  %v2710_v49 = vcombine.high %v9947_v14, %v9947_v14  ;;  %3765 = vbcast.lane.b32.xlu0 %v10076_v48, 256  ;;  %v2916_v50 = vmax.f32 %v2853_v16, %v2867_v5 }
 0x26d   : > { %v2879_v33 = vcombine.high %v2878_v38, %v2878_v38  ;;  %v2886_v4 = vrot.slane %v2878_v38, %v9120_v12  ;;  %v2718_v9 = vcombine.high %v2717_v32, %v2717_v32  ;;  %v2725_v62 = vrot.slane %v2717_v32, %v9120_v12 }
 0x26e   : > { %v3039_v8 = vrot.slane %v2931_v35, %v9120_v12  ;;  %v2869_v58 = vcombine.high %v2853_v16, %v2853_v16  ;;  %3514 = vbcast.lane.b32.xlu1 %v9900_v1, 264 }
 0x26f   : > { %v10096_v52 = vrot.slane %v2879_v33, %v9120_v12  ;;  %v10098_v38 = vmax.f32 %v2871_v0, %v2886_v4  ;;  %v10101_v30 = vrot.slane %v2718_v9, %v9120_v12  ;;  %v10103_v32 = vmax.f32 %v2710_v49, %v2725_v62  ;;  %v12324_v62 = vld [vmem:[#allocation71_spill] sm:$0xff] }
 0x270   : > { %v3040_v31 = vcombine.high %v3039_v8, %v3039_v8  ;;  %v3047_v14 = vrot.slane %v3039_v8, %v9120_v12  ;;  %v3032_v0 = vcombine.high %v10083_v43, %v10083_v43  ;;  %3469 = vbcast.lane.b32.xlu0 %v9892_v26, 264  ;;  %v10117_v33 = vrot.slane %v2919_v7, %v9199_v42  ;;  %v10131_v8 = vpop.permute.xlu1 %3180 }
 0x271   : > { %12316 = vst [vmem:[#allocation59_spill] sm:$0xff] %v10096_v52  ;;  %12317 = vst [vmem:[#allocation49_spill] sm:$0xff] %v10098_v38  ;;  %v2922_v4 = vmax.f32 %v2916_v50, %v2869_v58 }
 0x272   : > { %12318 = vst [vmem:[#allocation48_spill] sm:$0xff] %v10101_v30  ;;  %12319 = vst [vmem:[#allocation64_spill] sm:$0xff] %v10103_v32  ;;  %v10120_v35 = vrot.slane %v3040_v31, %v9120_v12  ;;  %v10122_v9 = vmax.f32 %v3032_v0, %v3047_v14  ;;  %3645 = vbcast.lane.b32.xlu1 %v10117_v33, 256  ;;  %v10133_v7 = vpop.permute.xlu0 %3135  ;;  %v12322_v31 = vld [vmem:[#allocation32_spill] sm:$0xff]  ;;  %v12330_v30 = vld [vmem:[#allocation41_spill] sm:$0xff] }
 0x273   : > { %v10129_v49 = vrot.slane %v2922_v4, %v9199_v42  ;;  %v2935_v14 = vcombine.high %v12322_v31, %v12322_v31  ;;  %v12323_v0 = vld [vmem:[#allocation24_spill] sm:$0xff] }
 0x274   : > { %12320 = vst [vmem:[#allocation52_spill] sm:$0xff] %v10120_v35  ;;  %12321 = vst [vmem:[#allocation67_spill] sm:$0xff] %v10122_v9  ;;  %3634 = vbcast.lane.b32.xlu0 %v9897_v40, 264  ;;  %v2982_v35 = vcombine.high %v9882_v25, %v9882_v25 }
 0x275   : > { %v2949_v16 = vrot.slane %v2935_v14, %v9120_v12 }
 0x276   : > { %3690 = vbcast.lane.b32.xlu1 %v10129_v49, 256  ;;  %v10137_v50 = vpop.permute.xlu1 %3270  ;;  %v10140_v58 = vpop.permute.xlu0 %3225 }
 0x278   : > { %3679 = vbcast.lane.b32.xlu0 %v9919_v57, 264 }
 0x27a   : > { %3124 = vbcast.lane.b32.xlu1 %v9912_v29, 264  ;;  %v10145_v4 = vpop.permute.xlu1 %3094 }
 0x27c   : > { %3098 = vbcast.lane.b32.xlu0 %v12323_v0, 272  ;;  %v2951_v0 = vcombine.high %v2949_v16, %v2949_v16 }
 0x27d   : > { %v10148_v5 = vpop.permute.xlu0 %3315 }
 0x27e   : > { %3188 = vbcast.lane.b32.xlu1 %v12324_v62, 272  ;;  %v10153_v17 = vpop.permute.xlu1 %3139  ;;  %v10161_v62 = vrot.slane %v2949_v16, %v9120_v12  ;;  %v10175_v9 = vrot.slane %v2951_v0, %v9120_v12  ;;  %v3014_v16 = vrot.slane %v12314_v27, %v9120_v12 }
 0x280   : > { %3143 = vbcast.lane.b32.xlu0 %v12325_v21, 272  ;;  %v12328_v21 = vmax.f32 %v9885_v51, %v9493_v3  ;;  %v3074_v14 = vmax.f32 %v2982_v35, %v10161_v62  ;;  %v3077_v51 = vmax.f32 %v3014_v16, %v10083_v43  ;;  %v3030_v35 = vcombine.high %v3014_v16, %v3014_v16 }
 0x281   : > { %v10158_v31 = vpop.permute.xlu0 %3105 }
 0x282   : > { %3233 = vbcast.lane.b32.xlu1 %v12326_v34, 272  ;;  %12327 = vst [vmem:[#allocation51_spill] sm:$0xff] %v10158_v31  ;;  %v10168_v34 = vrot.slane %v12328_v21, %v9199_v42  ;;  %v10172_v25 = vpop.permute.xlu1 %3184  ;;  %v3080_v3 = vmax.f32 %v3074_v14, %v10175_v9  ;;  %v3083_v38 = vmax.f32 %v3077_v51, %v3030_v35  ;;  %v12340_v31 = vld [vmem:[#allocation50_spill] sm:$0xff] }
 0x284   : > { %3214 = vbcast.lane.b32.xlu0 %v9950_v36, 264  ;;  %v10187_v21 = vrot.slane %v3080_v3, %v9199_v42  ;;  %v10196_v14 = vrot.slane %v3083_v38, %v9199_v42  ;;  %v12331_v3 = vld [vmem:[#allocation27_spill] sm:$0xff]  ;;  %v12333_v38 = vmax.f32 %v9954_v56, %v12288_v19 }
 0x285   : > { %v10180_v52 = vpop.permute.xlu0 %3150 }
 0x286   : > { %3559 = vbcast.lane.b32.xlu1 %v9974_v47, 264 }
 0x287   : > { %v10189_v0 = vpop.permute.xlu1 %3229 }
 0x288   : > { %3390 = vbcast.lane.b32.xlu0 %v10168_v34, 256 }
 0x28a   : > { %3724 = vbcast.lane.b32.xlu1 %v9977_v28, 264 }
 0x28b   : > { %v10192_v27 = vpop.permute.xlu0 %3195 }
 0x28c   : > { %3604 = vbcast.lane.b32.xlu0 %v10022_v54, 264  ;;  %12329 = vst [vmem:[#allocation91_spill] sm:$0xff] %v10192_v27  ;;  %v12343_v27 = vld [vmem:[#allocation31_spill] sm:$0xff] }
 0x28e   : > { %3769 = vbcast.lane.b32.xlu1 %v10076_v48, 264 }
 0x290   : > { %3735 = vbcast.lane.b32.xlu0 %v10187_v21, 256 }
 0x292   : > { %3278 = vbcast.lane.b32.xlu1 %v12330_v30, 272  ;;  %v10199_v43 = vpop.permute.xlu1 %3360  ;;  %v10214_v30 = vrot.slane %v12333_v38, %v9199_v42  ;;  %v12339_v38 = vld [vmem:[#allocation30_spill] sm:$0xff] }
 0x294   : > { %3780 = vbcast.lane.b32.xlu0 %v10196_v14, 256  ;;  %v10201_v16 = vpop.permute.xlu0 %3240 }
 0x296   : > { %3323 = vbcast.lane.b32.xlu1 %v12331_v3, 272  ;;  %v10205_v51 = vpop.permute.xlu1 %3274  ;;  %v12335_v3 = vld [vmem:[#allocation28_spill] sm:$0xff] }
 0x297   : > { %12332 = vst [vmem:[#allocation55_spill] sm:$0xff] %v10205_v51  ;;  %v12337_v51 = vld [vmem:[#allocation89_spill] sm:$0xff] }
 0x298   : > { %3304 = vbcast.lane.b32.xlu0 %v10041_v18, 264  ;;  %v10207_v35 = vpop.permute.xlu0 %3405 }
 0x29a   : > { %3649 = vbcast.lane.b32.xlu1 %v10117_v33, 264  ;;  %v10217_v32 = vpop.permute.xlu1 %3319 }
 0x29c   : > { %3480 = vbcast.lane.b32.xlu0 %v10214_v30, 256  ;;  %v10219_v20 = vpop.permute.xlu0 %3285 }
 0x29d   : > { %12334 = vst [vmem:[#allocation70_spill] sm:$0xff] %v10219_v20 }
 0x29e   : > { %3113 = vbcast.lane.b32.xlu1 %v12335_v3, 272 }
 0x29f   : > { %v10223_v44 = vpop.permute.xlu1 %3450 }
 0x2a0   : > { %3694 = vbcast.lane.b32.xlu0 %v10129_v49, 264  ;;  %v10225_v53 = vpop.permute.xlu0 %3330 }
 0x2a2   : > { %3203 = vbcast.lane.b32.xlu1 %v12336_v24, 272 }
 0x2a3   : > { %v10229_v56 = vpop.permute.xlu1 %3109 }
 0x2a4   : > { %3158 = vbcast.lane.b32.xlu0 %v12337_v51, 272  ;;  %12338 = vst [vmem:[#allocation104_spill] sm:$0xff] %v10229_v56  ;;  %v12346_v51 = vmax.f32 %v9956_v45, %v9676_v60 }
 0x2a5   : > { %v10231_v19 = vpop.permute.xlu0 %3495 }
 0x2a6   : > { %3368 = vbcast.lane.b32.xlu1 %v12339_v38, 272  ;;  %v10250_v38 = vrot.slane %v12346_v51, %v9199_v42 }
 0x2a7   : > { %v10235_v20 = vpop.permute.xlu1 %3199 }
 0x2a8   : > { %3248 = vbcast.lane.b32.xlu0 %v12340_v31, 272  ;;  %12341 = vst [vmem:[#allocation54_spill] sm:$0xff] %v10235_v20 }
 0x2a9   : > { %v10237_v3 = vpop.permute.xlu0 %3154 }
 0x2aa   : > { %12342 = vst [vmem:[#allocation57_spill] sm:$0xff] %v10237_v3  ;;  %3413 = vbcast.lane.b32.xlu1 %v12343_v27, 272 }
 0x2ab   : > { %v10241_v22 = vpop.permute.xlu1 %3364 }
 0x2ac   : > { %3394 = vbcast.lane.b32.xlu0 %v10168_v34, 264  ;;  %12344 = vst [vmem:[#allocation58_spill] sm:$0xff] %v10241_v22  ;;  %v12352_v22 = vld [vmem:[#allocation75_spill] sm:$0xff] }
 0x2ad   : > { %v10243_v24 = vpop.permute.xlu0 %3244 }
 0x2ae   : > { %12345 = vst [vmem:[#allocation73_spill] sm:$0xff] %v10243_v24  ;;  %3739 = vbcast.lane.b32.xlu1 %v10187_v21, 264 }
 0x2af   : > { %v10253_v31 = vpop.permute.xlu1 %3409 }
 0x2b0   : > { %3570 = vbcast.lane.b32.xlu0 %v10250_v38, 256 }
 0x2b1   : > { %v10255_v3 = vpop.permute.xlu0 %3375 }
 0x2b2   : > { %12347 = vst [vmem:[#allocation60_spill] sm:$0xff] %v10255_v3  ;;  %3293 = vbcast.lane.b32.xlu1 %v9592_v39, 272 }
 0x2b3   : > { %v10259_v27 = vpop.permute.xlu1 %3540 }
 0x2b4   : > { %3784 = vbcast.lane.b32.xlu0 %v10196_v14, 264 }
 0x2b5   : > { %v10261_v24 = vpop.permute.xlu0 %3420 }
 0x2b6   : > { %3458 = vbcast.lane.b32.xlu1 %v9609_v13, 272  ;;  %v12351_v13 = vmax.f32 %v9980_v63, %v9709_v37  ;;  %v12354_v63 = vld [vmem:[#allocation29_spill] sm:$0xff] }
 0x2b7   : > { %v10265_v60 = vpop.permute.xlu1 %3289 }
 0x2b8   : > { %3338 = vbcast.lane.b32.xlu0 %v9628_v11, 272  ;;  %12348 = vst [vmem:[#allocation77_spill] sm:$0xff] %v10265_v60  ;;  %v10280_v3 = vrot.slane %v12351_v13, %v9199_v42  ;;  %v2983_v11 = vcombine.high %v10175_v9, %v10175_v9  ;;  %v7589_v60 = vld [vmem:[#allocation2 + $0x10] sm:$0xf] }
 0x2ba   : > { %v10267_v45 = vpop.permute.xlu0 %3585  ;;  %3503 = vbcast.lane.b32.xlu1 %v12276_v15, 272  ;;  %v311_v15 = vmul.f32 %v7589_v60, %v12352_v22 }
 0x2bb   : > { %v10271_v51 = vpop.permute.xlu1 %3454 }
 0x2bc   : > { %3484 = vbcast.lane.b32.xlu0 %v10214_v30, 264  ;;  %12349 = vst [vmem:[#allocation108_spill] sm:$0xff] %v10271_v51 }
 0x2be   : > { %v10273_v39 = vpop.permute.xlu0 %3334  ;;  %3383 = vbcast.lane.b32.xlu1 %v9772_v10, 272  ;;  %v12353_v10 = vld [vmem:[#allocation18_spill] sm:$0xff] }
 0x2bf   : > { %12350 = vst [vmem:[#allocation112_spill] sm:$0xff] %v10273_v39  ;;  %v2981_v39 = vcombine.high %v10161_v62, %v10161_v62  ;;  %v390_v51 = vadd.f32 %v12353_v10, %v311_v15  ;;  %v12355_v62 = vld [vmem:[#allocation101_spill] sm:$0xff] }
 0x2c0   : > { %3660 = vbcast.lane.b32.xlu0 %v10280_v3, 256  ;;  %v10286_v56 = vpop.permute.xlu1 %3499  ;;  %v12356_v55 = vrot.slane %v12355_v62, 1 }
 0x2c1   : > { %v3075_v37 = vmax.f32 %v2981_v39, %v2983_v11  ;;  %v550_v13 = vadd.f32 %v12354_v63, %v390_v51  ;;  %v12359_v11 = vld [vmem:[#allocation76_spill] sm:$0xff] }
 0x2c2   : > { %v10291_v20 = vpop.permute.xlu0 %3465  ;;  %3548 = vbcast.lane.b32.xlu1 %v9786_v41, 272  ;;  %v12358_v41 = vld [vmem:[#allocation74_spill] sm:$0xff] }
 0x2c3   : > { %v3081_v60 = vmax.f32 %v3075_v37, %v9756_v6  ;;  %v710_v15 = vadd.f32 %v12356_v55, %v550_v13  ;;  %v12360_v37 = vld [vmem:[#allocation117_spill] sm:$0xff] }
 0x2c4   : > { %3428 = vbcast.lane.b32.xlu0 %v9816_v2, 272  ;;  %v10296_v9 = vpop.permute.xlu1 %3630  ;;  %v12361_v63 = vrot.slane %v12360_v37, 2 }
 0x2c5   : > { %v868_v39 = vadd.f32 %v12358_v41, %v710_v15  ;;  %v10312_v2 = vrot.slane %v3081_v60, %v9199_v42  ;;  %v12363_v41 = vld [vmem:[#allocation98_spill] sm:$0xff] }
 0x2c6   : > { %v10298_v22 = vpop.permute.xlu0 %3510  ;;  %3593 = vbcast.lane.b32.xlu1 %v9850_v46, 272 }
 0x2c7   : > { %v1068_v46 = vadd.f32 %v12359_v11, %v868_v39 }
 0x2c8   : > { %3574 = vbcast.lane.b32.xlu0 %v10250_v38, 264  ;;  %v10305_v10 = vpop.permute.xlu1 %3120 }
 0x2c9   : > { %12357 = vst [vmem:[#allocation78_spill] sm:$0xff] %v10305_v10  ;;  %v1263_v13 = vadd.f32 %v12361_v63, %v1068_v46 }
 0x2ca   : > { %v10308_v51 = vpop.permute.xlu0 %3675  ;;  %3473 = vbcast.lane.b32.xlu1 %v9892_v26, 272  ;;  %v12362_v26 = vld [vmem:[#allocation35_spill] sm:$0xff] }
 0x2cb   : > { %v1421_v60 = vadd.f32 %v12362_v26, %v1263_v13 }
 0x2cc   : > { %3750 = vbcast.lane.b32.xlu0 %v10312_v2, 256  ;;  %v10316_v6 = vpop.permute.xlu1 %3379 }
 0x2cd   : > { %v1621_v39 = vadd.f32 %v12363_v41, %v1421_v60  ;;  %v3805_v60 = vsel %vm253_vm1, %v10107_v59, %v10131_v8  ;;  %v3815_v59 = vsel %vm253_vm1, %v10153_v17, %v10189_v0 }
 0x2ce   : > { %v10318_v55 = vpop.permute.xlu0 %3210  ;;  %3638 = vbcast.lane.b32.xlu1 %v9897_v40, 272  ;;  %v12364_v40 = vld [vmem:[#allocation81_spill] sm:$0xff] }
 0x2cf   : > { %v1801_v46 = vadd.f32 %v12364_v40, %v1621_v39 }
 0x2d0   : > { %3518 = vbcast.lane.b32.xlu0 %v9900_v1, 272  ;;  %v10324_v62 = vpop.permute.xlu1 %3544 }
 0x2d1   : > { %v1804_v63 = vmax.f32 %v1801_v46, 0.0 }
 0x2d2   : > { %v10327_v15 = vpop.permute.xlu0 %3424  ;;  %3683 = vbcast.lane.b32.xlu1 %v9919_v57, 272 }
 0x2d3   : > { %v1912_v26 = vrot.slane %v1804_v63, %v9120_v12 }
 0x2d4   : > { %3664 = vbcast.lane.b32.xlu0 %v10280_v3, 264  ;;  %v3590_v11 = vpop.permute.xlu1 %3589 }
 0x2d6   : > { %v10332_v10 = vpop.permute.xlu0 %3555  ;;  %3218 = vbcast.lane.b32.xlu1 %v9950_v36, 272 }
 0x2d8   : > { %3128 = vbcast.lane.b32.xlu0 %v9912_v29, 272  ;;  %v3721_v1 = vpop.permute.xlu1 %3720 }
 0x2da   : > { %v3601_v37 = vpop.permute.xlu0 %3600  ;;  %3608 = vbcast.lane.b32.xlu1 %v10022_v54, 272  ;;  %v1913_v54 = vcombine.high %v1912_v26, %v1912_v26 }
 0x2dc   : > { %3563 = vbcast.lane.b32.xlu0 %v9974_v47, 272  ;;  %v10339_v57 = vpop.permute.xlu1 %3300  ;;  %v1920_v47 = vrot.slane %v1912_v26, %v9120_v12  ;;  %v1927_v0 = vrot.slane %v1913_v54, %v9120_v12 }
 0x2de   : > { %v3766_v13 = vpop.permute.xlu0 %3765  ;;  %3754 = vbcast.lane.b32.xlu1 %v10312_v2, 264 }
 0x2e0   : > { %3728 = vbcast.lane.b32.xlu0 %v9977_v28, 272  ;;  %v10344_v36 = vpop.permute.xlu1 %3514  ;;  %v3817_v28 = vsel %vm253_vm1, %v10180_v52, %v10201_v16 }
 0x2e1   : > { %v3836_v39 = vsel %vm3823_vm9, %v3817_v28, %v10225_v53  ;;  %v3834_v53 = vsel %vm3823_vm9, %v3815_v59, %v10217_v32  ;;  %v12368_v59 = vld [vmem:[#allocation36_spill] sm:$0xff] }
 0x2e2   : > { %v10346_v29 = vpop.permute.xlu0 %3469  ;;  %3308 = vbcast.lane.b32.xlu1 %v10041_v18, 272  ;;  %v3824_v18 = vsel %vm3823_vm9, %v3805_v60, %v10137_v50  ;;  %v12365_v50 = vld [vmem:[#allocation26_spill] sm:$0xff] }
 0x2e3   : > { %v3843_v52 = vsel %vm3842_vm10, %v3824_v18, %v10199_v43  ;;  %v1905_v16 = vcombine.high %v12365_v50, %v12365_v50  ;;  %v3853_v43 = vsel %vm3842_vm10, %v3834_v53, %v10253_v31  ;;  %v12370_v50 = vld [vmem:[#allocation91_spill] sm:$0xff] }
 0x2e4   : > { %3773 = vbcast.lane.b32.xlu0 %v10076_v48, 272  ;;  %v10357_v41 = vpop.permute.xlu1 %3645  ;;  %v3855_v48 = vsel %vm3842_vm10, %v3836_v39, %v10261_v24  ;;  %v3862_v40 = vsel %vm3861_vm11, %v3843_v52, %v10223_v44  ;;  %v3814_v44 = vsel %vm253_vm1, %v10133_v7, %v10140_v58  ;;  %v12367_v39 = vld [vmem:[#allocation99_spill] sm:$0xff] }
 0x2e5   : > { %v3874_v17 = vsel %vm3861_vm11, %v3855_v48, %v10298_v22  ;;  %v1951_v32 = vmax.f32 %v1905_v16, %v1920_v47  ;;  %v3872_v22 = vsel %vm3861_vm11, %v3853_v43, %v10286_v56  ;;  %v12369_v52 = vmax.f32 %v12367_v39, %v12368_v59  ;;  %v12371_v16 = vld [vmem:[#allocation51_spill] sm:$0xff]  ;;  %v12385_v39 = vld [vmem:[#allocation112_spill] sm:$0xff]  ;;  %v12386_v59 = vld [vmem:[#allocation78_spill] sm:$0xff] }
 0x2e6   : > { %v10370_v8 = vpop.permute.xlu0 %3634  ;;  %3698 = vbcast.lane.b32.xlu1 %v10129_v49, 272  ;;  %v3881_v49 = vsel %vm3880_vm12, %v3862_v40, %v10259_v27  ;;  %v3893_v24 = vsel %vm3880_vm12, %v3874_v17, %v3601_v37  ;;  %v3833_v27 = vsel %vm3823_vm9, %v3814_v44, %v10148_v5 }
 0x2e7   : > { %v3900_v63 = vsel %vm3899_vm13, %v3881_v49, %v10296_v9  ;;  %v3852_v7 = vsel %vm3842_vm10, %v3833_v27, %v10207_v35  ;;  %v1957_v54 = vmax.f32 %v1951_v32, %v1927_v0  ;;  %v10440_v48 = vrot.slane %v12369_v52, %v9199_v42  ;;  %v12376_v0 = vld [vmem:[#allocation70_spill] sm:$0xff] }
 0x2e8   : > { %3653 = vbcast.lane.b32.xlu0 %v10117_v33, 272  ;;  %v3691_v46 = vpop.permute.xlu1 %3690  ;;  %v3891_v33 = vsel %vm3880_vm12, %v3872_v22, %v3590_v11  ;;  %v3919_v37 = vsel %vm3918_vm14, %v3900_v63, %v3721_v1  ;;  %v3871_v56 = vsel %vm3861_vm11, %v3852_v7, %v10231_v19  ;;  %v12377_v49 = vld [vmem:[#allocation54_spill] sm:$0xff]  ;;  %v12380_v22 = vld [vmem:[#allocation73_spill] sm:$0xff] }
 0x2e9   : > { %v10396_v31 = vsel %vm3899_vm13, %v3893_v24, %v3691_v46  ;;  %v3890_v5 = vsel %vm3880_vm12, %v3871_v56, %v10267_v45  ;;  %v3955_v11 = vcombine.high %v3919_v37, %v3919_v37  ;;  %v3962_v1 = vrot.slane %v3919_v37, %v9120_v12  ;;  %v12378_v24 = vld [vmem:[#allocation104_spill] sm:$0xff]  ;;  %v12379_v32 = vld [vmem:[#allocation58_spill] sm:$0xff]  ;;  %v12381_v63 = vld [vmem:[#allocation57_spill] sm:$0xff] }
 0x2ea   : > { %v3680_v26 = vpop.permute.xlu0 %3679  ;;  %3743 = vbcast.lane.b32.xlu1 %v10187_v21, 272  ;;  %v3909_v21 = vsel %vm3899_vm13, %v3890_v5, %v10308_v51  ;;  %v10424_v28 = vrot.slane %v1957_v54, %v9199_v42  ;;  %v3806_v51 = vsel %vm253_vm1, %v10145_v4, %v10172_v25  ;;  %v3808_v4 = vsel %vm253_vm1, %v12371_v16, %v12370_v50  ;;  %v12372_v25 = vld [vmem:[#allocation55_spill] sm:$0xff]  ;;  %v12382_v37 = vld [vmem:[#allocation77_spill] sm:$0xff] }
 0x2eb   : > { %v10406_v58 = vsel %vm3899_vm13, %v3891_v33, %v3680_v26  ;;  %v3928_v47 = vsel %vm3918_vm14, %v3909_v21, %v3766_v13  ;;  %v3970_v60 = vcombine.high %v3962_v1, %v3962_v1  ;;  %v3825_v53 = vsel %vm3823_vm9, %v3806_v51, %v12372_v25  ;;  %v12384_v21 = vld [vmem:[#allocation108_spill] sm:$0xff] }
 0x2ec   : > { %3398 = vbcast.lane.b32.xlu0 %v10168_v34, 272  ;;  %v3125_v9 = vpop.permute.xlu1 %3124  ;;  %v3969_v34 = vrot.slane %v3955_v11, %v9120_v12  ;;  %v4315_v18 = vcombine.high %v3928_v47, %v3928_v47  ;;  %v3827_v43 = vsel %vm3823_vm9, %v3808_v4, %v12376_v0  ;;  %v3809_v46 = vsel %vm253_vm1, %v12378_v24, %v12377_v49  ;;  %v12383_v11 = vld [vmem:[#allocation60_spill] sm:$0xff] }
 0x2ed   : > { %v3844_v44 = vsel %vm3842_vm10, %v3825_v53, %v12379_v32  ;;  %v3818_v27 = vsel %vm253_vm1, %v12381_v63, %v12380_v22  ;;  %v3828_v26 = vsel %vm3823_vm9, %v3809_v46, %v12382_v37  ;;  %v10470_v56 = vrot.slane %v3970_v60, %v9120_v12 }
 0x2ee   : > { %v3099_v35 = vpop.permute.xlu0 %3098  ;;  %3488 = vbcast.lane.b32.xlu1 %v10214_v30, 272  ;;  %v3971_v7 = vcombine.high %v3969_v34, %v3969_v34  ;;  %v3846_v54 = vsel %vm3842_vm10, %v3827_v43, %v12383_v11  ;;  %v10486_v60 = vrot.slane %v3962_v1, %v9120_v12  ;;  %v10489_v51 = vrot.slane %v3969_v34, %v9120_v12 }
 0x2ef   : > { %v3811_v1 = vsel %vm253_vm1, %v12386_v59, %v10318_v55  ;;  %v4002_v16 = vcombine.high %v10470_v56, %v10470_v56 }
 0x2f0   : > { %3788 = vbcast.lane.b32.xlu0 %v10196_v14, 272  ;;  %v3189_v19 = vpop.permute.xlu1 %3188  ;;  %v12366_v14 = vmax.f32 %v10010_v61, %v10008_v23  ;;  %v12373_v23 = vld [vmem:[#allocation79_spill] sm:$0xff]  ;;  %v12374_v61 = vld [vmem:[#allocation37_spill] sm:$0xff]  ;;  %v10509_v50 = vrot.slane %v3971_v7, %v9120_v12  ;;  %v4000_v25 = vcombine.high %v10486_v60, %v10486_v60  ;;  %v4001_v53 = vcombine.high %v10489_v51, %v10489_v51 }
 0x2f1   : > { %v10421_v45 = vsel %vm253_vm1, %v3099_v35, %v3189_v19  ;;  %v12375_v40 = vmax.f32 %v12373_v23, %v12374_v61  ;;  %v3863_v35 = vsel %vm3861_vm11, %v3844_v44, %v12384_v21  ;;  %v5329_v61 = vld [vmem:[%s11778_s3 + $0x8] sm:$0xff] }
 0x2f2   : > { %v3144_v30 = vpop.permute.xlu0 %3143  ;;  %3668 = vbcast.lane.b32.xlu1 %v10280_v3, 272  ;;  %v10434_v13 = vrot.slane %v12366_v14, %v9199_v42  ;;  %v10448_v3 = vrot.slane %v3928_v47, %v9120_v12  ;;  %v10482_v47 = vrot.slane %v4315_v18, %v9120_v12  ;;  %v3865_v18 = vsel %vm3861_vm11, %v3846_v54, %v10291_v20 }
 0x2f3   : > { %v10454_v17 = vrot.slane %v12375_v40, %v9199_v42  ;;  %v10542_v40 = vmax.f32 %v4002_v16, %v10489_v51  ;;  %v4003_v0 = vcombine.high %v10509_v50, %v10509_v50  ;;  %7356 = vmatpush3.msra.mxu0 %v5329_v61  ;;  %7509 = vmatpush3.msra.mxu1 %v5329_v61 }
 0x2f4   : > { %3578 = vbcast.lane.b32.xlu0 %v10250_v38, 272  ;;  %v3234_v33 = vpop.permute.xlu1 %3233  ;;  %v3847_v38 = vsel %vm3842_vm10, %v3828_v26, %v10316_v6  ;;  %v3837_v6 = vsel %vm3823_vm9, %v3818_v27, %v12385_v39  ;;  %v4345_v63 = vrot.slane %v10482_v47, %v9120_v12  ;;  %v4338_v7 = vrot.slane %v10448_v3, %v9120_v12 }
 0x2f5   : > { %v10473_v5 = vsel %vm253_vm1, %v3144_v30, %v3234_v33  ;;  %v4330_v30 = vcombine.high %v10448_v3, %v10448_v3  ;;  %v3866_v34 = vsel %vm3861_vm11, %v3847_v38, %v10346_v29  ;;  %v3856_v55 = vsel %vm3842_vm10, %v3837_v6, %v10327_v15 }
 0x2f6   : > { %v3215_v19 = vpop.permute.xlu0 %3214  ;;  %3165 = vbcast.lane.b32.xlu1 %v10424_v28, 256  ;;  %v3884_v29 = vsel %vm3880_vm12, %v3865_v18, %v10332_v10  ;;  %v3875_v24 = vsel %vm3861_vm11, %v3856_v55, %v10344_v36  ;;  %v4783_v36 = vmax.f32 %v10486_v60, %v10470_v56  ;;  %v4820_v26 = vmax.f32 %v10542_v40, %v10509_v50 }
 0x2f7   : > { %v10494_v14 = vsel %vm253_vm1, %v3125_v9, %v3215_v19  ;;  %v3882_v9 = vsel %vm3880_vm12, %v3863_v35, %v10324_v62  ;;  %v4331_v62 = vcombine.high %v10482_v47, %v10482_v47  ;;  %v10530_v15 = vrot.slane %v4330_v30, %v9120_v12 }
 0x2f8   : > { %3758 = vbcast.lane.b32.xlu0 %v10312_v2, 272  ;;  %v3560_v52 = vpop.permute.xlu1 %3559  ;;  %v3830_v2 = vsel %vm3823_vm9, %v3811_v1, %v10339_v57  ;;  %v3901_v57 = vsel %vm3899_vm13, %v3882_v9, %v10370_v8  ;;  %v12387_v8 = vmov 0.0   ;;  %v4785_v56 = vmax.f32 %v4001_v53, %v4003_v0  ;;  %v12389_v9 = vld [vmem:[#allocation45_spill] sm:$0xff] }
 0x2f9   : > { %v10514_v20 = vsel %vm3880_vm12, %v3866_v34, %v3560_v52  ;;  %7357 = vmatprep.mubr.msk.f32.mxu0 %vm7699_vm2, %v12387_v8  ;;  %264 = vst.msk [vmem:[#allocation3] sm:$0xff] %vm263_vm15, %v12387_v8  ;;  %266 = vst.msk [vmem:[#allocation3 + $0x38] sm:$0xff] %vm263_vm15, %v12387_v8  ;;  %v10580_v49 = vrot.slane %v4331_v62, %v9120_v12  ;;  %v4362_v44 = vcombine.high %v10530_v15, %v10530_v15  ;;  %v12388_v52 = vld [vmem:[#allocation61_spill] sm:$0xff] }
 0x2fa   : > { %v3391_v4 = vpop.permute.xlu0 %3390  ;;  %3345 = vbcast.lane.b32.xlu1 %v10440_v48, 256  ;;  %269 = vst.msk [vmem:[#allocation3 + $0x8] sm:$0x1] %vm267_vm0, %v12387_v8  ;;  %277 = vst.msk [vmem:[#allocation3 + $0xf] sm:$0x1] %vm267_vm0, %v12387_v8  ;;  %7366 = vmatprep.mubr.msk.f32.mxu1 %vm7699_vm2, %v12387_v8  ;;  %v3903_v54 = vsel %vm3899_vm13, %v3884_v29, %v10357_v41  ;;  %v4819_v41 = vmax.f32 %v4783_v36, %v4000_v25  ;;  %v12391_v36 = vld [vmem:[#allocation64_spill] sm:$0xff] }
 0x2fb   : > { %v10533_v10 = vsel %vm3842_vm10, %v3830_v2, %v3391_v4  ;;  %270 = vst.msk [vmem:[#allocation3 + $0x10] sm:$0x1] %vm267_vm0, %v12387_v8  ;;  %271 = vst.msk [vmem:[#allocation3 + $0x18] sm:$0x1] %vm267_vm0, %v12387_v8  ;;  %7372 = vmatprep.subr.mxu1 %v12387_v8  ;;  %7389 = vmatprep.subr.mxu0 %v12387_v8  ;;  %v4363_v38 = vcombine.high %v10580_v49, %v10580_v49 }
 0x2fc   : > { %3255 = vbcast.lane.b32.xlu0 %v10434_v13, 256  ;;  %v3725_v23 = vpop.permute.xlu1 %3724  ;;  %272 = vst.msk [vmem:[#allocation3 + $0x20] sm:$0x1] %vm267_vm0, %v12387_v8  ;;  %273 = vst.msk [vmem:[#allocation3 + $0x28] sm:$0x1] %vm267_vm0, %v12387_v8  ;;  %v4802_v19 = vmax.f32 %v4362_v44, %v4345_v63  ;;  %v4361_v30 = vcombine.high %v4345_v63, %v4345_v63  ;;  %v4801_v59 = vmax.f32 %v4338_v7, %v10530_v15  ;;  %v12392_v44 = vld [vmem:[#allocation48_spill] sm:$0xff] }
 0x2fd   : > { %v10547_v43 = vsel %vm3918_vm14, %v3901_v57, %v3725_v23  ;;  %274 = vst.msk [vmem:[#allocation3 + $0x30] sm:$0x1] %vm267_vm0, %v12387_v8  ;;  %278 = vst.msk [vmem:[#allocation3 + $0x17] sm:$0x1] %vm267_vm0, %v12387_v8  ;;  %v12390_v50 = vmax.f32 %v12388_v52, %v12389_v9  ;;  %v4891_v55 = vcombine.low %v4819_v41, %v4820_v26 }
 0x2fe   : > { %279 = vst.msk [vmem:[#allocation3 + $0x1f] sm:$0x1] %vm267_vm0, %v12387_v8  ;;  %280 = vst.msk [vmem:[#allocation3 + $0x27] sm:$0x1] %vm267_vm0, %v12387_v8  ;;  %v4011_v46 = vrot.slane %v10547_v43, %v9120_v12  ;;  %v3605_v32 = vpop.permute.xlu0 %3604  ;;  %3259 = vbcast.lane.b32.xlu1 %v10434_v13, 264  ;;  %v4803_v29 = vmax.f32 %v4361_v30, %v4363_v38  ;;  %v4360_v4 = vcombine.high %v4338_v7, %v4338_v7 }
 0x2ff   : > { %281 = vst.msk [vmem:[#allocation3 + $0x2f] sm:$0x1] %vm267_vm0, %v12387_v8  ;;  %282 = vst.msk [vmem:[#allocation3 + $0x37] sm:$0x1] %vm267_vm0, %v12387_v8  ;;  %v10600_v22 = vsel %vm3880_vm12, %v3875_v24, %v3605_v32  ;;  %v10637_v16 = vrot.slane %v12390_v50, %v9199_v42  ;;  %v4838_v25 = vmax.f32 %v4802_v19, %v10580_v49 }
 0x300   : > { %268 = vst.msk [vmem:[#allocation3] sm:$0x1] %vm267_vm0, %v12387_v8  ;;  %276 = vst.msk [vmem:[#allocation3 + $0x7] sm:$0x1] %vm267_vm0, %v12387_v8  ;;  %v4019_v27 = vcombine.high %v4011_v46, %v4011_v46  ;;  %v4027_v33 = vrot.slane %v4011_v46, %v9120_v12  ;;  %3169 = vbcast.lane.b32.xlu0 %v10424_v28, 264  ;;  %v3770_v37 = vpop.permute.xlu1 %3769  ;;  %v4837_v40 = vmax.f32 %v4801_v59, %v4360_v4 }
 0x301   : > { %275 = vst.msk [vmem:[#allocation3 + $0x38] sm:$0x1] %vm267_vm0, %v12387_v8  ;;  %283 = vst.msk [vmem:[#allocation3 + $0x3f] sm:$0x1] %vm267_vm0, %v12387_v8  ;;  %v10616_v11 = vsel %vm3918_vm14, %v10406_v58, %v3770_v37  ;;  %v12393_v49 = vmax.f32 %v12391_v36, %v12392_v44 }
 0x302   : > { %v4041_v21 = vrot.slane %v4019_v27, %v9120_v12  ;;  %v4049_v35 = vcombine.high %v4027_v33, %v4027_v33  ;;  %v3736_v47 = vpop.permute.xlu0 %3735  ;;  %3349 = vbcast.lane.b32.xlu1 %v10440_v48, 264  ;;  %v4821_v51 = vmax.f32 %v4785_v56, %v4027_v33  ;;  %v4371_v3 = vrot.slane %v10616_v11, %v9120_v12  ;;  %vm10956_vm0 = vmor %vm5264_vm8, %vm5265_vm5 }
 0x303   : > { %v3922_v58 = vsel %vm3918_vm14, %v3903_v54, %v3736_v47  ;;  %v10653_v63 = vrot.slane %v12393_v49, %v9199_v42  ;;  %v5011_v27 = vcombine.low %v4837_v40, %v4838_v25  ;;  %vm10971_vm3 = vmor %vm10956_vm0, %vm5267_vm7 }
 0x304   : > { %v4051_v39 = vcombine.high %v4041_v21, %v4041_v21  ;;  %v4786_v6 = vmax.f32 %v4041_v21, %v4049_v35  ;;  %3435 = vbcast.lane.b32.xlu0 %v10454_v17, 256  ;;  %v3279_v18 = vpop.permute.xlu1 %3278  ;;  %v4379_v1 = vcombine.high %v4371_v3, %v4371_v3  ;;  %v4387_v34 = vrot.slane %v4371_v3, %v9120_v12  ;;  %v12394_v21 = vld [vmem:[#allocation49_spill] sm:$0xff]  ;;  %v12395_v35 = vld [vmem:[#allocation59_spill] sm:$0xff] }
 0x305   : > { %v10641_v2 = vsel %vm3823_vm9, %v10421_v45, %v3279_v18  ;;  %v4900_v45 = vrot.slane %v4891_v55, %v9120_v12  ;;  %v12396_v38 = vmax.f32 %v12394_v21, %v12395_v35  ;;  %v5020_v19 = vrot.slane %v5011_v27, %v9120_v12 }
 0x306   : > { %v4822_v60 = vmax.f32 %v4786_v6, %v4051_v39  ;;  %v3781_v62 = vpop.permute.xlu0 %3780  ;;  %3439 = vbcast.lane.b32.xlu1 %v10454_v17, 264  ;;  %v4401_v53 = vrot.slane %v4379_v1, %v9120_v12  ;;  %v4409_v15 = vcombine.high %v4387_v34, %v4387_v34  ;;  %v4839_v23 = vmax.f32 %v4803_v29, %v4387_v34  ;;  %v12398_v34 = vld [vmem:[#allocation52_spill] sm:$0xff] }
 0x307   : > { %v3931_v37 = vsel %vm3918_vm14, %v10396_v31, %v3781_v62  ;;  %v3703_v47 = vrot.slane %v12396_v38, %v9199_v42  ;;  %v4075_v39 = vcombine.high %v3922_v58, %v3922_v58  ;;  %v4082_v18 = vrot.slane %v3922_v58, %v9120_v12 }
 0x308   : > { %v4892_v57 = vcombine.low %v4821_v51, %v4822_v60  ;;  %3525 = vbcast.lane.b32.xlu0 %v10637_v16, 256  ;;  %v3324_v61 = vpop.permute.xlu1 %3323  ;;  %v4411_v0 = vcombine.high %v4401_v53, %v4401_v53  ;;  %v4804_v24 = vmax.f32 %v4401_v53, %v4409_v15  ;;  %v4435_v60 = vcombine.high %v3931_v37, %v3931_v37 }
 0x309   : > { %v10670_v31 = vsel %vm3823_vm9, %v10473_v5, %v3324_v61  ;;  %v12397_v5 = vld [vmem:[#allocation67_spill] sm:$0xff]  ;;  %v4090_v55 = vcombine.high %v4082_v18, %v4082_v18  ;;  %v4442_v62 = vrot.slane %v3931_v37, %v9120_v12 }
 0x30a   : > { %v4907_v46 = vrot.slane %v4892_v57, %v9120_v12  ;;  %v3305_v32 = vpop.permute.xlu0 %3304  ;;  %3529 = vbcast.lane.b32.xlu1 %v10637_v16, 264  ;;  %v4840_v33 = vmax.f32 %v4804_v24, %v4411_v0  ;;  %v12399_v52 = vmax.f32 %v12397_v5, %v12398_v34  ;;  %v4449_v53 = vrot.slane %v4435_v60, %v9120_v12 }
 0x30b   : > { %v3831_v3 = vsel %vm3823_vm9, %v10494_v14, %v3305_v32  ;;  %v4450_v15 = vcombine.high %v4442_v62, %v4442_v62  ;;  %v4098_v24 = vrot.slane %v4082_v18, %v9120_v12  ;;  %v4458_v5 = vrot.slane %v4442_v62, %v9120_v12 }
 0x30c   : > { %v10658_v26 = vcombine.low %v4900_v45, %v4907_v46  ;;  %3615 = vbcast.lane.b32.xlu0 %v10653_v63, 256  ;;  %v3650_v7 = vpop.permute.xlu1 %3649  ;;  %v5012_v56 = vcombine.low %v4839_v23, %v4840_v33  ;;  %v3793_v14 = vrot.slane %v12399_v52, %v9199_v42  ;;  %v4465_v38 = vrot.slane %v4449_v53, %v9120_v12 }
 0x30d   : > { %v3904_v6 = vsel %vm3899_vm13, %v10514_v20, %v3650_v7  ;;  %v4089_v20 = vrot.slane %v4075_v39, %v9120_v12  ;;  %v4472_v45 = vrot.slane %v4450_v15, %v9120_v12 }
 0x30e   : > { %v3481_v54 = vpop.permute.xlu0 %3480  ;;  %3619 = vbcast.lane.b32.xlu1 %v10653_v63, 264  ;;  %v5027_v51 = vrot.slane %v5012_v56, %v9120_v12  ;;  %v4120_v56 = vcombine.high %v4098_v24, %v4098_v24 }
 0x30f   : > { %v10681_v59 = vsel %vm3861_vm11, %v10533_v10, %v3481_v54  ;;  %v4091_v42 = vcombine.high %v4089_v20, %v4089_v20  ;;  %v4105_v61 = vrot.slane %v4089_v20, %v9120_v12  ;;  %v4482_v54 = vcombine.high %v4472_v45, %v4472_v45 }
 0x310   : > { %3705 = vbcast.lane.b32.xlu0 %v3703_v47, 256  ;;  %v3114_v41 = vpop.permute.xlu1 %3113  ;;  %v10674_v30 = vcombine.low %v5020_v19, %v5027_v51  ;;  %v4481_v20 = vcombine.high %v4465_v38, %v4465_v38 }
 0x311   : > { %v4121_v49 = vcombine.high %v4105_v61, %v4105_v61  ;;  %v4808_v34 = vmax.f32 %v4482_v54, %v4465_v38  ;;  %v4004_v54 = vcombine.high %v10547_v43, %v10547_v43 }
 0x312   : > { %v3695_v1 = vpop.permute.xlu0 %3694  ;;  %3709 = vbcast.lane.b32.xlu1 %v3703_v47, 264 }
 0x313   : > { %v3913_v9 = vsel %vm3899_vm13, %v10600_v22, %v3695_v1  ;;  %v4112_v22 = vrot.slane %v4090_v55, %v9120_v12 }
 0x314   : > { %3795 = vbcast.lane.b32.xlu0 %v3793_v14, 256  ;;  %v3204_v50 = vpop.permute.xlu1 %3203 }
 0x315   : > { %v10691_v58 = vsel %vm253_vm1, %v3114_v41, %v3204_v50  ;;  %v4122_v57 = vcombine.high %v4112_v22, %v4112_v22  ;;  %v4789_v27 = vmax.f32 %v4098_v24, %v4112_v22 }
 0x316   : > { %v3159_v10 = vpop.permute.xlu0 %3158  ;;  %3263 = vbcast.lane.b32.xlu1 %v10434_v13, 272 }
 0x317   : > { %v4790_v36 = vmax.f32 %v4122_v57, %v4105_v61  ;;  %v4825_v39 = vmax.f32 %v4789_v27, %v4120_v56 }
 0x318   : > { %3173 = vbcast.lane.b32.xlu0 %v10424_v28, 272  ;;  %v10695_v29 = vpop.permute.xlu1 %3368  ;;  %v4119_v28 = vrot.slane %v4091_v42, %v9120_v12 }
 0x31a   : > { %v3249_v4 = vpop.permute.xlu0 %3248  ;;  %3353 = vbcast.lane.b32.xlu1 %v10440_v48, 272  ;;  %v4451_v48 = vcombine.high %v4449_v53, %v4449_v53  ;;  %v4123_v32 = vcombine.high %v4119_v28, %v4119_v28  ;;  %v4826_v35 = vmax.f32 %v4790_v36, %v4119_v28  ;;  %v4480_v53 = vcombine.high %v4458_v5, %v4458_v5 }
 0x31b   : > { %v10701_v25 = vsel %vm253_vm1, %v3159_v10, %v3249_v4 }
 0x31c   : > { %3799 = vbcast.lane.b32.xlu0 %v3793_v14, 264  ;;  %v10704_v13 = vpop.permute.xlu1 %3413  ;;  %v4791_v21 = vmax.f32 %v4121_v49, %v4123_v32  ;;  %v4931_v50 = vcombine.low %v4825_v39, %v4826_v35  ;;  %v7700_v35 = vmov 1983009808  }
 0x31d   : > { %v5161_v38 = vunpack.c.l.s4 %v7700_v35 }
 0x31e   : > { %v3395_v23 = vpop.permute.xlu0 %3394  ;;  %3533 = vbcast.lane.b32.xlu1 %v10637_v16, 272  ;;  %v4940_v57 = vrot.slane %v4931_v50, %v9120_v12 }
 0x31f   : > { %v10710_v40 = vsel %vm3842_vm10, %v3831_v3, %v3395_v23 }
 0x320   : > { %3443 = vbcast.lane.b32.xlu0 %v10454_v17, 272  ;;  %v3740_v0 = vpop.permute.xlu1 %3739  ;;  %v4479_v17 = vrot.slane %v4451_v48, %v9120_v12 }
 0x321   : > { %v10716_v46 = vsel %vm3918_vm14, %v3904_v6, %v3740_v0 }
 0x322   : > { %v4131_v16 = vrot.slane %v10716_v46, %v9120_v12  ;;  %v10720_v44 = vpop.permute.xlu0 %3570  ;;  %3713 = vbcast.lane.b32.xlu1 %v3703_v47, 272  ;;  %v4844_v28 = vmax.f32 %v4808_v34, %v4479_v17 }
 0x323   : > { %v3887_v43 = vsel %vm3880_vm12, %v10681_v59, %v10720_v44  ;;  %v4124_v44 = vcombine.high %v10716_v46, %v10716_v46 }
 0x324   : > { %v4139_v33 = vcombine.high %v4131_v16, %v4131_v16  ;;  %v4147_v37 = vrot.slane %v4131_v16, %v9120_v12  ;;  %3623 = vbcast.lane.b32.xlu0 %v10653_v63, 272  ;;  %v10725_v7 = vpop.permute.xlu1 %3293  ;;  %v4483_v63 = vcombine.high %v4479_v17, %v4479_v17 }
 0x325   : > { %v4138_v46 = vrot.slane %v4124_v44, %v9120_v12 }
 0x326   : > { %v4161_v19 = vrot.slane %v4139_v33, %v9120_v12  ;;  %v4169_v47 = vcombine.high %v4147_v37, %v4147_v37  ;;  %v3785_v51 = vpop.permute.xlu0 %3784  ;;  %v4827_v3 = vmax.f32 %v4791_v21, %v4147_v37  ;;  %v4809_v4 = vmax.f32 %v4481_v20, %v4483_v63 }
 0x327   : > { %v10730_v41 = vsel %vm3918_vm14, %v3913_v9, %v3785_v51  ;;  %v4807_v9 = vmax.f32 %v4458_v5, %v4472_v45 }
 0x328   : > { %v4171_v6 = vcombine.high %v4161_v19, %v4161_v19  ;;  %v4792_v18 = vmax.f32 %v4161_v19, %v4169_v47  ;;  %3803 = vbcast.lane.b32.xlu0 %v3793_v14, 272  ;;  %v10732_v1 = vpop.permute.xlu1 %3458  ;;  %v4491_v52 = vrot.slane %v10730_v41, %v9120_v12  ;;  %v4364_v19 = vcombine.high %v10616_v11, %v10616_v11 }
 0x329   : > { %v4843_v0 = vmax.f32 %v4807_v9, %v4480_v53 }
 0x32a   : > { %v4828_v55 = vmax.f32 %v4792_v18, %v4171_v6  ;;  %v10737_v10 = vpop.permute.xlu0 %3338  ;;  %v4499_v60 = vcombine.high %v4491_v52, %v4491_v52  ;;  %v4507_v42 = vrot.slane %v4491_v52, %v9120_v12  ;;  %v5162_v6 = vunpack.c.0.s8 %v5161_v38  ;;  %v12400_v52 = vld [vmem:[#allocation20_spill] sm:$0xff] }
 0x32b   : > { %v5051_v16 = vcombine.low %v4843_v0, %v4844_v28  ;;  %v4378_v18 = vrot.slane %v4364_v19, %v9120_v12 }
 0x32c   : > { %v4932_v22 = vcombine.low %v4827_v3, %v4828_v55  ;;  %v10740_v14 = vpop.permute.xlu1 %3503  ;;  %v4521_v62 = vrot.slane %v4499_v60, %v9120_v12  ;;  %v4529_v15 = vcombine.high %v4507_v42, %v4507_v42  ;;  %v4845_v61 = vmax.f32 %v4809_v4, %v4507_v42  ;;  %v5145_v60 = vld [vmem:[#allocation3] sm:$0xff] }
 0x32d   : > { %v5060_v37 = vrot.slane %v5051_v16, %v9120_v12  ;;  %v4018_v3 = vrot.slane %v4004_v54, %v9120_v12  ;;  %v10774_v50 = vsub.s32 %v5162_v6, %v12400_v52  ;;  %v4380_v20 = vcombine.high %v4378_v18, %v4378_v18 }
 0x32e   : > { %v4947_v23 = vrot.slane %v4932_v22, %v9120_v12  ;;  %v10745_v48 = vpop.permute.xlu0 %3484  ;;  %v4531_v24 = vcombine.high %v4521_v62, %v4521_v62  ;;  %v4810_v45 = vmax.f32 %v4521_v62, %v4529_v15 }
 0x32f   : > { %v4020_v5 = vcombine.high %v4018_v3, %v4018_v3  ;;  %v10784_v59 = vrot.slane %v4380_v20, %v9120_v12  ;;  %v10789_v28 = vrot.slane %v5145_v60, %v10774_v50  ;;  %v4034_v62 = vrot.slane %v4018_v3, %v9120_v12 }
 0x330   : > { %v10747_v32 = vcombine.low %v4940_v57, %v4947_v23  ;;  %v10749_v36 = vpop.permute.xlu1 %3383  ;;  %v4846_v49 = vmax.f32 %v4810_v45, %v4531_v24  ;;  %v4394_v57 = vrot.slane %v4378_v18, %v9120_v12  ;;  %v4922_v3 = vrot.slane %v10658_v26, %v9120_v12 }
 0x331   : > { %v10778_v22 = vrot.slane %v4020_v5, %v9120_v12  ;;  %v4140_v18 = vcombine.high %v4138_v46, %v4138_v46  ;;  %v5042_v5 = vrot.slane %v10674_v30, %v9120_v12  ;;  %v4412_v20 = vcombine.high %v10784_v59, %v10784_v59 }
 0x332   : > { %v3661_v27 = vpop.permute.xlu0 %3660  ;;  %v5052_v17 = vcombine.low %v4845_v61, %v4846_v49  ;;  %v5159_v61 = vcombine.high %v5145_v60, %v5145_v60  ;;  %v4805_v16 = vmax.f32 %v4394_v57, %v10784_v59  ;;  %v10801_v49 = vcombine.high %v10789_v28, %v10789_v28 }
 0x333   : > { %v3906_v34 = vsel %vm3899_vm13, %v3887_v43, %v3661_v27  ;;  %v4787_v0 = vmax.f32 %v4034_v62, %v10778_v22  ;;  %v4050_v27 = vcombine.high %v4034_v62, %v4034_v62  ;;  %v4052_v52 = vcombine.high %v10778_v22, %v10778_v22 }
 0x334   : > { %v10751_v33 = vpop.permute.xlu1 %3548  ;;  %v5067_v56 = vrot.slane %v5052_v17, %v9120_v12  ;;  %v10806_v54 = vrot.slane %v5159_v61, %v10774_v50  ;;  %v5271_v43 = vrot.slane %v10801_v49, 7  ;;  %v3869_v22 = vsel %vm3861_vm11, %v10710_v40, %v10745_v48 }
 0x335   : > { %v10808_v35 = vmax.f32 %v4787_v0, %v4050_v27  ;;  %v10850_v61 = vrot.slane %v4140_v18, %v9120_v12  ;;  %v4484_v40 = vcombine.high %v10730_v41, %v10730_v41  ;;  %v4962_v30 = vrot.slane %v10747_v32, %v9120_v12 }
 0x336   : > { %v10757_v21 = vpop.permute.xlu0 %3428  ;;  %v10761_v47 = vcombine.low %v5060_v37, %v5067_v56  ;;  %v4410_v37 = vcombine.high %v4394_v57, %v4394_v57  ;;  %v5256_v60 = vcombine.high %v10806_v54, %v10806_v54  ;;  %v5274_v44 = vrot.slane %v10806_v54, 7 }
 0x338   : > { %v10763_v51 = vpop.permute.xlu1 %3593  ;;  %v10817_v6 = vmax.f32 %v4805_v16, %v4410_v37 }
 0x33a   : > { %v3575_v39 = vpop.permute.xlu0 %3574 }
 0x33b   : > { %v3888_v0 = vsel %vm3880_vm12, %v3869_v22, %v3575_v39 }
 0x33c   : > { %v10767_v63 = vpop.permute.xlu1 %3473 }
 0x33e   : > { %v3751_v11 = vpop.permute.xlu0 %3750 }
 0x33f   : > { %v3925_v55 = vsel %vm3918_vm14, %v3906_v34, %v3751_v11  ;;  %v3845_v34 = vsel %vm3842_vm10, %v10641_v2, %v10695_v29  ;;  %v3854_v2 = vsel %vm3842_vm10, %v10670_v31, %v10704_v13  ;;  %v10842_v29 = vrot.slane %v4138_v46, %v9120_v12 }
 0x340   : > { %v3639_v9 = vpop.permute.xlu1 %3638  ;;  %v4195_v42 = vcombine.high %v3925_v55, %v3925_v55  ;;  %v4202_v4 = vrot.slane %v3925_v55, %v9120_v12  ;;  %v10856_v31 = vrot.slane %v5271_v43, 2  ;;  %v3829_v13 = vsel %vm3823_vm9, %v10691_v58, %v10725_v7 }
 0x341   : > { %v3864_v48 = vsel %vm3861_vm11, %v3845_v34, %v10732_v1  ;;  %v4170_v7 = vcombine.high %v10842_v29, %v10842_v29 }
 0x342   : > { %v10781_v53 = vpop.permute.xlu0 %3518  ;;  %v4209_v23 = vrot.slane %v4195_v42, %v9120_v12  ;;  %v4210_v24 = vcombine.high %v4202_v4, %v4202_v4  ;;  %v7236_v42 = vrot.slane %v10789_v28, 9  ;;  %v3883_v39 = vsel %vm3880_vm12, %v3864_v48, %v10751_v33 }
 0x343   : > { %v3902_v1 = vsel %vm3899_vm13, %v3883_v39, %v3639_v9  ;;  %v4793_v33 = vmax.f32 %v10842_v29, %v10850_v61  ;;  %v10890_v48 = vrot.slane %v4484_v40, %v9120_v12 }
 0x344   : > { %v10792_v15 = vpop.permute.xlu1 %3683  ;;  %v4211_v56 = vcombine.high %v4209_v23, %v4209_v23  ;;  %v10811_v38 = vrot.slane %v4210_v24, %v9120_v12  ;;  %v4225_v24 = vrot.slane %v4209_v23, %v9120_v12  ;;  %v4218_v23 = vrot.slane %v4202_v4, %v9120_v12 }
 0x345   : > { %v3873_v4 = vsel %vm3861_vm11, %v3854_v2, %v10740_v14 }
 0x346   : > { %v3665_v45 = vpop.permute.xlu0 %3664  ;;  %v10832_v55 = vrot.slane %v4211_v56, %v9120_v12  ;;  %v4242_v62 = vcombine.high %v10811_v38, %v10811_v38  ;;  %v4241_v56 = vcombine.high %v4225_v24, %v4225_v24  ;;  %v4795_v34 = vmax.f32 %v4218_v23, %v10811_v38 }
 0x347   : > { %v3907_v16 = vsel %vm3899_vm13, %v3888_v0, %v3665_v45  ;;  %v3892_v29 = vsel %vm3880_vm12, %v3873_v4, %v10763_v51 }
 0x348   : > { %v10803_v17 = vpop.permute.xlu1 %3218  ;;  %v4243_v58 = vcombine.high %v10832_v55, %v10832_v55  ;;  %v4796_v41 = vmax.f32 %v4242_v62, %v4225_v24  ;;  %v3911_v38 = vsel %vm3899_vm13, %v3892_v29, %v10792_v15  ;;  %v3848_v15 = vsel %vm3842_vm10, %v3829_v13, %v10749_v36 }
 0x34a   : > { %v10813_v19 = vpop.permute.xlu0 %3128  ;;  %v4797_v14 = vmax.f32 %v4241_v56, %v4243_v58  ;;  %v4832_v2 = vmax.f32 %v4796_v41, %v10832_v55  ;;  %v4172_v55 = vcombine.high %v10850_v61, %v10850_v61 }
 0x34c   : > { %v10825_v11 = vpop.permute.xlu1 %3608 }
 0x34e   : > { %v3564_v57 = vpop.permute.xlu0 %3563 }
 0x350   : > { %v3755_v46 = vpop.permute.xlu1 %3754 }
 0x351   : > { %v10870_v27 = vsel %vm3918_vm14, %v3907_v16, %v3755_v46  ;;  %v4240_v16 = vcombine.high %v4218_v23, %v4218_v23 }
 0x352   : > { %v4251_v45 = vrot.slane %v10870_v27, %v9120_v12  ;;  %v3729_v37 = vpop.permute.xlu0 %3728  ;;  %v4244_v13 = vcombine.high %v10870_v27, %v10870_v27 }
 0x353   : > { %v3921_v18 = vsel %vm3918_vm14, %v3902_v1, %v3729_v37  ;;  %v4831_v51 = vmax.f32 %v4795_v34, %v4240_v16  ;;  %v3867_v34 = vsel %vm3861_vm11, %v3848_v15, %v10767_v63 }
 0x354   : > { %v4259_v22 = vcombine.high %v4251_v45, %v4251_v45  ;;  %v4267_v62 = vrot.slane %v4251_v45, %v9120_v12  ;;  %v4059_v9 = vrot.slane %v3921_v18, %v9120_v12  ;;  %v10887_v0 = vpop.permute.xlu1 %3308  ;;  %v3886_v61 = vsel %vm3880_vm12, %v3867_v34, %v3564_v57 }
 0x356   : > { %v4281_v24 = vrot.slane %v4259_v22, %v9120_v12  ;;  %v4289_v46 = vcombine.high %v4267_v62, %v4267_v62  ;;  %v3774_v39 = vpop.permute.xlu0 %3773  ;;  %v4833_v1 = vmax.f32 %v4797_v14, %v4267_v62  ;;  %v4060_v45 = vcombine.high %v4059_v9, %v4059_v9 }
 0x357   : > { %v4067_v40 = vrot.slane %v4059_v9, %v9120_v12  ;;  %v3930_v37 = vsel %vm3918_vm14, %v3911_v38, %v3774_v39  ;;  %v4500_v22 = vcombine.high %v10890_v48, %v10890_v48  ;;  %v4971_v62 = vcombine.low %v4831_v51, %v4832_v2 }
 0x358   : > { %v4291_v23 = vcombine.high %v4281_v24, %v4281_v24  ;;  %v4798_v58 = vmax.f32 %v4281_v24, %v4289_v46  ;;  %v3699_v4 = vpop.permute.xlu1 %3698  ;;  %v4074_v41 = vrot.slane %v4060_v45, %v9120_v12  ;;  %v4419_v18 = vrot.slane %v3930_v37, %v9120_v12 }
 0x359   : > { %v4788_v56 = vmax.f32 %v4052_v52, %v4067_v40  ;;  %v3838_v52 = vsel %vm3823_vm9, %v10701_v25, %v10737_v10  ;;  %v4829_v45 = vmax.f32 %v4793_v33, %v4170_v7  ;;  %v4980_v25 = vrot.slane %v4971_v62, %v9120_v12 }
 0x35a   : > { %v4834_v9 = vmax.f32 %v4798_v58, %v4291_v23  ;;  %v3654_v29 = vpop.permute.xlu0 %3653  ;;  %v4420_v14 = vcombine.high %v4419_v18, %v4419_v18  ;;  %v4427_v36 = vrot.slane %v4419_v18, %v9120_v12  ;;  %v4528_v40 = vrot.slane %v4500_v22, %v9120_v12 }
 0x35b   : > { %v4824_v16 = vmax.f32 %v4788_v56, %v4074_v41  ;;  %v3905_v63 = vsel %vm3899_vm13, %v3886_v61, %v3654_v29  ;;  %v3813_v62 = vsel %vm253_vm1, %v10813_v19, %v10803_v17 }
 0x35c   : > { %v4972_v38 = vcombine.low %v4833_v1, %v4834_v9  ;;  %v3744_v2 = vpop.permute.xlu1 %3743  ;;  %v4434_v57 = vrot.slane %v4420_v14, %v9120_v12  ;;  %v4806_v46 = vmax.f32 %v4412_v20, %v4427_v36 }
 0x35d   : > { %v4893_v24 = vcombine.low %v10808_v35, %v4824_v16  ;;  %v3924_v39 = vsel %vm3918_vm14, %v3905_v63, %v3744_v2  ;;  %v3857_v35 = vsel %vm3842_vm10, %v3838_v52, %v10757_v21  ;;  %v4258_v21 = vrot.slane %v4244_v13, %v9120_v12 }
 0x35e   : > { %v4987_v10 = vrot.slane %v4972_v38, %v9120_v12  ;;  %v4179_v27 = vrot.slane %v3924_v39, %v9120_v12  ;;  %v3399_v1 = vpop.permute.xlu0 %3398  ;;  %v4842_v51 = vmax.f32 %v4806_v46, %v4434_v57  ;;  %v3876_v59 = vsel %vm3861_vm11, %v3857_v35, %v10781_v53 }
 0x35f   : > { %v4914_v37 = vrot.slane %v4893_v24, %v9120_v12  ;;  %v3895_v58 = vsel %vm3880_vm12, %v3876_v59, %v10825_v11  ;;  %v4514_v53 = vrot.slane %v10890_v48, %v9120_v12  ;;  %v4260_v61 = vcombine.high %v4258_v21, %v4258_v21 }
 0x360   : > { %v10933_v20 = vcombine.low %v4980_v25, %v4987_v10  ;;  %v4180_v7 = vcombine.high %v4179_v27, %v4179_v27  ;;  %v4187_v33 = vrot.slane %v4179_v27, %v9120_v12  ;;  %v3489_v23 = vpop.permute.xlu1 %3488  ;;  %v5013_v41 = vcombine.low %v10817_v6, %v4842_v51 }
 0x361   : > { %v4929_v15 = vrot.slane %v4914_v37, %v9120_v12  ;;  %v3914_v56 = vsel %vm3899_vm13, %v3895_v58, %v3699_v4  ;;  %v4811_v4 = vmax.f32 %v4514_v53, %v4528_v40  ;;  %v4532_v16 = vcombine.high %v4528_v40, %v4528_v40 }
 0x362   : > { %v4194_v18 = vrot.slane %v4180_v7, %v9120_v12  ;;  %v4794_v22 = vmax.f32 %v4172_v55, %v4187_v33  ;;  %v3789_v34 = vpop.permute.xlu0 %3788  ;;  %v5034_v9 = vrot.slane %v5013_v41, %v9120_v12  ;;  %v3832_v55 = vsel %vm3823_vm9, %v3813_v62, %v10887_v0 }
 0x363   : > { %v4930_v11 = vcombine.low %v4922_v3, %v4929_v15  ;;  %v3933_v6 = vsel %vm3918_vm14, %v3914_v56, %v3789_v34  ;;  %v3851_v3 = vsel %vm3842_vm10, %v3832_v55, %v3399_v1  ;;  %v12403_v0 = vmov 0 }
 0x364   : > { %v4830_v29 = vmax.f32 %v4794_v22, %v4194_v18  ;;  %v4539_v17 = vrot.slane %v3933_v6, %v9120_v12  ;;  %v3669_v19 = vpop.permute.xlu1 %3668  ;;  %v5049_v26 = vrot.slane %v5034_v9, %v9120_v12  ;;  %v3870_v36 = vsel %vm3861_vm11, %v3851_v3, %v3489_v23 }
 0x365   : > { %5139 = vst.msk [vmem:[#allocation3 + $0x9] sm:$0x3f] %vm5138_vm6, %v4930_v11  ;;  %v12404_v0 = vsel %vm10971_vm3, 4294967295, %v12403_v0  ;;  %v5276_v24 = vrot.slane %v5274_v44, 2  ;;  %v5277_v57 = vrot.slane %v5256_v60, 7  ;;  %v4530_v46 = vcombine.high %v4514_v53, %v4514_v53 }
 0x366   : > { %v4933_v14 = vcombine.low %v4829_v45, %v4830_v29  ;;  %v4540_v52 = vcombine.high %v4539_v17, %v4539_v17  ;;  %v4547_v13 = vrot.slane %v4539_v17, %v9120_v12  ;;  %v3579_v38 = vpop.permute.xlu0 %3578  ;;  %12405 = vst [vmem:[#allocation92_spill] sm:$0xff] %v12404_v0  ;;  %v5050_v63 = vcombine.low %v5042_v5, %v5049_v26 }
 0x367   : > { %v3889_v2 = vsel %vm3880_vm12, %v3870_v36, %v3579_v38  ;;  %v4288_v5 = vrot.slane %v4260_v61, %v9120_v12  ;;  %v5272_v60 = vsel %vm10971_vm3, %v7236_v42, %v5271_v43  ;;  %v5275_v27 = vsel %vm10971_vm3, %v10856_v31, %v5274_v44 }
 0x368   : > { %v4954_v39 = vrot.slane %v4933_v14, %v9120_v12  ;;  %v4554_v45 = vrot.slane %v4540_v52, %v9120_v12  ;;  %v4812_v25 = vmax.f32 %v4532_v16, %v4547_v13  ;;  %v3166_v10 = vpop.permute.xlu1 %3165  ;;  %5142 = vst.msk [vmem:[#allocation3 + $0x21] sm:$0x3f] %vm5138_vm6, %v5050_v63  ;;  %v4847_v1 = vmax.f32 %v4811_v4, %v4530_v46 }
 0x369   : > { %v3908_v35 = vsel %vm3899_vm13, %v3889_v2, %v3669_v19  ;;  %v4274_v51 = vrot.slane %v4258_v21, %v9120_v12  ;;  %v5278_v44 = vsel %vm10971_vm3, %v5276_v24, %v5277_v57  ;;  %v5330_v41 = vcombine.low %v5272_v60, %v5275_v27 }
 0x36a   : > { %v4969_v32 = vrot.slane %v4954_v39, %v9120_v12  ;;  %v4848_v40 = vmax.f32 %v4812_v25, %v4554_v45  ;;  %v3759_v37 = vpop.permute.xlu0 %3758  ;;  %v4292_v53 = vcombine.high %v4288_v5, %v4288_v5  ;;  %v5082_v34 = vrot.slane %v10761_v47, %v9120_v12 }
 0x36b   : > { %v3927_v59 = vsel %vm3918_vm14, %v3908_v35, %v3759_v37  ;;  %v4799_v31 = vmax.f32 %v4274_v51, %v4288_v5  ;;  %v4290_v62 = vcombine.high %v4274_v51, %v4274_v51  ;;  %v5338_v38 = vrot.slane %v5330_v41, %v10774_v50 }
 0x36c   : > { %v4970_v7 = vcombine.low %v4962_v30, %v4969_v32  ;;  %v5053_v33 = vcombine.low %v4847_v1, %v4848_v40  ;;  %v4299_v43 = vrot.slane %v3927_v59, %v9120_v12  ;;  %v3346_v42 = vpop.permute.xlu1 %3345  ;;  %v5146_v23 = vld [vmem:[#allocation3 + $0x8] sm:$0xff]  ;;  %v5506_v63 = vcombine.low %v10789_v28, %v10801_v49 }
 0x36d   : > { %v5175_v58 = vcombine.high %v5146_v23, %v5146_v23  ;;  %v11009_v15 = vrot.slane %v5146_v23, %v10774_v50  ;;  %v4835_v3 = vmax.f32 %v4799_v31, %v4290_v62  ;;  %v5002_v40 = vrot.slane %v10933_v20, %v9120_v12  ;;  %v5682_v20 = vld [vmem:[%s11778_s3 + $0x10] sm:$0xff] }
 0x36e   : > { %5140 = vst.msk [vmem:[#allocation3 + $0x11] sm:$0x3f] %vm5138_vm6, %v4970_v7  ;;  %v5074_v21 = vrot.slane %v5053_v33, %v9120_v12  ;;  %v4300_v56 = vcombine.high %v4299_v43, %v4299_v43  ;;  %v4307_v18 = vrot.slane %v4299_v43, %v9120_v12  ;;  %v3256_v22 = vpop.permute.xlu0 %3255  ;;  %v11062_v37 = vrot.slane %v5506_v63, %v10774_v50 }
 0x36f   : > { %v11017_v11 = vrot.slane %v5175_v58, %v10774_v50  ;;  %v11021_v9 = vcombine.high %v11009_v15, %v11009_v15  ;;  %v7237_v29 = vrot.slane %v11009_v15, 9  ;;  %v5149_v17 = vld [vmem:[#allocation3 + $0x20] sm:$0xff]  ;;  %v3820_v24 = vsel %vm253_vm1, %v3166_v10, %v3256_v22 }
 0x370   : > { %v5089_v6 = vrot.slane %v5074_v21, %v9120_v12  ;;  %v4314_v48 = vrot.slane %v4300_v56, %v9120_v12  ;;  %v4800_v4 = vmax.f32 %v4292_v53, %v4307_v18  ;;  %v3260_v55 = vpop.permute.xlu1 %3259  ;;  %v5223_v26 = vcombine.high %v5149_v17, %v5149_v17 }
 0x371   : > { %v5281_v19 = vrot.slane %v11021_v9, 7  ;;  %v11029_v47 = vcombine.high %v11017_v11, %v11017_v11  ;;  %v5284_v61 = vrot.slane %v11017_v11, 7  ;;  %v11033_v52 = vrot.slane %v5149_v17, %v10774_v50 }
 0x372   : > { %v5090_v16 = vcombine.low %v5082_v34, %v5089_v6  ;;  %v4836_v14 = vmax.f32 %v4800_v4, %v4314_v48  ;;  %v3170_v36 = vpop.permute.xlu0 %3169  ;;  %v11047_v5 = vrot.slane %v5223_v26, %v10774_v50  ;;  %v3839_v35 = vsel %vm3823_vm9, %v3820_v24, %v3346_v42 }
 0x373   : > { %v11037_v13 = vsel %vm10971_vm3, %v7237_v29, %v5281_v19  ;;  %v5283_v39 = vrot.slane %v5281_v19, 2  ;;  %v5286_v25 = vrot.slane %v5284_v61, 2  ;;  %v5287_v30 = vrot.slane %v11029_v47, 7 }
 0x374   : > { %5143 = vst.msk [vmem:[#allocation3 + $0x29] sm:$0x3f] %vm5138_vm6, %v5090_v16  ;;  %v4973_v2 = vcombine.low %v4835_v3, %v4836_v14  ;;  %v3350_v57 = vpop.permute.xlu1 %3349  ;;  %v5331_v46 = vcombine.low %v5278_v44, %v11037_v13  ;;  %v11051_v60 = vcombine.high %v11033_v52, %v11033_v52  ;;  %v5683_v51 = vcombine.low %v10801_v49, %v10806_v54 }
 0x375   : > { %v5147_v45 = vld [vmem:[#allocation3 + $0x10] sm:$0xff]  ;;  %v3821_v42 = vsel %vm253_vm1, %v3170_v36, %v3260_v55  ;;  %v11080_v44 = vsel %vm10971_vm3, %v5283_v39, %v5284_v61  ;;  %v11084_v31 = vcombine.high %v11047_v5, %v11047_v5  ;;  %v5507_v58 = vcombine.low %v10806_v54, %v11009_v15 }
 0x376   : > { %v4994_v28 = vrot.slane %v4973_v2, %v9120_v12  ;;  %v3436_v27 = vpop.permute.xlu0 %3435  ;;  %v5345_v10 = vrot.slane %v5331_v46, %v10774_v50  ;;  %v5191_v1 = vcombine.high %v5147_v45, %v5147_v45  ;;  %v11056_v32 = vrot.slane %v5147_v45, %v10774_v50 }
 0x377   : > { %v11091_v53 = vsel %vm10971_vm3, %v5286_v25, %v5287_v30  ;;  %v5311_v18 = vrot.slane %v11051_v60, 7  ;;  %v3840_v22 = vsel %vm3823_vm9, %v3821_v42, %v3350_v57  ;;  %v7240_v6 = vrot.slane %v11033_v52, 9 }
 0x378   : > { %v5009_v59 = vrot.slane %v4994_v28, %v9120_v12  ;;  %v5346_v7 = vcombine.low %v5338_v38, %v5345_v10  ;;  %v3440_v33 = vpop.permute.xlu1 %3439  ;;  %v11068_v43 = vrot.slane %v5191_v1, %v10774_v50  ;;  %v11072_v23 = vcombine.high %v11056_v32, %v11056_v32 }
 0x379   : > { %v7238_v34 = vrot.slane %v11056_v32, 9  ;;  %v5314_v48 = vrot.slane %v11047_v5, 7  ;;  %v3858_v61 = vsel %vm3842_vm10, %v3839_v35, %v3436_v27  ;;  %v5347_v26 = vcombine.low %v11080_v44, %v11091_v53 }
 0x37a   : > { %v5010_v41 = vcombine.low %v5002_v40, %v5009_v59  ;;  %7358 = vmatmul.mubr.msk.f32.vlgmr.msra.gmra.mrb[0].mxu0 %vm263_vm15, %v5346_v7  ;;  %v3526_v21 = vpop.permute.xlu0 %3525  ;;  %v5291_v56 = vrot.slane %v11072_v23, 7  ;;  %v5294_v29 = vrot.slane %v11068_v43, 7  ;;  %v5313_v3 = vrot.slane %v5311_v18, 2 }
 0x37b   : > { %7360 = vmatprep.mubr.msk.f32.mxu0 %vm7699_vm2, %v12387_v8  ;;  %v5150_v62 = vld [vmem:[#allocation3 + $0x28] sm:$0xff]  ;;  %7390 = vmatpush3.msra.mxu0 %v5682_v20  ;;  %v5317_v16 = vrot.slane %v11084_v31, 7  ;;  %v5316_v2 = vrot.slane %v5314_v48, 2  ;;  %v3877_v24 = vsel %vm3861_vm11, %v3858_v61, %v3526_v21  ;;  %v3859_v57 = vsel %vm3842_vm10, %v3840_v22, %v3440_v33 }
 0x37c   : > { %5141 = vst.msk [vmem:[#allocation3 + $0x19] sm:$0x3f] %vm5138_vm6, %v5010_v41  ;;  %v3530_v4 = vpop.permute.xlu1 %3529  ;;  %v5293_v55 = vrot.slane %v5291_v56, 2  ;;  %v5239_v17 = vcombine.high %v5150_v62, %v5150_v62  ;;  %v11104_v19 = vrot.slane %v5150_v62, %v10774_v50  ;;  %7423 = vmatprep.subr.mxu0 %v12387_v8  ;;  %v11113_v36 = vsel %vm10971_vm3, %v7238_v34, %v5291_v56 }
 0x37d   : > { %v11129_v39 = vsel %vm10971_vm3, %v5313_v3, %v5314_v48  ;;  %v11133_v25 = vsel %vm10971_vm3, %v7240_v6, %v5311_v18  ;;  %v3878_v10 = vsel %vm3861_vm11, %v3859_v57, %v3530_v4  ;;  %v5355_v1 = vrot.slane %v5347_v26, %v10774_v50 }
 0x37e   : > { %v3616_v14 = vpop.permute.xlu0 %3615  ;;  %v11117_v38 = vsel %vm10971_vm3, %v5293_v55, %v5294_v29  ;;  %v11121_v63 = vcombine.high %v11104_v19, %v11104_v19  ;;  %12406 = vst [vmem:[#allocation103_spill] sm:$0xff] %v11129_v39  ;;  %v7241_v30 = vrot.slane %v11104_v19, 9  ;;  %v11138_v27 = vrot.slane %v5239_v17, %v10774_v50 }
 0x37f   : > { %v5348_v46 = vcombine.low %v11113_v36, %v11117_v38  ;;  %v5381_v35 = vcombine.low %v11133_v25, %v11129_v39  ;;  %v11149_v7 = vsel %vm10971_vm3, %v5316_v2, %v5317_v16  ;;  %v3896_v41 = vsel %vm3880_vm12, %v3877_v24, %v3616_v14 }
 0x380   : > { %v3620_v45 = vpop.permute.xlu1 %3619  ;;  %v5321_v28 = vrot.slane %v11121_v63, 7  ;;  %12408 = vst [vmem:[#allocation111_spill] sm:$0xff] %v11149_v7  ;;  %v11157_v20 = vcombine.high %v11138_v27, %v11138_v27  ;;  %v5324_v18 = vrot.slane %v11138_v27, 7  ;;  %v11170_v4 = vcombine.high %v11068_v43, %v11068_v43 }
 0x381   : > { %v11143_v40 = vrot.slane %v5348_v46, %v10774_v50  ;;  %v11174_v55 = vrot.slane %v5381_v35, %v10774_v50  ;;  %v5521_v14 = vrot.slane %v5507_v58, %v10774_v50  ;;  %v5296_v58 = vrot.slane %v5294_v29, 2 }
 0x382   : > { %v3706_v59 = vpop.permute.xlu0 %3705  ;;  %v11153_v33 = vsel %vm10971_vm3, %v7241_v30, %v5321_v28  ;;  %v5323_v42 = vrot.slane %v5321_v28, 2  ;;  %v5327_v62 = vrot.slane %v11157_v20, 7  ;;  %12410 = vst [vmem:[#allocation120_spill] sm:$0xff] %v11170_v4  ;;  %v5326_v26 = vrot.slane %v5324_v18, 2 }
 0x383   : > { %12407 = vst [vmem:[#allocation109_spill] sm:$0xff] %v11143_v40  ;;  %12409 = vst [vmem:[#allocation114_spill] sm:$0xff] %v11153_v33  ;;  %v5363_v21 = vcombine.low %v5355_v1, %v11143_v40  ;;  %v5382_v56 = vcombine.low %v11149_v7, %v11153_v33  ;;  %v5148_v22 = vld [vmem:[#allocation3 + $0x18] sm:$0xff]  ;;  %v3915_v3 = vsel %vm3899_vm13, %v3896_v41, %v3706_v59  ;;  %v5297_v41 = vrot.slane %v11170_v4, 7 }
 0x384   : > { %v3710_v34 = vpop.permute.xlu1 %3709  ;;  %v5207_v6 = vcombine.high %v5148_v22, %v5148_v22  ;;  %v11166_v48 = vrot.slane %v5148_v22, %v10774_v50  ;;  %v11181_v61 = vsel %vm10971_vm3, %v5323_v42, %v5324_v18  ;;  %v11202_v30 = vsel %vm10971_vm3, %v5326_v26, %v5327_v62  ;;  %v5255_v42 = vld [vmem:[%s11778_s3] sm:$0xff] }
 0x385   : > { %7361 = vmatmul.mubr.msk.f32.gmra.mrb[2].mxu0 %vm263_vm15, %v5363_v21  ;;  %v11177_v17 = vrot.slane %v5382_v56, %v10774_v50  ;;  %12412 = vst [vmem:[#allocation19_spill] sm:$0xff] %v11181_v61  ;;  %12413 = vst [vmem:[#allocation69_spill] sm:$0xff] %v11202_v30  ;;  %v5398_v59 = vcombine.low %v11181_v61, %v11202_v30  ;;  %v3897_v22 = vsel %vm3880_vm12, %v3878_v10, %v3620_v45 }
 0x386   : > { %v3796_v16 = vpop.permute.xlu0 %3795  ;;  %7363 = vmatprep.mubr.msk.f32.mxu0 %vm7699_vm2, %v12387_v8  ;;  %v11191_v2 = vrot.slane %v5207_v6, %v10774_v50  ;;  %v11195_v24 = vcombine.high %v11166_v48, %v11166_v48  ;;  %v7239_v29 = vrot.slane %v11166_v48, 9  ;;  %v11240_v49 = vsel %vm10971_vm3, %v5296_v58, %v5297_v41 }
 0x387   : > { %12411 = vst [vmem:[#allocation116_spill] sm:$0xff] %v11177_v17  ;;  %v3934_v57 = vsel %vm3918_vm14, %v3915_v3, %v3796_v16  ;;  %v5397_v46 = vcombine.low %v11174_v55, %v11177_v17  ;;  %v11227_v3 = vrot.slane %v5683_v51, %v10774_v50  ;;  %v11230_v16 = vrot.slane %v5398_v59, %v10774_v50 }
 0x388   : > { %v4555_v28 = vcombine.high %v3934_v57, %v3934_v57  ;;  %v4562_v1 = vrot.slane %v3934_v57, %v9120_v12  ;;  %v3264_v35 = vpop.permute.xlu1 %3263  ;;  %v11214_v21 = vcombine.high %v11191_v2, %v11191_v2  ;;  %v5301_v56 = vrot.slane %v11195_v24, 7 }
 0x389   : > { %7367 = vmatmul.mubr.msk.f32.vlgmr.msra.gmra.mrb[0].mxu1 %vm263_vm15, %v5397_v46  ;;  %v5304_v18 = vrot.slane %v11191_v2, 7  ;;  %v3916_v51 = vsel %vm3899_vm13, %v3897_v22, %v3710_v34  ;;  %v5522_v59 = vcombine.low %v11062_v37, %v5521_v14  ;;  %v5523_v58 = vcombine.low %v11021_v9, %v11017_v11 }
 0x38a   : > { %v4569_v62 = vrot.slane %v4555_v28, %v9120_v12  ;;  %v4570_v6 = vcombine.high %v4562_v1, %v4562_v1  ;;  %v3174_v26 = vpop.permute.xlu0 %3173  ;;  %7369 = vmatprep.mubr.msk.f32.mxu1 %vm7699_vm2, %v12387_v8  ;;  %7373 = vmatpush3.msra.mxu1 %v5255_v42  ;;  %v11234_v45 = vsel %vm10971_vm3, %v7239_v29, %v5301_v56  ;;  %v5303_v10 = vrot.slane %v5301_v56, 2 }
 0x38b   : > { %v5306_v57 = vrot.slane %v5304_v18, 2  ;;  %v4578_v28 = vrot.slane %v4562_v1, %v9120_v12  ;;  %7406 = vmatprep.subr.mxu1 %v12387_v8  ;;  %v5307_v42 = vrot.slane %v11214_v21, 7  ;;  %v5364_v1 = vcombine.low %v11240_v49, %v11234_v45 }
 0x38c   : > { %v4571_v46 = vcombine.high %v4569_v62, %v4569_v62  ;;  %v4592_v4 = vrot.slane %v4570_v6, %v9120_v12  ;;  %v3354_v30 = vpop.permute.xlu1 %3353  ;;  %v11255_v34 = vsel %vm10971_vm3, %v5303_v10, %v5304_v18  ;;  %v5524_v22 = vcombine.low %v11056_v32, %v11072_v23 }
 0x38d   : > { %7370 = vmatmul.mubr.msk.f32.gmra.mrb[2].mxu1 %vm263_vm15, %v11230_v16  ;;  %v11262_v14 = vsel %vm10971_vm3, %v5306_v57, %v5307_v42  ;;  %v11265_v41 = vrot.slane %v5364_v1, %v10774_v50  ;;  %v4600_v33 = vcombine.high %v4578_v28, %v4578_v28  ;;  %v3822_v18 = vsel %vm253_vm1, %v3174_v26, %v3264_v35 }
 0x38e   : > { %v4599_v29 = vrot.slane %v4571_v46, %v9120_v12  ;;  %v4602_v56 = vcombine.high %v4592_v4, %v4592_v4  ;;  %v3800_v6 = vpop.permute.xlu0 %3799  ;;  %7374 = vmatprep.mubr.msk.f32.mxu1 %vm7699_vm2, %v12387_v8  ;;  %v4585_v46 = vrot.slane %v4569_v62, %v9120_v12  ;;  %v5365_v42 = vcombine.low %v11255_v34, %v11262_v14 }
 0x38f   : > { %v3935_v37 = vsel %vm3918_vm14, %v3916_v51, %v3800_v6  ;;  %v5881_v51 = vld [vmem:[%s11778_s3 + $0x18] sm:$0xff]  ;;  %v4813_v6 = vmax.f32 %v4578_v28, %v4592_v4  ;;  %v11284_v4 = vrot.slane %v5524_v22, %v10774_v50  ;;  %v11293_v40 = vrot.slane %v5523_v58, %v10774_v50 }
 0x390   : > { %v4604_v10 = vcombine.high %v3935_v37, %v3935_v37  ;;  %v4611_v57 = vrot.slane %v3935_v37, %v9120_v12  ;;  %v4814_v62 = vmax.f32 %v4602_v56, %v4585_v46  ;;  %v4603_v0 = vcombine.high %v4599_v29, %v4599_v29  ;;  %v3534_v61 = vpop.permute.xlu1 %3533 }
 0x391   : > { %7375 = vmatmul.mubr.msk.f32.vlgmr.msra.gmra.mrb[4].mxu1 %vm263_vm15, %v5522_v59  ;;  %v3841_v37 = vsel %vm3823_vm9, %v3822_v18, %v3354_v30  ;;  %v11289_v39 = vrot.slane %v5365_v42, %v10774_v50  ;;  %v4601_v56 = vcombine.high %v4585_v46, %v4585_v46  ;;  %v4849_v22 = vmax.f32 %v4813_v6, %v4600_v33 }
 0x392   : > { %v4618_v35 = vrot.slane %v4604_v10, %v9120_v12  ;;  %v3444_v26 = vpop.permute.xlu0 %3443  ;;  %7377 = vmatprep.mubr.msk.f32.mxu1 %vm7699_vm2, %v12387_v8  ;;  %v4619_v28 = vcombine.high %v4611_v57, %v4611_v57  ;;  %v4627_v59 = vrot.slane %v4611_v57, %v9120_v12  ;;  %7407 = vmatpush3.msra.mxu1 %v5881_v51  ;;  %vm7051_vm1 = vcmask 125952  }
 0x393   : > { %v3860_v10 = vsel %vm3842_vm10, %v3841_v37, %v3444_v26  ;;  %7440 = vmatprep.subr.mxu1 %v12387_v8  ;;  %v5380_v30 = vcombine.low %v11265_v41, %v11289_v39  ;;  %v4850_v18 = vmax.f32 %v4814_v62, %v4599_v29  ;;  %v4815_v46 = vmax.f32 %v4601_v56, %v4603_v0 }
 0x394   : > { %v4620_v1 = vcombine.high %v4618_v35, %v4618_v35  ;;  %v4641_v7 = vrot.slane %v4619_v28, %v9120_v12  ;;  %v4649_v17 = vcombine.high %v4627_v59, %v4627_v59  ;;  %v11300_v57 = vrot.slane %v4618_v35, %v9120_v12  ;;  %v3714_v29 = vpop.permute.xlu1 %3713 }
 0x395   : > { %v5539_v51 = vcombine.low %v11293_v40, %v11284_v4  ;;  %v3879_v37 = vsel %vm3861_vm11, %v3860_v10, %v3534_v61  ;;  %7364 = vmatmul.mubr.msk.f32.gmra.mrb[4].mxu0 %vm263_vm15, %v5380_v30  ;;  %v7271_v33 = vcombine.high %v11017_v11, %v11056_v32  ;;  %v5540_v61 = vcombine.low %v11068_v43, %v11166_v48 }
 0x396   : > { %v3624_v42 = vpop.permute.xlu0 %3623  ;;  %v4651_v58 = vcombine.high %v4641_v7, %v4641_v7  ;;  %v4816_v26 = vmax.f32 %v4641_v7, %v4649_v17  ;;  %v4648_v6 = vrot.slane %v4620_v1, %v9120_v12  ;;  %7391 = vmatprep.mubr.msk.f32.mxu0 %vm7699_vm2, %v12387_v8  ;;  %v7252_v7 = vcombine.high %v10806_v54, %v11009_v15 }
 0x397   : > { %7378 = vmatmul.mubr.msk.f32.gmra.mrb[6].mxu1 %vm263_vm15, %v5539_v51  ;;  %v3898_v0 = vsel %vm3880_vm12, %v3879_v37, %v3624_v42  ;;  %v5541_v1 = vcombine.low %v11195_v24, %v11191_v2  ;;  %v5091_v62 = vcombine.low %v4849_v22, %v4850_v18  ;;  %v4851_v35 = vmax.f32 %v4815_v46, %v4627_v59 }
 0x398   : > { %v4852_v17 = vmax.f32 %v4816_v26, %v4651_v58  ;;  %7380 = vmatprep.mubr.msk.f32.mxu1 %vm7699_vm2, %v12387_v8  ;;  %v5698_v28 = vrot.slane %v7252_v7, %v10774_v50  ;;  %v5700_v10 = vcombine.low %v11017_v11, %v11029_v47  ;;  %v4650_v54 = vcombine.high %v11300_v57, %v11300_v57 }
 0x399   : > { %v3917_v30 = vsel %vm3899_vm13, %v3898_v0, %v3714_v29  ;;  %v11328_v51 = vrot.slane %v5540_v61, %v10774_v50  ;;  %v11331_v42 = vrot.slane %v5541_v1, %v10774_v50  ;;  %v4817_v22 = vmax.f32 %v11300_v57, %v4648_v6  ;;  %v6058_v29 = vld [vmem:[%s11778_s3 + $0x20] sm:$0xff] }
 0x39a   : > { %v3804_v56 = vpop.permute.xlu0 %3803  ;;  %v5699_v59 = vcombine.low %v11227_v3, %v5698_v28  ;;  %v5701_v47 = vcombine.low %v11072_v23, %v11068_v43  ;;  %v5092_v46 = vcombine.low %v4851_v35, %v4852_v17  ;;  %v5708_v37 = vrot.slane %v5700_v10, %v10774_v50 }
 0x39b   : > { %v3936_v18 = vsel %vm3918_vm14, %v3917_v30, %v3804_v56  ;;  %v5556_v58 = vcombine.low %v11328_v51, %v11331_v42  ;;  %v5557_v3 = vcombine.low %v11033_v52, %v11051_v60  ;;  %v5558_v57 = vcombine.low %v11047_v5, %v11104_v19 }
 0x39c   : > { %v4659_v26 = vrot.slane %v3936_v18, %v9120_v12  ;;  %7392 = vmatmul.mubr.msk.f32.vlgmr.msra.gmra.mrb[6].mxu0 %vm263_vm15, %v5699_v59  ;;  %v11344_v0 = vrot.slane %v5701_v47, %v10774_v50  ;;  %v7253_v23 = vcombine.high %v11068_v43, %v11166_v48  ;;  %v4652_v7 = vcombine.high %v4648_v6, %v4648_v6 }
 0x39d   : > { %7381 = vmatmul.mubr.msk.f32.gmra.mrb[8].mxu1 %vm263_vm15, %v5556_v58  ;;  %7394 = vmatprep.mubr.msk.f32.mxu0 %vm7699_vm2, %v12387_v8  ;;  %v11363_v35 = vrot.slane %v5557_v3, %v10774_v50  ;;  %v11366_v28 = vrot.slane %v5558_v57, %v10774_v50  ;;  %v5718_v56 = vcombine.low %v11191_v2, %v11214_v21 }
 0x39e   : > { %v4660_v17 = vcombine.high %v4659_v26, %v4659_v26  ;;  %v4667_v61 = vrot.slane %v4659_v26, %v9120_v12  ;;  %v5716_v1 = vcombine.low %v5708_v37, %v11344_v0  ;;  %7383 = vmatprep.mubr.msk.f32.mxu1 %vm7699_vm2, %v12387_v8  ;;  %v5107_v10 = vrot.slane %v5092_v46, %v9120_v12 }
 0x39f   : > { %v11373_v59 = vrot.slane %v7253_v23, %v10774_v50  ;;  %7424 = vmatpush3.msra.mxu0 %v6058_v29  ;;  %v5573_v18 = vcombine.low %v11363_v35, %v11366_v28  ;;  %v11379_v47 = vrot.slane %v5718_v56, %v10774_v50  ;;  %v5574_v21 = vcombine.low %v11121_v63, %v11138_v27 }
 0x3a0   : > { %v4674_v6 = vrot.slane %v4660_v17, %v9120_v12  ;;  %v4818_v30 = vmax.f32 %v4652_v7, %v4667_v61  ;;  %7395 = vmatmul.mubr.msk.f32.gmra.mrb[8].mxu0 %vm263_vm15, %v5716_v1  ;;  %v5734_v46 = vcombine.low %v11051_v60, %v11047_v5  ;;  %v5100_v58 = vrot.slane %v5091_v62, %v9120_v12 }
 0x3a1   : > { %v4853_v26 = vmax.f32 %v4817_v22, %v4650_v54  ;;  %7397 = vmatprep.mubr.msk.f32.mxu0 %vm7699_vm2, %v12387_v8  ;;  %v7254_v3 = vcombine.high %v11047_v5, %v11104_v19  ;;  %7384 = vmatmul.mubr.msk.f32.gmra.mrb[10].mxu1 %vm263_vm15, %v5573_v18  ;;  %v5733_v57 = vcombine.low %v11373_v59, %v11379_v47 }
 0x3a2   : > { %v4854_v37 = vmax.f32 %v4818_v30, %v4674_v6  ;;  %v5882_v23 = vcombine.low %v11009_v15, %v11021_v9  ;;  %v5883_v60 = vcombine.low %v11017_v11, %v11056_v32  ;;  %v5115_v62 = vcombine.low %v5100_v58, %v5107_v10  ;;  %7386 = vmatprep.mubr.msk.f32.mxu1 %vm7699_vm2, %v12387_v8 }
 0x3a3   : > { %v11400_v22 = vrot.slane %v7254_v3, %v10774_v50  ;;  %v11404_v29 = vrot.slane %v5574_v21, %v10774_v50  ;;  %v11407_v7 = vrot.slane %v5734_v46, %v10774_v50  ;;  %v5899_v9 = vcombine.low %v11166_v48, %v11195_v24  ;;  %7457 = vmatprep.subr.mxu0 %v12387_v8  ;;  %v6415_v3 = vld [vmem:[%s11778_s3 + $0x30] sm:$0xff] }
 0x3a4   : > { %v5093_v54 = vcombine.low %v4853_v26, %v4854_v37  ;;  %7398 = vmatmul.mubr.msk.f32.gmra.mrb[10].mxu0 %vm263_vm15, %v5733_v57  ;;  %v5897_v15 = vrot.slane %v5883_v60, %v10774_v50  ;;  %v6060_v61 = vcombine.low %v11091_v53, %v11113_v36  ;;  %v5890_v56 = vrot.slane %v5882_v23, %v10774_v50  ;;  %v12414_v57 = vld [vmem:[#allocation116_spill] sm:$0xff] }
 0x3a5   : > { %7400 = vmatprep.mubr.msk.f32.mxu0 %vm7699_vm2, %v12387_v8  ;;  %7387 = vmatmul.mubr.msk.f32.gmra.mrb[12].mxu1 %vm263_vm15, %v11404_v29  ;;  %v5750_v1 = vcombine.low %v11407_v7, %v11400_v22  ;;  %v5751_v10 = vcombine.low %v11138_v27, %v11157_v20  ;;  %v6059_v48 = vcombine.low %v11037_v13, %v11080_v44  ;;  %v6240_v20 = vld [vmem:[%s11778_s3 + $0x28] sm:$0xff] }
 0x3a6   : > { %v5114_v17 = vrot.slane %v5093_v54, %v9120_v12  ;;  %v5122_v24 = vrot.slane %v5115_v62, %v9120_v12  ;;  %7408 = vmatprep.mubr.msk.f32.mxu1 %vm7699_vm2, %v12387_v8  ;;  %v5898_v53 = vcombine.low %v5890_v56, %v5897_v15  ;;  %v5906_v36 = vrot.slane %v5899_v9, %v10774_v50 }
 0x3a7   : > { %v5908_v30 = vcombine.low %v11191_v2, %v11033_v52  ;;  %v6074_v44 = vrot.slane %v6060_v61, %v10774_v50  ;;  %v11443_v18 = vrot.slane %v5751_v10, %v10774_v50  ;;  %v6077_v21 = vcombine.low %v11234_v45, %v11255_v34 }
 0x3a8   : > { %v5129_v6 = vrot.slane %v5114_v17, %v9120_v12  ;;  %7401 = vmatmul.mubr.msk.f32.gmra.mrb[12].mxu0 %vm263_vm15, %v5750_v1  ;;  %v7272_v46 = vcombine.high %v11191_v2, %v11033_v52  ;;  %v6067_v58 = vrot.slane %v6059_v48, %v10774_v50  ;;  %v6076_v26 = vcombine.low %v11117_v38, %v11240_v49 }
 0x3a9   : > { %7403 = vmatprep.mubr.msk.f32.mxu0 %vm7699_vm2, %v12387_v8  ;;  %7409 = vmatmul.mubr.msk.f32.vlgmr.msra.gmra.mrb[14].mxu1 %vm263_vm15, %v5898_v53  ;;  %v6260_v37 = vcombine.low %v11047_v5, %v11084_v31  ;;  %v5907_v45 = vcombine.low %v11344_v0, %v5906_v36  ;;  %v5915_v52 = vrot.slane %v5908_v30, %v10774_v50 }
 0x3aa   : > { %v5130_v13 = vcombine.low %v5122_v24, %v5129_v6  ;;  %7411 = vmatprep.mubr.msk.f32.mxu1 %vm7699_vm2, %v12387_v8  ;;  %7441 = vmatpush3.msra.mxu1 %v6240_v20  ;;  %v11463_v2 = vrot.slane %v7272_v46, %v10774_v50  ;;  %v6562_v5 = vcombine.low %v11289_v39, %v11174_v55 }
 0x3ab   : > { %7474 = vmatprep.subr.mxu1 %v12387_v8  ;;  %v11468_v38 = vrot.slane %v6260_v37, %v10774_v50  ;;  %v6075_v31 = vcombine.low %v6067_v58, %v6074_v44  ;;  %v6091_v49 = vrot.slane %v6077_v21, %v10774_v50  ;;  %v6093_v34 = vcombine.low %v11262_v14, %v11133_v25  ;;  %v12415_v25 = vld [vmem:[#allocation111_spill] sm:$0xff]  ;;  %v12418_v21 = vld [vmem:[#allocation114_spill] sm:$0xff] }
 0x3ac   : > { %5144 = vst.msk [vmem:[#allocation3 + $0x31] sm:$0x3f] %vm5138_vm6, %v5130_v13  ;;  %7404 = vmatmul.mubr.msk.f32.gmra.mrb[14].mxu0 %vm263_vm15, %v11443_v18  ;;  %v6563_v23 = vcombine.low %v12414_v57, %v11230_v16  ;;  %v5916_v62 = vcombine.low %v5915_v52, %v11407_v7  ;;  %v6084_v54 = vrot.slane %v6076_v26, %v10774_v50  ;;  %v12416_v14 = vld [vmem:[#allocation103_spill] sm:$0xff] }
 0x3ad   : > { %7425 = vmatprep.mubr.msk.f32.mxu0 %vm7699_vm2, %v12387_v8  ;;  %7412 = vmatmul.mubr.msk.f32.gmra.mrb[16].mxu1 %vm263_vm15, %v5907_v45  ;;  %v6275_v60 = vcombine.low %v11463_v2, %v11468_v38  ;;  %v6094_v15 = vcombine.low %v12416_v14, %v12415_v25  ;;  %v6101_v17 = vrot.slane %v6093_v34, %v10774_v50  ;;  %v12417_v44 = vld [vmem:[#allocation19_spill] sm:$0xff] }
 0x3ae   : > { %7414 = vmatprep.mubr.msk.f32.mxu1 %vm7699_vm2, %v12387_v8  ;;  %v6092_v9 = vcombine.low %v6084_v54, %v6091_v49  ;;  %v5917_v1 = vcombine.low %v11104_v19, %v11121_v63  ;;  %v6110_v46 = vcombine.low %v12418_v21, %v12417_v44  ;;  %v12420_v49 = vld [vmem:[#allocation69_spill] sm:$0xff]  ;;  %v6418_v2 = vcombine.low %v11366_v28, %v11404_v29 }
 0x3af   : > { %v6108_v48 = vrot.slane %v6094_v15, %v10774_v50  ;;  %v6696_v55 = vcombine.low %v11379_v47, %v11407_v7  ;;  %v6697_v47 = vcombine.low %v11400_v22, %v11443_v18 }
 0x3b0   : > { %7426 = vmatmul.mubr.msk.f32.vlgmr.msra.gmra.mrb[16].mxu0 %vm263_vm15, %v6075_v31  ;;  %v5925_v53 = vrot.slane %v5917_v1, %v10774_v50  ;;  %v6118_v25 = vrot.slane %v6110_v46, %v10774_v50 }
 0x3b1   : > { %7428 = vmatprep.mubr.msk.f32.mxu0 %vm7699_vm2, %v12387_v8  ;;  %7458 = vmatpush3.msra.mxu0 %v6415_v3  ;;  %v6109_v6 = vcombine.low %v6101_v17, %v6108_v48 }
 0x3b2   : > { %7415 = vmatmul.mubr.msk.f32.gmra.mrb[18].mxu1 %vm263_vm15, %v5916_v62  ;;  %7491 = vmatprep.subr.mxu0 %v12387_v8 }
 0x3b3   : > { %v5151_v61 = vld [vmem:[#allocation3 + $0x30] sm:$0xff]  ;;  %7417 = vmatprep.mubr.msk.f32.mxu1 %vm7699_vm2, %v12387_v8 }
 0x3b4   : > { %v5865_v56 = vcombine.high %v5151_v61, %v5151_v61  ;;  %v11500_v10 = vrot.slane %v5151_v61, %v10774_v50  ;;  %7429 = vmatmul.mubr.msk.f32.gmra.mrb[18].mxu0 %vm263_vm15, %v6092_v9  ;;  %v6248_v9 = vrot.slane %v7271_v33, %v10774_v50  ;;  %v6560_v33 = vld [vmem:[%s11778_s3 + $0x38] sm:$0xff] }
 0x3b5   : > { %7431 = vmatprep.mubr.msk.f32.mxu0 %vm7699_vm2, %v12387_v8 }
 0x3b6   : > { %v5918_v24 = vcombine.low %v11138_v27, %v11500_v10  ;;  %v11509_v19 = vrot.slane %v5865_v56, %v10774_v50  ;;  %v11513_v63 = vcombine.high %v11500_v10, %v11500_v10  ;;  %v7265_v30 = vrot.slane %v11500_v10, 9  ;;  %v12421_v56 = vld [vmem:[#allocation120_spill] sm:$0xff] }
 0x3b7   : > { %v6250_v48 = vcombine.low %v11068_v43, %v12421_v56  ;;  %v6249_v11 = vcombine.low %v11293_v40, %v6248_v9 }
 0x3b8   : > { %v5932_v36 = vrot.slane %v5918_v24, %v10774_v50  ;;  %v6050_v20 = vrot.slane %v11513_v63, 7  ;;  %v11521_v13 = vcombine.high %v11509_v19, %v11509_v19  ;;  %7432 = vmatmul.mubr.msk.f32.gmra.mrb[20].mxu0 %vm263_vm15, %v6109_v6  ;;  %v6053_v58 = vrot.slane %v11509_v19, 7  ;;  %v5152_v24 = vld [vmem:[#allocation3 + $0x38] sm:$0xff] }
 0x3b9   : > { %v5934_v37 = vcombine.low %v11513_v63, %v11509_v19  ;;  %7434 = vmatprep.mubr.msk.f32.mxu0 %vm7699_vm2, %v12387_v8  ;;  %v6257_v43 = vrot.slane %v6250_v48, %v10774_v50  ;;  %v7273_v6 = vcombine.high %v11138_v27, %v11500_v10 }
 0x3ba   : > { %v5933_v26 = vcombine.low %v5925_v53, %v5932_v36  ;;  %v11533_v52 = vsel %vm10971_vm3, %v7265_v30, %v6050_v20  ;;  %v6052_v31 = vrot.slane %v6050_v20, 2  ;;  %v6055_v3 = vrot.slane %v6053_v58, 2  ;;  %v6694_v36 = vld [vmem:[%s11778_s3 + $0x40] sm:$0xff] }
 0x3bb   : > { %v6111_v34 = vcombine.low %v12420_v49, %v11533_v52  ;;  %v6056_v62 = vrot.slane %v11521_v13, 7  ;;  %v11556_v17 = vrot.slane %v5934_v37, %v10774_v50  ;;  %v6258_v40 = vcombine.low %v6257_v43, %v11331_v42  ;;  %v12422_v49 = vld [vmem:[#allocation109_spill] sm:$0xff] }
 0x3bc   : > { %7418 = vmatmul.mubr.msk.f32.gmra.mrb[20].mxu1 %vm263_vm15, %v5933_v26  ;;  %v11541_v54 = vsel %vm10971_vm3, %v6052_v31, %v6053_v58  ;;  %v6416_v53 = vcombine.low %v11284_v4, %v11328_v51  ;;  %v11590_v30 = vrot.slane %v5152_v24, %v10774_v50  ;;  %v6399_v20 = vcombine.high %v5152_v24, %v5152_v24 }
 0x3bd   : > { %7420 = vmatprep.mubr.msk.f32.mxu1 %vm7699_vm2, %v12387_v8  ;;  %v6125_v14 = vrot.slane %v6111_v34, %v10774_v50  ;;  %v11549_v15 = vsel %vm10971_vm3, %v6055_v3, %v6056_v62  ;;  %v6283_v27 = vrot.slane %v7273_v6, %v10774_v50  ;;  %v6417_v4 = vcombine.low %v11331_v42, %v11363_v35 }
 0x3be   : > { %v6127_v1 = vcombine.low %v11541_v54, %v11549_v15  ;;  %v6419_v51 = vcombine.low %v11500_v10, %v11513_v63  ;;  %v6420_v44 = vcombine.low %v11509_v19, %v11590_v30  ;;  %v11613_v21 = vrot.slane %v6399_v20, %v10774_v50 }
 0x3bf   : > { %v6126_v61 = vcombine.low %v6118_v25, %v6125_v14  ;;  %v6284_v42 = vcombine.low %v11404_v29, %v6283_v27  ;;  %v6285_v35 = vcombine.low %v11509_v19, %v11521_v13  ;;  %v6414_v10 = vcombine.high %v11590_v30, %v11590_v30 }
 0x3c0   : > { %7421 = vmatmul.mubr.msk.f32.gmra.mrb[22].mxu1 %vm263_vm15, %v11556_v17  ;;  %v6134_v32 = vrot.slane %v6127_v1, %v10774_v50  ;;  %v6427_v38 = vrot.slane %v6419_v51, %v10774_v50  ;;  %v7284_v46 = vrot.slane %v11590_v30, 9  ;;  %v6549_v26 = vcombine.high %v11613_v21, %v11613_v21 }
 0x3c1   : > { %7435 = vmatmul.mubr.msk.f32.gmra.mrb[22].mxu0 %vm263_vm15, %v6126_v61  ;;  %7442 = vmatprep.mubr.msk.f32.mxu1 %vm7699_vm2, %v12387_v8  ;;  %v6436_v63 = vcombine.low %v6414_v10, %v11613_v21  ;;  %v6292_v13 = vrot.slane %v6285_v35, %v10774_v50  ;;  %v6552_v29 = vrot.slane %v6414_v10, 7  ;;  %v6555_v37 = vrot.slane %v11613_v21, 7 }
 0x3c2   : > { %7437 = vmatprep.mubr.msk.f32.mxu0 %vm7699_vm2, %v12387_v8  ;;  %v12423_v34 = vcombine.low %v12422_v49, %v11265_v41  ;;  %v6558_v25 = vrot.slane %v6549_v26, 7  ;;  %v6564_v14 = vcombine.low %v11533_v52, %v11541_v54  ;;  %v6695_v41 = vcombine.low %v11344_v0, %v11373_v59 }
 0x3c3   : > { %v6443_v58 = vrot.slane %v6436_v63, %v10774_v50  ;;  %v6553_v31 = vsel %vm10971_vm3, %v7284_v46, %v6552_v29  ;;  %v6554_v3 = vrot.slane %v6552_v29, 2  ;;  %v6557_v62 = vrot.slane %v6555_v37, 2 }
 0x3c4   : > { %7443 = vmatmul.mubr.msk.f32.vlgmr.msra.gmra.mrb[24].mxu1 %vm263_vm15, %v6249_v11  ;;  %v6565_v9 = vcombine.low %v11549_v15, %v6553_v31  ;;  %v6572_v0 = vrot.slane %v6564_v14, %v10774_v50  ;;  %v7290_v59 = vcombine.high %v11509_v19, %v11590_v30  ;;  %v6707_v57 = vcombine.low %v11613_v21, %v6549_v26 }
 0x3c5   : > { %7438 = vmatmul.mubr.msk.f32.gmra.mrb[24].mxu0 %vm263_vm15, %v6134_v32  ;;  %7445 = vmatprep.mubr.msk.f32.mxu1 %vm7699_vm2, %v12387_v8  ;;  %v6556_v61 = vsel %vm10971_vm3, %v6554_v3, %v6555_v37  ;;  %v6559_v52 = vsel %vm10971_vm3, %v6557_v62, %v6558_v25 }
 0x3c6   : > { %7475 = vmatpush3.msra.mxu1 %v6560_v33  ;;  %7459 = vmatprep.mubr.msk.f32.mxu0 %vm7699_vm2, %v12387_v8  ;;  %v6579_v39 = vrot.slane %v6565_v9, %v10774_v50  ;;  %v6705_v7 = vrot.slane %v7290_v59, %v10774_v50  ;;  %v6714_v22 = vrot.slane %v6707_v57, %v10774_v50 }
 0x3c8   : > { %7446 = vmatmul.mubr.msk.f32.gmra.mrb[26].mxu1 %vm263_vm15, %v6258_v40  ;;  %v6580_v45 = vcombine.low %v6572_v0, %v6579_v39 }
 0x3c9   : > { %7460 = vmatmul.mubr.msk.f32.vlgmr.msra.gmra.mrb[26].mxu0 %vm263_vm15, %v6416_v53  ;;  %7448 = vmatprep.mubr.msk.f32.mxu1 %vm7699_vm2, %v12387_v8 }
 0x3ca   : > { %7492 = vmatpush3.msra.mxu0 %v6694_v36  ;;  %7462 = vmatprep.mubr.msk.f32.mxu0 %vm7699_vm2, %v12387_v8 }
 0x3cc   : > { %7449 = vmatmul.mubr.msk.f32.gmra.mrb[28].mxu1 %vm263_vm15, %v6275_v60  ;;  %v6434_v60 = vrot.slane %v6420_v44, %v10774_v50 }
 0x3cd   : > { %7463 = vmatmul.mubr.msk.f32.gmra.mrb[28].mxu0 %vm263_vm15, %v6417_v4  ;;  %7451 = vmatprep.mubr.msk.f32.mxu1 %vm7699_vm2, %v12387_v8 }
 0x3ce   : > { %7465 = vmatprep.mubr.msk.f32.mxu0 %vm7699_vm2, %v12387_v8  ;;  %v6435_v28 = vcombine.low %v6427_v38, %v6434_v60 }
 0x3d0   : > { %7452 = vmatmul.mubr.msk.f32.gmra.mrb[30].mxu1 %vm263_vm15, %v6284_v42 }
 0x3d1   : > { %7466 = vmatmul.mubr.msk.f32.gmra.mrb[30].mxu0 %vm263_vm15, %v6418_v2  ;;  %7454 = vmatprep.mubr.msk.f32.mxu1 %vm7699_vm2, %v12387_v8 }
 0x3d2   : > { %7468 = vmatprep.mubr.msk.f32.mxu0 %vm7699_vm2, %v12387_v8 }
 0x3d4   : > { %7455 = vmatmul.mubr.msk.f32.gmra.mrb[32].mxu1 %vm263_vm15, %v6292_v13 }
 0x3d5   : > { %7469 = vmatmul.mubr.msk.f32.gmra.mrb[32].mxu0 %vm263_vm15, %v6435_v28  ;;  %7476 = vmatprep.mubr.msk.f32.mxu1 %vm7699_vm2, %v12387_v8 }
 0x3d6   : > { %7471 = vmatprep.mubr.msk.f32.mxu0 %vm7699_vm2, %v12387_v8 }
 0x3d8   : > { %7477 = vmatmul.mubr.msk.f32.vlgmr.msra.gmra.mrb[34].mxu1 %vm263_vm15, %v12423_v34 }
 0x3d9   : > { %7472 = vmatmul.mubr.msk.f32.gmra.mrb[34].mxu0 %vm263_vm15, %v6443_v58  ;;  %7479 = vmatprep.mubr.msk.f32.mxu1 %vm7699_vm2, %v12387_v8 }
 0x3da   : > { %7493 = vmatprep.mubr.msk.f32.mxu0 %vm7699_vm2, %v12387_v8 }
 0x3dc   : > { %7480 = vmatmul.mubr.msk.f32.gmra.mrb[36].mxu1 %vm263_vm15, %v6562_v5  ;;  %v6581_v5 = vcombine.low %v6556_v61, %v6559_v52 }
 0x3dd   : > { %7494 = vmatmul.mubr.msk.f32.vlgmr.msra.gmra.mrb[36].mxu0 %vm263_vm15, %v6695_v41  ;;  %7482 = vmatprep.mubr.msk.f32.mxu1 %vm7699_vm2, %v12387_v8 }
 0x3de   : > { %7496 = vmatprep.mubr.msk.f32.mxu0 %vm7699_vm2, %v12387_v8  ;;  %v6588_v16 = vrot.slane %v6581_v5, %v10774_v50 }
 0x3e0   : > { %7483 = vmatmul.mubr.msk.f32.gmra.mrb[38].mxu1 %vm263_vm15, %v6563_v23  ;;  %v6706_v23 = vcombine.low %v11556_v17, %v6705_v7 }
 0x3e1   : > { %7497 = vmatmul.mubr.msk.f32.gmra.mrb[38].mxu0 %vm263_vm15, %v6696_v55  ;;  %7485 = vmatprep.mubr.msk.f32.mxu1 %vm7699_vm2, %v12387_v8 }
 0x3e2   : > { %7499 = vmatprep.mubr.msk.f32.mxu0 %vm7699_vm2, %v12387_v8 }
 0x3e4   : > { %7486 = vmatmul.mubr.msk.f32.gmra.mrb[40].mxu1 %vm263_vm15, %v6580_v45 }
 0x3e5   : > { %7500 = vmatmul.mubr.msk.f32.gmra.mrb[40].mxu0 %vm263_vm15, %v6697_v47  ;;  %7488 = vmatprep.mubr.msk.f32.mxu1 %vm7699_vm2, %v12387_v8 }
 0x3e6   : > { %7502 = vmatprep.mubr.msk.f32.mxu0 %vm7699_vm2, %v12387_v8 }
 0x3e8   : > { %7489 = vmatmul.mubr.msk.f32.gmra.mrb[42].mxu1 %vm263_vm15, %v6588_v16 }
 0x3e9   : > { %7503 = vmatmul.mubr.msk.f32.gmra.mrb[42].mxu0 %vm263_vm15, %v6706_v23 }
 0x3ea   : > { %7505 = vmatprep.mubr.msk.f32.mxu0 %vm7699_vm2, %v12387_v8 }
 0x3ed   : > { %7506 = vmatmul.mubr.msk.f32.gmra.mrb[44].mxu0 %vm263_vm15, %v6714_v22 }
 0x44d   : > { %v5482_v18 = vpop.f32.mrb[0].mxu0 }
 0x44e   : > { %v7359_v19 = vpop.f32.mrb[1].mxu0 }
 0x458   : > { %v5487_v54 = vpop.f32.mrb[2].mxu0 }
 0x459   : > { %v7362_v15 = vpop.f32.mrb[3].mxu0 }
 0x45c   : > { %v5497_v1 = vpop.f32.mrb[0].mxu1 }
 0x45d   : > { %v7368_v56 = vpop.f32.mrb[1].mxu1 }
 0x460   : > { %v5502_v48 = vpop.f32.mrb[2].mxu1 }
 0x461   : > { %v7371_v11 = vpop.f32.mrb[3].mxu1 }
 0x464   : > { %v5658_v17 = vpop.f32.mrb[4].mxu1 }
 0x465   : > { %v5659_v32 = vadd.f32 %v5658_v17, %v5482_v18  ;;  %v7376_v33 = vpop.f32.mrb[5].mxu1 }
 0x468   : > { %v5492_v43 = vpop.f32.mrb[4].mxu0 }
 0x469   : > { %v7365_v24 = vpop.f32.mrb[5].mxu0 }
 0x46a   : > { %v5663_v40 = vpop.f32.mrb[6].mxu1 }
 0x46b   : > { %v5664_v6 = vadd.f32 %v5663_v40, %v5487_v54  ;;  %v7379_v53 = vpop.f32.mrb[7].mxu1 }
 0x46f   : > { %v5835_v36 = vpop.f32.mrb[6].mxu0 }
 0x470   : > { %v5859_v8 = vadd.f32 %v5835_v36, %v5659_v32  ;;  %v7393_v30 = vpop.f32.mrb[7].mxu0  ;;  %v5668_v20 = vpop.f32.mrb[8].mxu1 }
 0x471   : > { %v5669_v27 = vadd.f32 %v5668_v20, %v5492_v43  ;;  %v7382_v4 = vpop.f32.mrb[9].mxu1 }
 0x473   : > { %v5840_v51 = vpop.f32.mrb[8].mxu0 }
 0x474   : > { %v5860_v44 = vadd.f32 %v5840_v51, %v5664_v6  ;;  %v7396_v21 = vpop.f32.mrb[9].mxu0  ;;  %v5673_v42 = vpop.f32.mrb[10].mxu1 }
 0x475   : > { %v5674_v35 = vadd.f32 %v5673_v42, %v5497_v1  ;;  %v7385_v2 = vpop.f32.mrb[11].mxu1 }
 0x477   : > { %v5845_v38 = vpop.f32.mrb[10].mxu0 }
 0x478   : > { %v5861_v60 = vadd.f32 %v5845_v38, %v5669_v27  ;;  %v7399_v10 = vpop.f32.mrb[11].mxu0  ;;  %v5678_v63 = vpop.f32.mrb[12].mxu1 }
 0x479   : > { %v5679_v13 = vadd.f32 %v5678_v63, %v5502_v48  ;;  %v7388_v28 = vpop.f32.mrb[13].mxu1 }
 0x47b   : > { %v5850_v29 = vpop.f32.mrb[12].mxu0 }
 0x47c   : > { %v5862_v46 = vadd.f32 %v5850_v29, %v5674_v35  ;;  %v7402_v58 = vpop.f32.mrb[13].mxu0  ;;  %v6018_v26 = vpop.f32.mrb[14].mxu1 }
 0x47d   : > { %v6042_v37 = vadd.f32 %v6018_v26, %v5859_v8  ;;  %v7410_v31 = vpop.f32.mrb[15].mxu1 }
 0x47f   : > { %v5855_v49 = vpop.f32.mrb[14].mxu0 }
 0x480   : > { %v5863_v34 = vadd.f32 %v5855_v49, %v5679_v13  ;;  %v7405_v3 = vpop.f32.mrb[15].mxu0  ;;  %v6023_v62 = vpop.f32.mrb[16].mxu1 }
 0x481   : > { %v6043_v25 = vadd.f32 %v6023_v62, %v5860_v44  ;;  %v7413_v14 = vpop.f32.mrb[17].mxu1 }
 0x482   : > { %v7296_v14 = vld [vmem:[%s11779_s4] ss:$0 sm:$0xff] }
 0x483   : > { %v6211_v9 = vpop.f32.mrb[16].mxu0 }
 0x484   : > { %v6235_v41 = vadd.f32 %v6211_v9, %v6042_v37  ;;  %v7427_v61 = vpop.f32.mrb[17].mxu0 }
 0x485   : > { %v6028_v52 = vpop.f32.mrb[18].mxu1 }
 0x486   : > { %v6044_v0 = vadd.f32 %v6028_v52, %v5861_v60  ;;  %v7416_v39 = vpop.f32.mrb[19].mxu1 }
 0x487   : > { %v6216_v55 = vpop.f32.mrb[18].mxu0 }
 0x488   : > { %v6236_v59 = vadd.f32 %v6216_v55, %v6043_v25  ;;  %v7430_v5 = vpop.f32.mrb[19].mxu0 }
 0x48b   : > { %v6221_v45 = vpop.f32.mrb[20].mxu0 }
 0x48c   : > { %v6237_v47 = vadd.f32 %v6221_v45, %v6044_v0  ;;  %v7433_v7 = vpop.f32.mrb[21].mxu0 }
 0x48f   : > { %v6033_v16 = vpop.f32.mrb[20].mxu1 }
 0x490   : > { %v6045_v57 = vadd.f32 %v6033_v16, %v5862_v46  ;;  %v7419_v23 = vpop.f32.mrb[21].mxu1 }
 0x493   : > { %v6038_v22 = vpop.f32.mrb[22].mxu1 }
 0x494   : > { %v6046_v18 = vadd.f32 %v6038_v22, %v5863_v34  ;;  %v7422_v19 = vpop.f32.mrb[23].mxu1  ;;  %v6226_v54 = vpop.f32.mrb[22].mxu0 }
 0x495   : > { %v6238_v15 = vadd.f32 %v6226_v54, %v6045_v57  ;;  %v7436_v1 = vpop.f32.mrb[23].mxu0 }
 0x497   : > { %v6369_v56 = vpop.f32.mrb[24].mxu1 }
 0x498   : > { %v6393_v48 = vadd.f32 %v6369_v56, %v6235_v41  ;;  %v6231_v11 = vpop.f32.mrb[24].mxu0  ;;  %v7444_v17 = vpop.f32.mrb[25].mxu1 }
 0x499   : > { %v6239_v32 = vadd.f32 %v6231_v11, %v6046_v18  ;;  %v7439_v33 = vpop.f32.mrb[25].mxu0 }
 0x49b   : > { %v6374_v43 = vpop.f32.mrb[26].mxu1 }
 0x49c   : > { %v6394_v24 = vadd.f32 %v6374_v43, %v6236_v59  ;;  %v7447_v40 = vpop.f32.mrb[27].mxu1  ;;  %v6520_v6 = vpop.f32.mrb[26].mxu0 }
 0x49d   : > { %v6544_v53 = vadd.f32 %v6520_v6, %v6393_v48  ;;  %v7461_v36 = vpop.f32.mrb[27].mxu0 }
 0x49f   : > { %v6379_v8 = vpop.f32.mrb[28].mxu1 }
 0x4a0   : > { %v6395_v30 = vadd.f32 %v6379_v8, %v6237_v47  ;;  %v7450_v20 = vpop.f32.mrb[29].mxu1  ;;  %v6525_v27 = vpop.f32.mrb[28].mxu0 }
 0x4a1   : > { %v6545_v4 = vadd.f32 %v6525_v27, %v6394_v24  ;;  %v7464_v51 = vpop.f32.mrb[29].mxu0 }
 0x4a3   : > { %v6384_v44 = vpop.f32.mrb[30].mxu1 }
 0x4a4   : > { %v6396_v21 = vadd.f32 %v6384_v44, %v6238_v15  ;;  %v7453_v42 = vpop.f32.mrb[31].mxu1  ;;  %v6530_v35 = vpop.f32.mrb[30].mxu0 }
 0x4a5   : > { %v6546_v2 = vadd.f32 %v6530_v35, %v6395_v30  ;;  %v7467_v38 = vpop.f32.mrb[31].mxu0 }
 0x4a7   : > { %v6389_v60 = vpop.f32.mrb[32].mxu1 }
 0x4a8   : > { %v6397_v10 = vadd.f32 %v6389_v60, %v6239_v32  ;;  %v7456_v63 = vpop.f32.mrb[33].mxu1  ;;  %v6535_v13 = vpop.f32.mrb[32].mxu0 }
 0x4a9   : > { %v6547_v28 = vadd.f32 %v6535_v13, %v6396_v21  ;;  %v7470_v29 = vpop.f32.mrb[33].mxu0 }
 0x4ab   : > { %v6665_v46 = vpop.f32.mrb[34].mxu1 }
 0x4ac   : > { %v6689_v58 = vadd.f32 %v6665_v46, %v6544_v53  ;;  %v6540_v26 = vpop.f32.mrb[34].mxu0  ;;  %v7478_v37 = vpop.f32.mrb[35].mxu1 }
 0x4ad   : > { %v6548_v31 = vadd.f32 %v6540_v26, %v6397_v10  ;;  %v7473_v49 = vpop.f32.mrb[35].mxu0 }
 0x4af   : > { %v6670_v34 = vpop.f32.mrb[36].mxu1 }
 0x4b0   : > { %v6690_v3 = vadd.f32 %v6670_v34, %v6545_v4  ;;  %v7481_v62 = vpop.f32.mrb[37].mxu1  ;;  %v6791_v25 = vpop.f32.mrb[36].mxu0 }
 0x4b1   : > { %v6815_v9 = vadd.f32 %v6791_v25, %v6689_v58  ;;  %v7495_v41 = vpop.f32.mrb[37].mxu0 }
 0x4b3   : > { %v6827_v61 = vadd.f32 %v7296_v14, %v6815_v9  ;;  %v6675_v52 = vpop.f32.mrb[38].mxu1 }
 0x4b4   : > { %v6691_v0 = vadd.f32 %v6675_v52, %v6546_v2  ;;  %v7484_v39 = vpop.f32.mrb[39].mxu1  ;;  %v6796_v55 = vpop.f32.mrb[38].mxu0 }
 0x4b5   : > { %v6832_v59 = vmax.f32 %v6827_v61, 0.0  ;;  %v6816_v5 = vadd.f32 %v6796_v55, %v6690_v3  ;;  %v7498_v45 = vpop.f32.mrb[39].mxu0 }
 0x4b7   : > { %v6842_v47 = vcombine.high %v6832_v59, %v6832_v59  ;;  %v6849_v7 = vrot.slane %v6832_v59, %v10774_v50  ;;  %v6828_v16 = vadd.f32 %v7296_v14, %v6816_v5  ;;  %v6680_v57 = vpop.f32.mrb[40].mxu1 }
 0x4b8   : > { %v6692_v23 = vadd.f32 %v6680_v57, %v6547_v28  ;;  %v7487_v22 = vpop.f32.mrb[41].mxu1  ;;  %v6801_v18 = vpop.f32.mrb[40].mxu0 }
 0x4b9   : > { %v6856_v19 = vrot.slane %v6842_v47, %v10774_v50  ;;  %v6833_v54 = vmax.f32 %v6828_v16, 0.0  ;;  %v6817_v15 = vadd.f32 %v6801_v18, %v6691_v0  ;;  %v7501_v1 = vpop.f32.mrb[41].mxu0  ;;  %v6857_v56 = vcombine.high %v6849_v7, %v6849_v7 }
 0x4bb   : > { %v6858_v48 = vcombine.high %v6856_v19, %v6856_v19  ;;  %v6859_v11 = vcombine.high %v6833_v54, %v6833_v54  ;;  %v6866_v17 = vrot.slane %v6833_v54, %v10774_v50  ;;  %v6829_v32 = vadd.f32 %v7296_v14, %v6817_v15  ;;  %v6685_v33 = vpop.f32.mrb[42].mxu1 }
 0x4bc   : > { %v6693_v43 = vadd.f32 %v6685_v33, %v6548_v31  ;;  %v6806_v24 = vpop.f32.mrb[42].mxu0  ;;  %v7490_v40 = vpop.f32.mrb[43].mxu1 }
 0x4bd   : > { %v6936_v6 = vmax.f32 %v6849_v7, %v6858_v48  ;;  %v6873_v53 = vrot.slane %v6859_v11, %v10774_v50  ;;  %v6874_v36 = vcombine.high %v6866_v17, %v6866_v17  ;;  %v6937_v8 = vmax.f32 %v6857_v56, %v6866_v17  ;;  %v7504_v30 = vpop.f32.mrb[43].mxu0 }
 0x4be   : > { %v6834_v20 = vmax.f32 %v6829_v32, 0.0  ;;  %v6818_v27 = vadd.f32 %v6806_v24, %v6692_v23 }
 0x4bf   : > { %v6875_v4 = vcombine.high %v6873_v53, %v6873_v53  ;;  %v6942_v51 = vmax.f32 %v6936_v6, %v6873_v53  ;;  %v6938_v44 = vmax.f32 %v6856_v19, %v6874_v36 }
 0x4c0   : > { %v6876_v21 = vcombine.high %v6834_v20, %v6834_v20  ;;  %v6883_v42 = vrot.slane %v6834_v20, %v10774_v50  ;;  %v6830_v35 = vadd.f32 %v7296_v14, %v6818_v27  ;;  %v6811_v2 = vpop.f32.mrb[44].mxu0 }
 0x4c1   : > { %v6943_v38 = vmax.f32 %v6937_v8, %v6875_v4  ;;  %v6960_v60 = vrot.slane %v6942_v51, %v9120_v12  ;;  %v6819_v10 = vadd.f32 %v6811_v2, %v6693_v43  ;;  %v7507_v63 = vpop.f32.mrb[45].mxu0 }
 0x4c2   : > { %v6890_v13 = vrot.slane %v6876_v21, %v10774_v50  ;;  %v6944_v28 = vmax.f32 %v6938_v44, %v6883_v42  ;;  %v6835_v29 = vmax.f32 %v6830_v35, 0.0  ;;  %v6891_v37 = vcombine.high %v6883_v42, %v6883_v42 }
 0x4c3   : > { %v6961_v46 = vcombine.high %v6960_v60, %v6960_v60  ;;  %v6968_v58 = vrot.slane %v6943_v38, %v9120_v12  ;;  %v6831_v26 = vadd.f32 %v7296_v14, %v6819_v10 }
 0x4c4   : > { %v6976_v31 = vrot.slane %v6944_v28, %v9120_v12  ;;  %v6893_v49 = vcombine.high %v6835_v29, %v6835_v29  ;;  %v6900_v34 = vrot.slane %v6835_v29, %v10774_v50  ;;  %v6892_v9 = vcombine.high %v6890_v13, %v6890_v13 }
 0x4c5   : > { %v7014_v3 = vmax.f32 %v6960_v60, %v6961_v46  ;;  %v6969_v62 = vcombine.high %v6968_v58, %v6968_v58  ;;  %v6836_v25 = vmax.f32 %v6831_v26, 0.0 }
 0x4c6   : > { %v6907_v41 = vrot.slane %v6893_v49, %v10774_v50  ;;  %v6908_v61 = vcombine.high %v6900_v34, %v6900_v34  ;;  %v6939_v52 = vmax.f32 %v6891_v37, %v6900_v34  ;;  %v6977_v39 = vcombine.high %v6976_v31, %v6976_v31 }
 0x4c7   : > { %v7018_v0 = vmax.f32 %v7014_v3, %v6968_v58  ;;  %v7015_v55 = vmax.f32 %v6969_v62, %v6976_v31  ;;  %v6916_v14 = vrot.slane %v6836_v25, %v10774_v50 }
 0x4c8   : > { %v6909_v59 = vcombine.high %v6907_v41, %v6907_v41  ;;  %v6941_v5 = vmax.f32 %v6892_v9, %v6907_v41  ;;  %v6940_v45 = vmax.f32 %v6890_v13, %v6908_v61 }
 0x4c9   : > { %v7019_v47 = vmax.f32 %v7015_v55, %v6977_v39  ;;  %v6917_v7 = vcombine.high %v6916_v14, %v6916_v14 }
 0x4ca   : > { %v6945_v16 = vmax.f32 %v6939_v52, %v6909_v59  ;;  %v6946_v57 = vmax.f32 %v6940_v45, %v6916_v14 }
 0x4cb   : > { %v6947_v23 = vmax.f32 %v6941_v5, %v6917_v7  ;;  %v7026_v22 = vcombine.low %v7018_v0, %v7019_v47 }
 0x4cc   : > { %v6984_v18 = vrot.slane %v6945_v16, %v9120_v12  ;;  %v6992_v19 = vrot.slane %v6946_v57, %v9120_v12 }
 0x4cd   : > { %v7000_v54 = vrot.slane %v6947_v23, %v9120_v12  ;;  %v7034_v33 = vrot.slane %v7026_v22, %v9120_v12 }
 0x4ce   : > { %v6985_v15 = vcombine.high %v6984_v18, %v6984_v18  ;;  %v6993_v1 = vcombine.high %v6992_v19, %v6992_v19 }
 0x4cf   : > { %v7001_v50 = vcombine.high %v7000_v54, %v7000_v54 }
 0x4d0   : > { %v7016_v56 = vmax.f32 %v6984_v18, %v6985_v15  ;;  %v7017_v48 = vmax.f32 %v6993_v1, %v7000_v54 }
 0x4d2   : > { %v7020_v11 = vmax.f32 %v7016_v56, %v6992_v19  ;;  %v7021_v17 = vmax.f32 %v7017_v48, %v7001_v50 }
 0x4d4   : > { %v7027_v32 = vcombine.low %v7020_v11, %v7021_v17 }
 0x4d6   : > { %v7041_v43 = vrot.slane %v7027_v32, %v9120_v12 }
 0x4d8   : > { %v7042_v24 = vcombine.low %v7034_v33, %v7041_v43 }
 0x4da   : > { %v7049_v40 = vrot.slane %v7042_v24, %v9120_v12 }
 0x4dc   : > { %7052 = vst.msk [vmem:[%s244_s10] sm:$0xf] %vm7051_vm1, %v7049_v40 }
 0x4dd   : > { %7633 = shalt.err (!%p7630_p1)
}
 0x4de   : > { %s7634_s7 = scalar_lea.hbm %s11733_s17, 64  ;;  %s7638_s11 = scalar_lea.hbm %s11780_s5, 128 }
 0x4df   : > { %p7635_p2 = scmp.ne.s32.totalorder %s11733_s17, %s7634_s7  ;;  %p7639_p9 = scmp.lt.u32.totalorder %s11733_s17, %s11780_s5 }
 0x4e0   : > { %p7640_p5 = scmp.lt.u32.totalorder %s7638_s11, %s7634_s7  ;;  %p7642_p10 = scmp.lt.u32.totalorder %s7634_s7, %s11733_s17 }
 0x4e1   : > { %p7636_p3 = pnand %p7635_p2, %p12424_p12 }
 0x4e2   : > { %p7641_p6 = por %p7640_p5, %p7639_p9 }
 0x4e3   : > { %p7637_p4 = pneg %p7636_p3 }
 0x4e4   : > { %p7643_p0 = por %p7642_p10, %p7641_p6 }
 0x4e6   : > { %p7644_p7 = pnand %p7643_p0, %p7637_p4 }
 0x4e8   : > { %7647 = shalt.err (!%p7644_p7)
}
 0x4e9   : > { %7519 = dma.vmem_to_hbm [thread:$0]  (%p12424_p12), %s11735_s26, 64, %s11733_s17, %s7054_s23  }
 0x4ea PF: > { %s12425_s14 = sld [smem:[#allocation13_spill]]  ;;  %s12426_s0 = sld [smem:[#allocation17_spill]] }
 0x4eb   : > { %p7536_p8 = scmp.ge.s32.totalorder %s7690_s21, 2 }
 0x4f0   : > { %s7079_s1 = sand.u32 1, %s12425_s14   ;;  %p12427_p11 = scmp.ne.s32.totalorder %s12426_s0, 0 }
 0x4f1   : > { %s7080_s2 = scalar_lea.sflag [#allocation5], %s7079_s1 }
 0x4f2   : > { %p7529_p13 = pnand %p7536_p8, %p12427_p11 }
 0x4f4   : > { %7673 = dma.done.wait (!%p7529_p13), %s7080_s2, 64  }
 0x4f5   : > { %7675 = vsyncadd (!%p7529_p13), %s7080_s2, 4294967232  ;;  %s12428_s21 = sld [smem:[#allocation15_spill]]  ;;  %s12429_s20 = sld [smem:[#allocation14_spill]] }
 0x4f6   : > { %s12430_s24 = sld [smem:[#allocation16_spill]]  ;;  %s12431_s18 = smov %s7682_s19 }
 0x4fb   : > { %p17_p1 = scmp.ge.s32.totalorder %s12428_s21, 4   ;;  %s12432_s19 = smov %s12429_s20 }
 0x4fc   : > { %s12433_s20 = smov %s12430_s24 }
 0x4fd   :  { %19 = sbr.rel (!%p17_p1) target bundleno = 9 (0x9), region = 86 }
 0x504   :  { %7085 = vsyncpa [#allocation5], 1 }
 0x505   :  { %7087 = vsyncpa [#allocation5 + $0x1], 1 }
 0x506   :  { %7088 = vsyncpa [#allocation6], 1 }
 0x507   :  { %7090 = vsyncpa [#allocation6 + $0x1], 1 }
 0x508   :  { %7091 = vsyncpa [#allocation8], 1 }

</bundles_post_ra>
